<compile_context>
chip_gen: v7x
topology: tpu7x:2x2x1
jax: 0.10.0
libtpu: 0.0.40
codegen_flags: <defaults>
</compile_context>

<pallas_src>
import functools

import jax
import jax.numpy as jnp
from jax import lax
from jax.experimental import pallas as pl
from jax.experimental.pallas import tpu as pltpu

NEG_SLOPE = 0.1  # LeakyReLU(0.1)


def _lrelu(v):
    return jnp.where(v >= 0, v, NEG_SLOPE * v)


# ----------------------------------------------------------------------------
# Fused Pallas kernel: layer0 (grouped 3x3) + layer1 (2x2/s2) + residual 1x1
# chain + final 1x1, all on one VMEM-resident pixel tile.
# bf16 MXU operands, f32 accumulation, bias + LeakyReLU in f32.
# ----------------------------------------------------------------------------
def _fused_kernel(p_ref, w0_ref, b0_ref, w1_ref, b1_ref, wr_ref, br_ref,
                  wf_ref, bf_ref, o_ref, *, n_res):
    f32, bf16 = jnp.float32, jnp.bfloat16
    # layer 0: grouped 3x3 conv for all four positions of the 2x2 stride-2
    # window at once (block-diagonal packed bf16 weight).
    # (tm,128)bf16 @ (128, 4*C1)bf16 -> f32
    y0 = jnp.dot(p_ref[...], w0_ref[...], preferred_element_type=f32)
    y0 = _lrelu(y0 + b0_ref[...])                       # bias + act in f32
    # layer 1: 2x2 stride-2 conv == one matmul over the 4 stacked positions.
    x = jnp.dot(y0.astype(bf16), w1_ref[...], preferred_element_type=f32)
    x = _lrelu(x + b1_ref[...])
    # residual 1x1 conv chain (small static count -> fully unrolled)
    for i in range(n_res):
        v = jnp.dot(x.astype(bf16), wr_ref[i], preferred_element_type=f32)
        x = x + _lrelu(v + br_ref[i])
    # final 1x1 conv + LeakyReLU
    v = jnp.dot(x.astype(bf16), wf_ref[...], preferred_element_type=f32)
    o_ref[...] = _lrelu(v + bf_ref[...]).astype(o_ref.dtype)


def fused_forward(patches, w0_big, b0, w1m, b1, w_res, b_res, w_last, b_last,
                  *, tm=4096):
    """Whole conv chain fused; tiled over the output-pixel (row) dimension."""
    M, K = patches.shape                  # K == 128 (lane-dense bf16 slab)
    n_res, Hd, _ = w_res.shape
    C4 = w0_big.shape[1]                  # 4 * C1
    Nout = w_last.shape[1]

    # --- pixel tiling --------------------------------------------------------
    # >= 2 grid steps so the "parallel" axis shards across v7x's 2 TensorCores,
    # and an even split so the last step is not mostly padding.
    n_steps = max(2, pl.cdiv(M, tm))
    tm_eff = ((pl.cdiv(M, n_steps) + 15) // 16) * 16     # mult of 16 (bf16 rows)
    Mp = n_steps * tm_eff
    if Mp != M:
        patches = jnp.pad(patches, ((0, Mp - M), (0, 0)))

    kernel = functools.partial(_fused_kernel, n_res=n_res)
    flops = 2 * Mp * (K * C4 + C4 * Hd + n_res * Hd * Hd + Hd * Nout)
    bytes_accessed = (2 * Mp * K + 4 * Mp * Nout
                      + 2 * (K * C4 + C4 * Hd + n_res * Hd * Hd + Hd * Nout)
                      + 4 * (C4 + (n_res + 2) * Hd + Nout))

    # v5e's default scoped VMEM is only 16 MiB; raise it for big tiles.
    # Cap at 48 MiB so the same config also fits v7x (64 MiB physical VMEM).
    vmem_limit = (48 if tm_eff >= 2048 else 32) * 1024 * 1024

    out = pl.pallas_call(
        kernel,
        out_shape=jax.ShapeDtypeStruct((Mp, Nout), jnp.float32),
        grid=(n_steps,),
        in_specs=[
            pl.BlockSpec((tm_eff, K), lambda i: (i, 0)),         # patch tile
            pl.BlockSpec((K, C4), lambda i: (0, 0)),             # W0 block-diag
            pl.BlockSpec((1, C4), lambda i: (0, 0)),             # b0 (tiled x4)
            pl.BlockSpec((C4, Hd), lambda i: (0, 0)),            # W1
            pl.BlockSpec((1, Hd), lambda i: (0, 0)),             # b1
            pl.BlockSpec((n_res, Hd, Hd), lambda i: (0, 0, 0)),  # residual Ws
            pl.BlockSpec((n_res, Hd), lambda i: (0, 0)),         # residual bs
            pl.BlockSpec((Hd, Nout), lambda i: (0, 0)),          # final W
            pl.BlockSpec((1, Nout), lambda i: (0, 0)),           # final b
        ],
        out_specs=pl.BlockSpec((tm_eff, Nout), lambda i: (i, 0)),
        compiler_params=pltpu.CompilerParams(
            dimension_semantics=("parallel",),
            vmem_limit_bytes=vmem_limit),
        cost_estimate=pl.CostEstimate(flops=flops, transcendentals=0,
                                      bytes_accessed=bytes_accessed),
    )(patches, w0_big, b0.reshape(1, C4), w1m, b1.reshape(1, Hd),
      w_res, b_res, w_last, b_last.reshape(1, Nout))
    return out[:M]


# ----------------------------------------------------------------------------
# Patch / weight packing glue (plain JAX, runs under jit, single bf16 slab)
# ----------------------------------------------------------------------------
def build_patches(x):
    """(N,3,H,W) -> (N*H2*W2, 128) lane-dense bf16 receptive-field slab.

    Column layout: k*32 + c*9 + di*3 + dj, where k = a*2+b is the position of
    the layer-1 2x2 stride-2 window and (di,dj) the 3x3 layer-0 tap; columns
    27..31 of each 32-wide block are zero padding.
    """
    # TODO(synk): move this im2col into the Pallas kernel (row-band BlockSpec or
    # pl.ANY + manual make_async_copy, building the 4x32 layout in VMEM) to
    # eliminate the expanded HBM activation slab entirely.
    N, C, H, W = x.shape
    H2, W2 = (H - 2) // 2, (W - 2) // 2
    xb = x.astype(jnp.bfloat16)        # bf16 operands; halves slab HBM traffic
    subs = []
    for a in range(2):
        for b in range(2):
            cols = []
            for di in range(3):
                for dj in range(3):
                    r0, c0 = a + di, b + dj
                    cols.append(xb[:, :, r0:r0 + 2 * H2:2, c0:c0 + 2 * W2:2])
            sub = jnp.stack(cols, axis=-1)           # (N,3,H2,W2,9)
            sub = sub.transpose(0, 2, 3, 1, 4)       # (N,H2,W2,3,9)
            sub = sub.reshape(N, H2, W2, C * 9)      # (N,H2,W2,27)
            sub = jnp.pad(sub, ((0, 0), (0, 0), (0, 0), (0, 32 - C * 9)))
            subs.append(sub)
    p = jnp.concatenate(subs, axis=-1)               # (N,H2,W2,128)
    return p.reshape(N * H2 * W2, 4 * 32), H2, W2


def pack_layer0_weight(w0, initial_size):
    """PyTorch grouped weight (C1,1,3,3), groups=3 -> block-diag (128, 4*C1)."""
    C1 = w0.shape[0]
    S = initial_size
    Wp = jnp.zeros((32, C1), dtype=w0.dtype)
    for g in range(3):
        blk = w0[g * S:(g + 1) * S, 0].reshape(S, 9).T        # (9, S)
        Wp = Wp.at[g * 9:(g + 1) * 9, g * S:(g + 1) * S].set(blk)
    # replicate on the diagonal for the four 2x2-window positions (k = 0..3)
    return jnp.kron(jnp.eye(4, dtype=w0.dtype), Wp)           # (128, 4*C1)


# ----------------------------------------------------------------------------
# Parameter init (xavier_uniform weights, zero biases) — deterministic
# ----------------------------------------------------------------------------
def _xavier(key, shape, fan_in, fan_out):
    bound = (6.0 / (fan_in + fan_out)) ** 0.5
    return jax.random.uniform(key, shape, jnp.float32, -bound, bound)


def init_params(key, in_size=3, initial_size=32, hidden_size=128,
                out_size=128, n_layers=4):
    assert in_size == 3, "module hard-codes groups=3"
    C1 = initial_size * in_size
    keys = jax.random.split(key, 3 + n_layers)
    p = {}
    p["w0"] = _xavier(keys[0], (C1, 1, 3, 3), 1 * 9, initial_size * 9)
    p["b0"] = jnp.zeros((C1,), jnp.float32)
    p["w1"] = _xavier(keys[1], (hidden_size, C1, 2, 2), C1 * 4, hidden_size * 4)
    p["b1"] = jnp.zeros((hidden_size,), jnp.float32)
    p["w_res"] = [
        _xavier(keys[2 + i], (hidden_size, hidden_size, 1, 1),
                hidden_size, hidden_size)
        for i in range(n_layers - 1)
    ]
    p["b_res"] = [jnp.zeros((hidden_size,), jnp.float32)
                  for _ in range(n_layers - 1)]
    p["w_last"] = _xavier(keys[2 + n_layers - 1], (out_size, hidden_size, 1, 1),
                          hidden_size, out_size)
    p["b_last"] = jnp.zeros((out_size,), jnp.float32)
    return p


# ----------------------------------------------------------------------------
# Forward pass (NCHW in / NCHW out, matching PyTorch)
# ----------------------------------------------------------------------------
def color_reconstruction_forward(x, params, initial_size, *, tm=4096):
    N, C, H, W = x.shape
    C1 = params["w0"].shape[0]
    hidden = params["w1"].shape[0]
    out_size = params["w_last"].shape[0]
    bf16 = jnp.bfloat16

    patches, H2, W2 = build_patches(x)                         # (M, 128) bf16

    # Weights packed once and cast to bf16 (MXU operands); biases stay f32.
    w0_big = pack_layer0_weight(params["w0"], initial_size).astype(bf16)
    b0_rep = jnp.tile(params["b0"], 4)                         # (4*C1,) f32
    w1m = (params["w1"].transpose(2, 3, 1, 0)
           .reshape(4 * C1, hidden).astype(bf16))
    w_res = jnp.stack([w.reshape(hidden, hidden).T
                       for w in params["w_res"]]).astype(bf16)
    b_res = jnp.stack(params["b_res"])                         # f32
    wf = params["w_last"].reshape(out_size, hidden).T.astype(bf16)

    y = fused_forward(patches, w0_big, b0_rep, w1m, params["b1"],
                      w_res, b_res, wf, params["b_last"], tm=tm)
    return y.reshape(N, H2, W2, out_size).transpose(0, 3, 1, 2)   # back to NCHW


# ----------------------------------------------------------------------------
# Pure-JAX reference (lax.conv) mirroring the kernel numerics:
# bf16 conv operands, f32 accumulation, bias + LeakyReLU in f32.
# ----------------------------------------------------------------------------
def reference_forward(x, params):
    q = lambda a: a.astype(jnp.bfloat16).astype(jnp.float32)
    dn = ("NCHW", "OIHW", "NCHW")
    hi = lax.Precision.HIGHEST
    y = lax.conv_general_dilated(q(x), q(params["w0"]), (1, 1), "VALID",
                                 dimension_numbers=dn, feature_group_count=3,
                                 precision=hi)
    y = _lrelu(y + params["b0"][None, :, None, None])
    y = lax.conv_general_dilated(q(y), q(params["w1"]), (2, 2), "VALID",
                                 dimension_numbers=dn, precision=hi)
    y = _lrelu(y + params["b1"][None, :, None, None])
    for w, b in zip(params["w_res"], params["b_res"]):
        z = lax.conv_general_dilated(q(y), q(w), (1, 1), "VALID",
                                     dimension_numbers=dn, precision=hi)
        y = y + _lrelu(z + b[None, :, None, None])
    z = lax.conv_general_dilated(q(y), q(params["w_last"]), (1, 1), "VALID",
                                 dimension_numbers=dn, precision=hi)
    return _lrelu(z + params["b_last"][None, :, None, None])


if __name__ == "__main__":
    # Module defaults: in=3 (groups=3), initial=32, hidden=128, out=128, n_layers=4
    key = jax.random.PRNGKey(0)
    k_x, k_p = jax.random.split(key)
    x = jax.random.normal(k_x, (2, 3, 32, 32), jnp.float32)   # NCHW like PyTorch
    params = init_params(k_p, in_size=3, initial_size=32, hidden_size=128,
                         out_size=128, n_layers=4)

    fwd = jax.jit(functools.partial(color_reconstruction_forward,
                                    initial_size=32))
    out = jax.block_until_ready(fwd(x, params))

    ref = jax.block_until_ready(reference_forward(x, params))
    assert out.shape == ref.shape == (2, 128, 15, 15), out.shape
    err = float(jnp.max(jnp.abs(out - ref)))
    assert jnp.allclose(out, ref, atol=2e-3, rtol=2e-3), err

    print("KERNEL_OK")
</pallas_src>

<mosaic_0001>
module attributes {stable_mosaic.version = 11 : i64} {
  func.func @_fused_kernel(%arg0: i32, %arg1: memref<240x128xbf16, #tpu.memory_space<vmem>>, %arg2: memref<128x384xbf16, #tpu.memory_space<vmem>>, %arg3: memref<1x384xf32, #tpu.memory_space<vmem>>, %arg4: memref<384x128xbf16, #tpu.memory_space<vmem>>, %arg5: memref<1x128xf32, #tpu.memory_space<vmem>>, %arg6: memref<3x128x128xbf16, #tpu.memory_space<vmem>>, %arg7: memref<3x128xf32, #tpu.memory_space<vmem>>, %arg8: memref<128x128xbf16, #tpu.memory_space<vmem>>, %arg9: memref<1x128xf32, #tpu.memory_space<vmem>>, %arg10: memref<240x128xf32, #tpu.memory_space<vmem>>) attributes {dimension_semantics = [#tpu.dimension_semantics<parallel>], iteration_bounds = array<i64: 2>, scalar_prefetch = 0 : i64, scratch_operands = 0 : i64, tpu.core_type = #tpu.core_type<tc>, window_params = [{transform_indices = @transform_0, window_bounds = array<i64: 240, 128>}, {pipeline_mode = #tpu.pipeline_mode<synchronous>, transform_indices = @transform_1, window_bounds = array<i64: 128, 384>}, {pipeline_mode = #tpu.pipeline_mode<synchronous>, transform_indices = @transform_2, window_bounds = array<i64: 1, 384>}, {pipeline_mode = #tpu.pipeline_mode<synchronous>, transform_indices = @transform_3, window_bounds = array<i64: 384, 128>}, {pipeline_mode = #tpu.pipeline_mode<synchronous>, transform_indices = @transform_4, window_bounds = array<i64: 1, 128>}, {pipeline_mode = #tpu.pipeline_mode<synchronous>, transform_indices = @transform_5, window_bounds = array<i64: 3, 128, 128>}, {pipeline_mode = #tpu.pipeline_mode<synchronous>, transform_indices = @transform_6, window_bounds = array<i64: 3, 128>}, {pipeline_mode = #tpu.pipeline_mode<synchronous>, transform_indices = @transform_7, window_bounds = array<i64: 128, 128>}, {pipeline_mode = #tpu.pipeline_mode<synchronous>, transform_indices = @transform_8, window_bounds = array<i64: 1, 128>}, {transform_indices = @transform_9, window_bounds = array<i64: 240, 128>}]} {
    %c0 = arith.constant 0 : index
    %c0_0 = arith.constant 0 : index
    %0 = vector.load %arg1[%c0, %c0_0] : memref<240x128xbf16, #tpu.memory_space<vmem>>, vector<240x128xbf16>
    %c0_1 = arith.constant 0 : index
    %c0_2 = arith.constant 0 : index
    %1 = vector.load %arg2[%c0_1, %c0_2] : memref<128x384xbf16, #tpu.memory_space<vmem>>, vector<128x384xbf16>
    %cst = arith.constant dense<0.000000e+00> : vector<240x384xf32>
    %2 = tpu.matmul %0, %1, %cst {dimension_numbers = #tpu.dot_dimension_numbers<[1], [0], [0], [1], [0, 0, 1, 1], [], []>} : vector<240x128xbf16>, vector<128x384xbf16>, vector<240x384xf32> -> vector<240x384xf32>
    %c0_3 = arith.constant 0 : index
    %c0_4 = arith.constant 0 : index
    %3 = vector.load %arg3[%c0_3, %c0_4] : memref<1x384xf32, #tpu.memory_space<vmem>>, vector<1x384xf32>
    %4 = vector.broadcast %3 : vector<1x384xf32> to vector<240x384xf32>
    %5 = arith.addf %2, %4 : vector<240x384xf32>
    %cst_5 = arith.constant 0.000000e+00 : f32
    %6 = vector.broadcast %cst_5 : f32 to vector<240x384xf32>
    %7 = arith.cmpf oge, %5, %6 : vector<240x384xf32>
    %cst_6 = arith.constant 1.000000e-01 : f32
    %8 = vector.broadcast %cst_6 : f32 to vector<240x384xf32>
    %9 = arith.mulf %8, %5 : vector<240x384xf32>
    %10 = arith.select %7, %5, %9 : vector<240x384xi1>, vector<240x384xf32>
    %11 = arith.truncf %10 : vector<240x384xf32> to vector<240x384xbf16>
    %c0_7 = arith.constant 0 : index
    %c0_8 = arith.constant 0 : index
    %12 = vector.load %arg4[%c0_7, %c0_8] : memref<384x128xbf16, #tpu.memory_space<vmem>>, vector<384x128xbf16>
    %cst_9 = arith.constant dense<0.000000e+00> : vector<240x128xf32>
    %13 = tpu.matmul %11, %12, %cst_9 {dimension_numbers = #tpu.dot_dimension_numbers<[1], [0], [0], [1], [0, 0, 1, 1], [], []>} : vector<240x384xbf16>, vector<384x128xbf16>, vector<240x128xf32> -> vector<240x128xf32>
    %c0_10 = arith.constant 0 : index
    %c0_11 = arith.constant 0 : index
    %14 = vector.load %arg5[%c0_10, %c0_11] : memref<1x128xf32, #tpu.memory_space<vmem>>, vector<1x128xf32>
    %15 = vector.broadcast %14 : vector<1x128xf32> to vector<240x128xf32>
    %16 = arith.addf %13, %15 : vector<240x128xf32>
    %cst_12 = arith.constant 0.000000e+00 : f32
    %17 = vector.broadcast %cst_12 : f32 to vector<240x128xf32>
    %18 = arith.cmpf oge, %16, %17 : vector<240x128xf32>
    %cst_13 = arith.constant 1.000000e-01 : f32
    %19 = vector.broadcast %cst_13 : f32 to vector<240x128xf32>
    %20 = arith.mulf %19, %16 : vector<240x128xf32>
    %21 = arith.select %18, %16, %20 : vector<240x128xi1>, vector<240x128xf32>
    %22 = arith.truncf %21 : vector<240x128xf32> to vector<240x128xbf16>
    %c0_14 = arith.constant 0 : index
    %c0_15 = arith.constant 0 : index
    %c0_16 = arith.constant 0 : index
    %23 = vector.load %arg6[%c0_14, %c0_15, %c0_16] : memref<3x128x128xbf16, #tpu.memory_space<vmem>>, vector<1x128x128xbf16>
    %24 = vector.shape_cast %23 : vector<1x128x128xbf16> to vector<128x128xbf16>
    %cst_17 = arith.constant dense<0.000000e+00> : vector<240x128xf32>
    %25 = tpu.matmul %22, %24, %cst_17 {dimension_numbers = #tpu.dot_dimension_numbers<[1], [0], [0], [1], [0, 0, 1, 1], [], []>} : vector<240x128xbf16>, vector<128x128xbf16>, vector<240x128xf32> -> vector<240x128xf32>
    %c0_18 = arith.constant 0 : index
    %c0_19 = arith.constant 0 : index
    %26 = vector.load %arg7[%c0_18, %c0_19] : memref<3x128xf32, #tpu.memory_space<vmem>>, vector<1x128xf32>
    %27 = vector.shape_cast %26 : vector<1x128xf32> to vector<128xf32>
    %28 = vector.shape_cast %27 : vector<128xf32> to vector<1x128xf32>
    %29 = vector.broadcast %28 : vector<1x128xf32> to vector<240x128xf32>
    %30 = arith.addf %25, %29 : vector<240x128xf32>
    %cst_20 = arith.constant 0.000000e+00 : f32
    %31 = vector.broadcast %cst_20 : f32 to vector<240x128xf32>
    %32 = arith.cmpf oge, %30, %31 : vector<240x128xf32>
    %cst_21 = arith.constant 1.000000e-01 : f32
    %33 = vector.broadcast %cst_21 : f32 to vector<240x128xf32>
    %34 = arith.mulf %33, %30 : vector<240x128xf32>
    %35 = arith.select %32, %30, %34 : vector<240x128xi1>, vector<240x128xf32>
    %36 = arith.addf %21, %35 : vector<240x128xf32>
    %37 = arith.truncf %36 : vector<240x128xf32> to vector<240x128xbf16>
    %c1 = arith.constant 1 : index
    %c0_22 = arith.constant 0 : index
    %c0_23 = arith.constant 0 : index
    %38 = vector.load %arg6[%c1, %c0_22, %c0_23] : memref<3x128x128xbf16, #tpu.memory_space<vmem>>, vector<1x128x128xbf16>
    %39 = vector.shape_cast %38 : vector<1x128x128xbf16> to vector<128x128xbf16>
    %cst_24 = arith.constant dense<0.000000e+00> : vector<240x128xf32>
    %40 = tpu.matmul %37, %39, %cst_24 {dimension_numbers = #tpu.dot_dimension_numbers<[1], [0], [0], [1], [0, 0, 1, 1], [], []>} : vector<240x128xbf16>, vector<128x128xbf16>, vector<240x128xf32> -> vector<240x128xf32>
    %c1_25 = arith.constant 1 : index
    %c0_26 = arith.constant 0 : index
    %41 = vector.load %arg7[%c1_25, %c0_26] : memref<3x128xf32, #tpu.memory_space<vmem>>, vector<1x128xf32>
    %42 = vector.shape_cast %41 : vector<1x128xf32> to vector<128xf32>
    %43 = vector.shape_cast %42 : vector<128xf32> to vector<1x128xf32>
    %44 = vector.broadcast %43 : vector<1x128xf32> to vector<240x128xf32>
    %45 = arith.addf %40, %44 : vector<240x128xf32>
    %cst_27 = arith.constant 0.000000e+00 : f32
    %46 = vector.broadcast %cst_27 : f32 to vector<240x128xf32>
    %47 = arith.cmpf oge, %45, %46 : vector<240x128xf32>
    %cst_28 = arith.constant 1.000000e-01 : f32
    %48 = vector.broadcast %cst_28 : f32 to vector<240x128xf32>
    %49 = arith.mulf %48, %45 : vector<240x128xf32>
    %50 = arith.select %47, %45, %49 : vector<240x128xi1>, vector<240x128xf32>
    %51 = arith.addf %36, %50 : vector<240x128xf32>
    %52 = arith.truncf %51 : vector<240x128xf32> to vector<240x128xbf16>
    %c2 = arith.constant 2 : index
    %c0_29 = arith.constant 0 : index
    %c0_30 = arith.constant 0 : index
    %53 = vector.load %arg6[%c2, %c0_29, %c0_30] : memref<3x128x128xbf16, #tpu.memory_space<vmem>>, vector<1x128x128xbf16>
    %54 = vector.shape_cast %53 : vector<1x128x128xbf16> to vector<128x128xbf16>
    %cst_31 = arith.constant dense<0.000000e+00> : vector<240x128xf32>
    %55 = tpu.matmul %52, %54, %cst_31 {dimension_numbers = #tpu.dot_dimension_numbers<[1], [0], [0], [1], [0, 0, 1, 1], [], []>} : vector<240x128xbf16>, vector<128x128xbf16>, vector<240x128xf32> -> vector<240x128xf32>
    %c2_32 = arith.constant 2 : index
    %c0_33 = arith.constant 0 : index
    %56 = vector.load %arg7[%c2_32, %c0_33] : memref<3x128xf32, #tpu.memory_space<vmem>>, vector<1x128xf32>
    %57 = vector.shape_cast %56 : vector<1x128xf32> to vector<128xf32>
    %58 = vector.shape_cast %57 : vector<128xf32> to vector<1x128xf32>
    %59 = vector.broadcast %58 : vector<1x128xf32> to vector<240x128xf32>
    %60 = arith.addf %55, %59 : vector<240x128xf32>
    %cst_34 = arith.constant 0.000000e+00 : f32
    %61 = vector.broadcast %cst_34 : f32 to vector<240x128xf32>
    %62 = arith.cmpf oge, %60, %61 : vector<240x128xf32>
    %cst_35 = arith.constant 1.000000e-01 : f32
    %63 = vector.broadcast %cst_35 : f32 to vector<240x128xf32>
    %64 = arith.mulf %63, %60 : vector<240x128xf32>
    %65 = arith.select %62, %60, %64 : vector<240x128xi1>, vector<240x128xf32>
    %66 = arith.addf %51, %65 : vector<240x128xf32>
    %67 = arith.truncf %66 : vector<240x128xf32> to vector<240x128xbf16>
    %c0_36 = arith.constant 0 : index
    %c0_37 = arith.constant 0 : index
    %68 = vector.load %arg8[%c0_36, %c0_37] : memref<128x128xbf16, #tpu.memory_space<vmem>>, vector<128x128xbf16>
    %cst_38 = arith.constant dense<0.000000e+00> : vector<240x128xf32>
    %69 = tpu.matmul %67, %68, %cst_38 {dimension_numbers = #tpu.dot_dimension_numbers<[1], [0], [0], [1], [0, 0, 1, 1], [], []>} : vector<240x128xbf16>, vector<128x128xbf16>, vector<240x128xf32> -> vector<240x128xf32>
    %c0_39 = arith.constant 0 : index
    %c0_40 = arith.constant 0 : index
    %70 = vector.load %arg9[%c0_39, %c0_40] : memref<1x128xf32, #tpu.memory_space<vmem>>, vector<1x128xf32>
    %71 = vector.broadcast %70 : vector<1x128xf32> to vector<240x128xf32>
    %72 = arith.addf %69, %71 : vector<240x128xf32>
    %cst_41 = arith.constant 0.000000e+00 : f32
    %73 = vector.broadcast %cst_41 : f32 to vector<240x128xf32>
    %74 = arith.cmpf oge, %72, %73 : vector<240x128xf32>
    %cst_42 = arith.constant 1.000000e-01 : f32
    %75 = vector.broadcast %cst_42 : f32 to vector<240x128xf32>
    %76 = arith.mulf %75, %72 : vector<240x128xf32>
    %77 = arith.select %74, %72, %76 : vector<240x128xi1>, vector<240x128xf32>
    %c0_43 = arith.constant 0 : index
    %c0_44 = arith.constant 0 : index
    %78 = vector.load %arg10[%c0_43, %c0_44] : memref<240x128xf32, #tpu.memory_space<vmem>>, vector<240x128xf32>
    tpu.vector_store %arg10[%c0_43, %c0_44], %77 {strides = array<i32>} : memref<240x128xf32, #tpu.memory_space<vmem>>, vector<240x128xf32>,
    return
  }
  func.func @transform_0(%arg0: i32) -> (i32, i32) {
    %c0_i32 = arith.constant 0 : i32
    %c0_i32_0 = arith.constant 0 : i32
    return %arg0, %c0_i32 : i32, i32
  }
  func.func @transform_1(%arg0: i32) -> (i32, i32) {
    %c0_i32 = arith.constant 0 : i32
    %c0_i32_0 = arith.constant 0 : i32
    %c0_i32_1 = arith.constant 0 : i32
    return %c0_i32, %c0_i32_0 : i32, i32
  }
  func.func @transform_2(%arg0: i32) -> (i32, i32) {
    %c0_i32 = arith.constant 0 : i32
    %c0_i32_0 = arith.constant 0 : i32
    %c0_i32_1 = arith.constant 0 : i32
    return %c0_i32, %c0_i32_0 : i32, i32
  }
  func.func @transform_3(%arg0: i32) -> (i32, i32) {
    %c0_i32 = arith.constant 0 : i32
    %c0_i32_0 = arith.constant 0 : i32
    %c0_i32_1 = arith.constant 0 : i32
    return %c0_i32, %c0_i32_0 : i32, i32
  }
  func.func @transform_4(%arg0: i32) -> (i32, i32) {
    %c0_i32 = arith.constant 0 : i32
    %c0_i32_0 = arith.constant 0 : i32
    %c0_i32_1 = arith.constant 0 : i32
    return %c0_i32, %c0_i32_0 : i32, i32
  }
  func.func @transform_5(%arg0: i32) -> (i32, i32, i32) {
    %c0_i32 = arith.constant 0 : i32
    %c0_i32_0 = arith.constant 0 : i32
    %c0_i32_1 = arith.constant 0 : i32
    %c0_i32_2 = arith.constant 0 : i32
    return %c0_i32, %c0_i32_0, %c0_i32_1 : i32, i32, i32
  }
  func.func @transform_6(%arg0: i32) -> (i32, i32) {
    %c0_i32 = arith.constant 0 : i32
    %c0_i32_0 = arith.constant 0 : i32
    %c0_i32_1 = arith.constant 0 : i32
    return %c0_i32, %c0_i32_0 : i32, i32
  }
  func.func @transform_7(%arg0: i32) -> (i32, i32) {
    %c0_i32 = arith.constant 0 : i32
    %c0_i32_0 = arith.constant 0 : i32
    %c0_i32_1 = arith.constant 0 : i32
    return %c0_i32, %c0_i32_0 : i32, i32
  }
  func.func @transform_8(%arg0: i32) -> (i32, i32) {
    %c0_i32 = arith.constant 0 : i32
    %c0_i32_0 = arith.constant 0 : i32
    %c0_i32_1 = arith.constant 0 : i32
    return %c0_i32, %c0_i32_0 : i32, i32
  }
  func.func @transform_9(%arg0: i32) -> (i32, i32) {
    %c0_i32 = arith.constant 0 : i32
    %c0_i32_0 = arith.constant 0 : i32
    return %arg0, %c0_i32 : i32, i32
  }
}

</mosaic_0001>

<bundles_post_ra>
// kernel: squeeze.3
= control target key start
LH: loop header
LB: loop body
LE: loop exit
PB: predicated region body
PF: predicated region fallthrough
CT: control target
= control target key end

     0   :  { %vm16_vm0 = vcmask 261120   ;;  %s61_s0 = inlined_call_operand.vmem [shape: f32[32,3,3], index: 0, kind: input, shape index: {}]   ;;  %s62_s1 = inlined_call_operand.vmem [shape: f32[32,9], index: 1, kind: output, shape index: {}]  }
   0x1   :  { %v29_v0 = vld [vmem:[%s61_s0 + $0x8] sm:$0xf]  ;;  %v30_v1 = vld [vmem:[%s61_s0 + $0x4] sm:$0xf]  ;;  %v13_v2 = vld [vmem:[%s61_s0] sm:$0xf] }
   0x2   :  { %8 = vst [vmem:[#allocation0 + $0x10] sm:$0xf] %v29_v0  ;;  %12 = vst [vmem:[#allocation0 + $0x8] sm:$0xf] %v30_v1 }
   0x3   :  { %14 = vst [vmem:[#allocation0] sm:$0xf] %v13_v2 }
   0x9   :  { %v19_v4 = vld [vmem:[#allocation0 + $0x8] sm:$0x7]   ;;  %v24_v5 = vld [vmem:[#allocation0 + $0x10] sm:$0x7]  }
   0xa   :  { %v15_v3 = vld [vmem:[#allocation0] sm:$0x7]   ;;  %31 = vst.msk [vmem:[%s62_s1 + $0x3] sm:$0x7] %vm16_vm0, %v19_v4   ;;  %32 = vst.msk [vmem:[%s62_s1 + $0x6] sm:$0x7] %vm16_vm0, %v24_v5  }
   0xb   :  { %17 = vst.msk [vmem:[%s62_s1] sm:$0x7] %vm16_vm0, %v15_v3  }

// kernel: tile.8
= control target key start
LH: loop header
LB: loop body
LE: loop exit
PB: predicated region body
PF: predicated region fallthrough
CT: control target
= control target key end

     0   :  { %s22_s0 = inlined_call_operand.vmem [shape: f32[96], index: 0, kind: input, shape index: {}]   ;;  %s23_s1 = inlined_call_operand.vmem [shape: f32[4,96], index: 1, kind: output, shape index: {}]  }
   0x1   :  { %v4_v0 = vld [vmem:[%s22_s0] ss:$0 sm:$0xff] }
   0x2   :  { %5 = vst [vmem:[%s23_s1] sm:$0xf] %v4_v0 }

// kernel: tile.9
= control target key start
LH: loop header
LB: loop body
LE: loop exit
PB: predicated region body
PF: predicated region fallthrough
CT: control target
= control target key end

     0   :  { %vm13_vm0 = vcmask 261120   ;;  %vm17_vm1 = vcmask 523264   ;;  %vm7_vm2 = vcmask 785408   ;;  %s67_s8 = smov 32   ;;  %s68_s9 = smov 64   ;;  %vm20_vm3 = vcmask 1048320   ;;  %s95_s0 = inlined_call_operand.vmem [shape: f32[4,96], index: 0, kind: input, shape index: {}]   ;;  %s96_s1 = inlined_call_operand.vmem [shape: f32[1,384], index: 1, kind: output, shape index: {}]  }
   0x1   :  { %v4_v0 = vld [vmem:[%s95_s0] sm:$0xf]  ;;  %s66_s0 = smov 96   ;;  %vm33_vm4 = vcmask 1048064   ;;  %vm40_vm5 = vcmask 1047808  }
   0x2   :  { %5 = vst [vmem:[#allocation1] sm:$0xf] %v4_v0 }
   0x9   :  { %v10_v1 = vld [vmem:[#allocation1 + $0x1] sm:$0x1]   ;;  %v23_v3 = vld [vmem:[#allocation1 + $0x2] sm:$0x1]   ;;  %v37_v6 = vld [vmem:[#allocation1 + $0x3] sm:$0x1]  }
   0xa   :  { %v12_v2 = vld [vmem:[#allocation1 + $0x1] sm:$0x1]   ;;  %v25_v5 = vld [vmem:[#allocation1 + $0x2] sm:$0x1]   ;;  %v6_v7 = vld [vmem:[#allocation1] sm:$0x1]   ;;  %38 = vrot.lane.b32.xlu1 %v37_v6, %s67_s8 }
   0xb   :  { %v14_v4 = vsel %vm13_vm0, %v12_v2, %v10_v1  ;;  %8 = vst.msk [vmem:[#allocation0] sm:$0x1] %vm7_vm2, %v6_v7   ;;  %v27_v8 = vsel %vm17_vm1, %v25_v5, %v23_v3 }
   0xc   :  { %15 = vrot.lane.b32.xlu0 %v14_v4, %s66_s0 }
  0x10   :  { %28 = vrot.lane.b32.xlu0 %v27_v8, %s68_s9 }
  0x7c   :  { %v39_v10 = vpop.permute.xlu1 %38  }
  0x7e   :  { %v16_v9 = vpop.permute.xlu0 %15  }
  0x7f   :  { %19 = vst.msk [vmem:[#allocation0 + $0x8] sm:$0x1] %vm17_vm1, %v16_v9  }
  0x80   :  { %21 = vst.msk [vmem:[#allocation0] sm:$0x1] %vm20_vm3, %v16_v9  }
  0x82   :  { %v29_v11 = vpop.permute.xlu0 %28  }
  0x83   :  { %32 = vst.msk [vmem:[#allocation0 + $0x10] sm:$0x1] %vm13_vm0, %v29_v11  }
  0x84   :  { %35 = vst.msk [vmem:[#allocation0 + $0x8] sm:$0x1] %vm33_vm4, %v29_v11  }
  0x85   :  { %42 = vst.msk [vmem:[#allocation0 + $0x10] sm:$0x1] %vm40_vm5, %v39_v10  }
  0x87   :  { %v46_v12 = vld [vmem:[#allocation0] sm:$0x1] }
  0x88   :  { %48 = vst [vmem:[%s96_s1] sm:$0x1] %v46_v12 }
  0x8b   :  { %v50_v13 = vld [vmem:[#allocation0 + $0x8] sm:$0x1] }
  0x8c   :  { %61 = vst [vmem:[%s96_s1 + $0x1] sm:$0x1] %v50_v13  ;;  %v55_v14 = vld [vmem:[#allocation0 + $0x10] sm:$0x1] }
  0x8d   :  { %62 = vst [vmem:[%s96_s1 + $0x2] sm:$0x1] %v55_v14 }

// kernel: color_reconstruction_forward.1
= control target key start
LH: loop header
LB: loop body
LE: loop exit
PB: predicated region body
PF: predicated region fallthrough
CT: control target
= control target key end

     0   :  { %s4384_s30 = smov 0   ;;  %s5603_s0 = inlined_call_operand.vmem [shape: bf16[480,128], index: 0, kind: input, shape index: {}]   ;;  %s5604_s1 = inlined_call_operand.vmem [shape: bf16[128,384], index: 1, kind: input, shape index: {}]   ;;  %s5605_s2 = inlined_call_operand.vmem [shape: f32[1,384], index: 2, kind: input, shape index: {}]   ;;  %s5606_s3 = inlined_call_operand.vmem [shape: bf16[384,128], index: 3, kind: input, shape index: {}]   ;;  %s5607_s4 = inlined_call_operand.vmem [shape: f32[1,128], index: 4, kind: input, shape index: {}]   ;;  %s5608_s5 = inlined_call_operand.vmem [shape: bf16[3,128,128], index: 5, kind: input, shape index: {}]   ;;  %s5609_s6 = inlined_call_operand.vmem [shape: f32[3,128], index: 6, kind: input, shape index: {}]   ;;  %s5610_s7 = inlined_call_operand.vmem [shape: bf16[128,128], index: 7, kind: input, shape index: {}]   ;;  %s5611_s8 = inlined_call_operand.vmem [shape: f32[1,128], index: 8, kind: input, shape index: {}]   ;;  %s5612_s9 = inlined_call_operand.vmem [shape: f32[480,128], index: 9, kind: output, shape index: {}]  }
   0x1 LB: > { %s3368_s10 = sadd.s32 4294967295, %s4329_s30   ;;  %p3372_p0 = scmp.ge.s32.totalorder %s4329_s30, 1  ;;  %s4329_s30 = sphi %s4384_s30, %s19_s30  }
   0x2   : > { %p288_p1 = scmp.lt.s32.totalorder %s4329_s30, 3 }
   0x4   : > { %p289_p2 = pnand %p3372_p0, %p288_p1 }
   0x5   : > { %v4220_v0 = vld [vmem:[%s5604_s1 + $0x4] ss:$12 sps:$4 sm:$0xff] (!%p289_p2)   ;;  %v4331_v1 = vmov (!%p289_p2), 0.0   ;;  %v4222_v2 = vld [vmem:[%s5604_s1] ss:$12 sps:$4 sm:$0xff] (!%p289_p2)   ;;  %v4332_v3 = vmov (!%p289_p2), 0  }
   0x6   : > { %292 = sbr.rel (%p289_p2) target bundleno = 1490 (0x5d2), region = 56  ;;  %3753 = vmatprep.subr.bf16.mxu1 (!%p289_p2), %v4331_v1  ;;  %666 = vmatprep.mubr.bf16.mxu0 (!%p289_p2), %v4332_v3  ;;  %v4223_v4 = vld [vmem:[%s5604_s1 + $0x8] ss:$12 sps:$4 sm:$0xff] (!%p289_p2)   ;;  %v4226_v6 = vld [vmem:[%s5604_s1 + $0x18] ss:$12 sps:$4 sm:$0xff] (!%p289_p2)   ;;  %vm4333_vm0 = vmmov (!%p289_p2), 0  }
   0x7   : > { %634 = vmatprep.subr.bf16.mxu0 (!%p289_p2), %v4220_v0  ;;  %s324_s17 = smul.u32 (!%p289_p2), 30, %s3368_s10  ;;  %v4224_v5 = vld [vmem:[%s5604_s1 + $0x1c] ss:$12 sps:$4 sm:$0xff] (!%p289_p2)   ;;  %3769 = vmatprep.mubr.msk.bf16.mxu1 (!%p289_p2), %vm4333_vm0, %v4331_v1  ;;  %v4227_v7 = vld [vmem:[%s5604_s1 + $0x20] ss:$12 sps:$4 sm:$0xff] (!%p289_p2)   ;;  %v4273_v34 = vld [vmem:[%s5606_s3 + $0x50] sm:$0xff] (!%p289_p2)  }
   0x8   : > { %635 = vmatpush1.bf16.msra.mxu0 (!%p289_p2), %v4222_v2  ;;  %3754 = vmatpush3.bf16.msra.mxu1 (!%p289_p2), %v4223_v4  ;;  %v4228_v8 = vld [vmem:[%s5604_s1 + $0x34] ss:$12 sps:$4 sm:$0xff] (!%p289_p2)   ;;  %v4230_v9 = vld [vmem:[%s5604_s1 + $0x30] ss:$12 sps:$4 sm:$0xff] (!%p289_p2)   ;;  %v4231_v10 = vld [vmem:[%s5604_s1 + $0x38] ss:$12 sps:$4 sm:$0xff] (!%p289_p2)   ;;  %v401_v2 = vlaneseq (!%p289_p2) }
   0x9   : > { %636 = vmatprep.subr.bf16.mxu0 (!%p289_p2), %v4224_v5  ;;  %3755 = vmatprep.subr.bf16.mxu1 (!%p289_p2), %v4331_v1  ;;  %p325_p3 = scmp.lt.s32.totalorder (!%p289_p2), %s324_s17, 59  ;;  %v4232_v11 = vld [vmem:[%s5604_s1 + $0x4c] ss:$12 sps:$4 sm:$0xff] (!%p289_p2)   ;;  %v4234_v12 = vld [vmem:[%s5604_s1 + $0x48] ss:$12 sps:$4 sm:$0xff] (!%p289_p2)   ;;  %v4265_v27 = vld [vmem:[%s5606_s3 + $0x40] sm:$0xff] (!%p289_p2)  }
   0xa   : > { %v4235_v13 = vld [vmem:[%s5604_s1 + $0x50] ss:$12 sps:$4 sm:$0xff] (!%p289_p2)   ;;  %v4238_v15 = vld [vmem:[%s5604_s1 + $0x60] ss:$12 sps:$4 sm:$0xff] (!%p289_p2)   ;;  %v4239_v16 = vld [vmem:[%s5604_s1 + $0x68] ss:$12 sps:$4 sm:$0xff] (!%p289_p2)  }
   0xb   : > { %v4236_v14 = vld [vmem:[%s5604_s1 + $0x64] ss:$12 sps:$4 sm:$0xff] (!%p289_p2)   ;;  %v4240_v17 = vld [vmem:[%s5604_s1 + $0x7c] ss:$12 sps:$4 sm:$0xff] (!%p289_p2)   ;;  %v4243_v19 = vld [vmem:[%s5604_s1 + $0x80] ss:$12 sps:$4 sm:$0xff] (!%p289_p2)  }
   0xc   : > { %637 = vmatpush1.bf16.msra.mxu0 (!%p289_p2), %v4226_v6  ;;  %3756 = vmatpush3.bf16.msra.mxu1 (!%p289_p2), %v4227_v7  ;;  %v4242_v18 = vld [vmem:[%s5604_s1 + $0x78] ss:$12 sps:$4 sm:$0xff] (!%p289_p2)   ;;  %v4244_v20 = vld [vmem:[%s5604_s1 + $0x94] ss:$12 sps:$4 sm:$0xff] (!%p289_p2)   ;;  %v4246_v21 = vld [vmem:[%s5604_s1 + $0x90] ss:$12 sps:$4 sm:$0xff] (!%p289_p2)  }
   0xd   : > { %638 = vmatprep.subr.bf16.mxu0 %v4228_v8  ;;  %3757 = vmatprep.subr.bf16.mxu1 %v4331_v1  ;;  %s5614_s17 = smov (!%p325_p3, %s324_s17), 59  ;;  %v4247_v22 = vld [vmem:[%s5604_s1 + $0x98] ss:$12 sps:$4 sm:$0xff]   ;;  %v4250_v24 = vld [vmem:[%s5604_s1 + $0xa8] ss:$12 sps:$4 sm:$0xff]   ;;  %v402_v4 = vshrl.u32 %v401_v2, 7 }
   0xe   : > { %s3373_s21 = sshll.u32 %s5614_s17, 2  ;;  %v4248_v23 = vld [vmem:[%s5604_s1 + $0xac] ss:$12 sps:$4 sm:$0xff]   ;;  %v4251_v25 = vld [vmem:[%s5604_s1 + $0xb0] ss:$12 sps:$4 sm:$0xff]   ;;  %v4266_v28 = vld [vmem:[%s5606_s3] sm:$0xff]  }
   0xf   : > { %s4454_s28 = scalar_lea.vmem %s5603_s0, %s3373_s21  ;;  %v4268_v29 = vld [vmem:[%s5606_s3 + $0x80] sm:$0xff]   ;;  %v4270_v31 = vld [vmem:[%s5606_s3 + $0x48] sm:$0xff]   ;;  %v4274_v35 = vld [vmem:[%s5606_s3 + $0x10] sm:$0xff]   ;;  %v403_v5 = vsub.s32 0, %v402_v4  ;;  %v411_v7 = vsub.s32 2, %v402_v4  ;;  %v407_v8 = vsub.s32 1, %v402_v4 }
  0x10   : > { %639 = vmatpush1.bf16.msra.mxu0 %v4230_v9  ;;  %3758 = vmatpush3.bf16.msra.mxu1 %v4231_v10  ;;  %v4252_v26 = vld [vmem:[%s4454_s28] sm:$0xff]   ;;  %v4253_v30 = vld [vmem:[%s4454_s28 + $0x8] sm:$0xff]   ;;  %v4275_v36 = vld [vmem:[%s5606_s3 + $0x90] sm:$0xff]   ;;  %s3374_s20 = sshll.u32 %s5614_s17, 3 }
  0x11   : > { %640 = vmatprep.subr.bf16.mxu0 %v4232_v11  ;;  %3759 = vmatprep.subr.bf16.mxu1 %v4331_v1  ;;  %v4271_v32 = vld [vmem:[%s5606_s3 + $0x8] sm:$0xff]   ;;  %v4276_v37 = vld [vmem:[%s5606_s3 + $0x58] sm:$0xff]   ;;  %v4254_v38 = vld [vmem:[%s4454_s28 + $0x10] sm:$0xff]   ;;  %s5539_s22 = scalar_lea.vmem %s5612_s9, %s3374_s20 }
  0x12   : > { %v4272_v33 = vld [vmem:[%s5606_s3 + $0x88] sm:$0xff]   ;;  %v4277_v39 = vld [vmem:[%s5606_s3 + $0x18] sm:$0xff]   ;;  %v4279_v41 = vld [vmem:[%s5606_s3 + $0x60] sm:$0xff]  }
  0x13   : > { %v4278_v40 = vld [vmem:[%s5606_s3 + $0x98] sm:$0xff]   ;;  %v4280_v42 = vld [vmem:[%s5606_s3 + $0x20] sm:$0xff]   ;;  %v4282_v43 = vld [vmem:[%s5606_s3 + $0x68] sm:$0xff]  }
  0x14   : > { %641 = vmatpush1.bf16.msra.mxu0 %v4234_v12  ;;  %3760 = vmatpush3.bf16.msra.mxu1 %v4235_v13  ;;  %v4281_v44 = vld [vmem:[%s5606_s3 + $0xa0] sm:$0xff]   ;;  %v4255_v45 = vld [vmem:[%s4454_s28 + $0x18] sm:$0xff]   ;;  %v4283_v46 = vld [vmem:[%s5606_s3 + $0x28] sm:$0xff]  }
  0x15   : > { %642 = vmatprep.subr.bf16.mxu0 %v4236_v14  ;;  %3761 = vmatprep.subr.bf16.mxu1 %v4331_v1  ;;  %v4285_v47 = vld [vmem:[%s5606_s3 + $0x70] sm:$0xff]   ;;  %v4284_v48 = vld [vmem:[%s5606_s3 + $0xa8] sm:$0xff]   ;;  %v4288_v51 = vld [vmem:[%s5606_s3 + $0x78] sm:$0xff]  }
  0x16   : > { %v4286_v49 = vld [vmem:[%s5606_s3 + $0x30] sm:$0xff]   ;;  %v4289_v52 = vld [vmem:[%s5606_s3 + $0x38] sm:$0xff]   ;;  %v4256_v53 = vld [vmem:[%s4454_s28 + $0x20] sm:$0xff]  }
  0x17   : > { %v4287_v50 = vld [vmem:[%s5606_s3 + $0xb0] sm:$0xff]   ;;  %v4257_v54 = vld [vmem:[%s4454_s28 + $0x28] sm:$0xff]   ;;  %v4259_v56 = vld [vmem:[%s4454_s28 + $0x38] sm:$0xff]  }
  0x18   : > { %643 = vmatpush1.bf16.msra.mxu0 %v4238_v15  ;;  %3762 = vmatpush3.bf16.msra.mxu1 %v4239_v16  ;;  %v4258_v55 = vld [vmem:[%s4454_s28 + $0x30] sm:$0xff]   ;;  %v4260_v57 = vld [vmem:[%s4454_s28 + $0x40] sm:$0xff]   ;;  %v4261_v58 = vld [vmem:[%s4454_s28 + $0x48] sm:$0xff]  }
  0x19   : > { %644 = vmatprep.subr.bf16.mxu0 %v4240_v17  ;;  %3763 = vmatprep.subr.bf16.mxu1 %v4331_v1  ;;  %v4262_v59 = vld [vmem:[%s4454_s28 + $0x50] sm:$0xff]   ;;  %v4263_v60 = vld [vmem:[%s4454_s28 + $0x58] sm:$0xff]   ;;  %v4264_v62 = vld [vmem:[%s4454_s28 + $0x60] sm:$0xff]  }
  0x1a   : > { %v4290_v61 = vld [vmem:[%s5606_s3 + $0xb8] sm:$0xff]   ;;  %v4267_v63 = vld [vmem:[%s4454_s28 + $0x68] sm:$0xff]   ;;  %v4269_v0 = vld [vmem:[%s4454_s28 + $0x70] sm:$0xff]  }
  0x1b   : > { %v399_v6 = vld [vmem:[%s5605_s2] sm:$0x7] }
  0x1c   : > { %645 = vmatpush1.bf16.msra.mxu0 %v4242_v18  ;;  %3764 = vmatpush3.bf16.msra.mxu1 %v4243_v19  ;;  %v4627_v9 = vrot.slane %v399_v6, %v403_v5  ;;  %v4631_v10 = vrot.slane %v399_v6, %v407_v8 }
  0x1d   : > { %646 = vmatprep.subr.bf16.mxu0 %v4244_v20  ;;  %3765 = vmatprep.subr.bf16.mxu1 %v4331_v1 }
  0x20   : > { %647 = vmatpush1.bf16.msra.mxu0 %v4246_v21  ;;  %3766 = vmatpush3.bf16.msra.mxu1 %v4247_v22 }
  0x21   : > { %648 = vmatprep.subr.bf16.mxu0 %v4248_v23  ;;  %3767 = vmatprep.subr.bf16.mxu1 %v4331_v1 }
  0x24   : > { %649 = vmatpush1.bf16.msra.mxu0 %v4250_v24  ;;  %3768 = vmatpush3.bf16.msra.mxu1 %v4251_v25 }
  0x25   : > { %3829 = vmatprep.subr.bf16.mxu1 %v4331_v1  ;;  %3532 = vmatprep.subr.bf16.mxu0 %v4265_v27 }
  0x27   : > { %667 = vmatmul.mubr.bf16.vlgmr.msra.gmra.mrb[0].mxu0 %v4252_v26  ;;  %3770 = vmatmul.mubr.bf16.vlgmr.msra.gmra.mrb[0].mxu1 %v4252_v26 }
  0x28   : > { %676 = vmatprep.mubr.bf16.mxu0 %v4332_v3  ;;  %3773 = vmatprep.mubr.msk.bf16.mxu1 %vm4333_vm0, %v4331_v1 }
  0x29   : > { %3533 = vmatpush3.bf16.msra.mxu0 %v4266_v28  ;;  %3830 = vmatpush3.bf16.msra.mxu1 %v4268_v29 }
  0x2a   : > { %3831 = vmatprep.subr.bf16.mxu1 %v4331_v1  ;;  %3534 = vmatprep.subr.bf16.mxu0 %v4270_v31 }
  0x2d   : > { %3535 = vmatpush3.bf16.msra.mxu0 %v4271_v32  ;;  %3832 = vmatpush3.bf16.msra.mxu1 %v4272_v33 }
  0x2e   : > { %3536 = vmatprep.subr.bf16.mxu0 %v4273_v34  ;;  %3833 = vmatprep.subr.bf16.mxu1 %v4331_v1 }
  0x2f   : > { %677 = vmatmul.mubr.bf16.gmra.mrb[4].mxu0 %v4253_v30  ;;  %3774 = vmatmul.mubr.bf16.gmra.mrb[4].mxu1 %v4253_v30 }
  0x30   : > { %686 = vmatprep.mubr.bf16.mxu0 %v4332_v3  ;;  %3777 = vmatprep.mubr.msk.bf16.mxu1 %vm4333_vm0, %v4331_v1 }
  0x31   : > { %3537 = vmatpush3.bf16.msra.mxu0 %v4274_v35  ;;  %3834 = vmatpush3.bf16.msra.mxu1 %v4275_v36 }
  0x32   : > { %3538 = vmatprep.subr.bf16.mxu0 %v4276_v37  ;;  %3835 = vmatprep.subr.bf16.mxu1 %v4331_v1 }
  0x35   : > { %3539 = vmatpush3.bf16.msra.mxu0 %v4277_v39  ;;  %3836 = vmatpush3.bf16.msra.mxu1 %v4278_v40 }
  0x36   : > { %3540 = vmatprep.subr.bf16.mxu0 %v4279_v41  ;;  %3837 = vmatprep.subr.bf16.mxu1 %v4331_v1 }
  0x37   : > { %687 = vmatmul.mubr.bf16.gmra.mrb[8].mxu0 %v4254_v38  ;;  %3778 = vmatmul.mubr.bf16.gmra.mrb[8].mxu1 %v4254_v38 }
  0x38   : > { %696 = vmatprep.mubr.bf16.mxu0 %v4332_v3  ;;  %3781 = vmatprep.mubr.msk.bf16.mxu1 %vm4333_vm0, %v4331_v1 }
  0x39   : > { %3541 = vmatpush3.bf16.msra.mxu0 %v4280_v42  ;;  %3838 = vmatpush3.bf16.msra.mxu1 %v4281_v44 }
  0x3a   : > { %3542 = vmatprep.subr.bf16.mxu0 %v4282_v43  ;;  %3839 = vmatprep.subr.bf16.mxu1 %v4331_v1 }
  0x3d   : > { %3543 = vmatpush3.bf16.msra.mxu0 %v4283_v46  ;;  %3840 = vmatpush3.bf16.msra.mxu1 %v4284_v48 }
  0x3e   : > { %3544 = vmatprep.subr.bf16.mxu0 %v4285_v47  ;;  %3841 = vmatprep.subr.bf16.mxu1 %v4331_v1 }
  0x3f   : > { %697 = vmatmul.mubr.bf16.gmra.mrb[12].mxu0 %v4255_v45  ;;  %3782 = vmatmul.mubr.bf16.gmra.mrb[12].mxu1 %v4255_v45 }
  0x40   : > { %706 = vmatprep.mubr.bf16.mxu0 %v4332_v3  ;;  %3785 = vmatprep.mubr.msk.bf16.mxu1 %vm4333_vm0, %v4331_v1 }
  0x41   : > { %3545 = vmatpush3.bf16.msra.mxu0 %v4286_v49  ;;  %3842 = vmatpush3.bf16.msra.mxu1 %v4287_v50 }
  0x42   : > { %3546 = vmatprep.subr.bf16.mxu0 %v4288_v51  ;;  %3843 = vmatprep.subr.bf16.mxu1 %v4331_v1 }
  0x45   : > { %3547 = vmatpush3.bf16.msra.mxu0 %v4289_v52  ;;  %3844 = vmatpush3.bf16.msra.mxu1 %v4290_v61  ;;  %v4291_v52 = vld [vmem:[%s5608_s5] sm:$0xff]  }
  0x46   : > { %3905 = vmatprep.subr.bf16.mxu0 %v4331_v1  ;;  %3981 = vmatprep.subr.bf16.mxu1 %v4331_v1 }
  0x47   : > { %707 = vmatmul.mubr.bf16.gmra.mrb[16].mxu0 %v4256_v53  ;;  %3786 = vmatmul.mubr.bf16.gmra.mrb[16].mxu1 %v4256_v53 }
  0x48   : > { %716 = vmatprep.mubr.bf16.mxu0 %v4332_v3  ;;  %3789 = vmatprep.mubr.msk.bf16.mxu1 %vm4333_vm0, %v4331_v1 }
  0x4f   : > { %717 = vmatmul.mubr.bf16.gmra.mrb[20].mxu0 %v4257_v54  ;;  %3790 = vmatmul.mubr.bf16.gmra.mrb[20].mxu1 %v4257_v54 }
  0x50   : > { %726 = vmatprep.mubr.bf16.mxu0 %v4332_v3  ;;  %3793 = vmatprep.mubr.msk.bf16.mxu1 %vm4333_vm0, %v4331_v1 }
  0x57   : > { %727 = vmatmul.mubr.bf16.gmra.mrb[24].mxu0 %v4258_v55  ;;  %3794 = vmatmul.mubr.bf16.gmra.mrb[24].mxu1 %v4258_v55 }
  0x58   : > { %736 = vmatprep.mubr.bf16.mxu0 %v4332_v3  ;;  %3797 = vmatprep.mubr.msk.bf16.mxu1 %vm4333_vm0, %v4331_v1 }
  0x5f   : > { %737 = vmatmul.mubr.bf16.gmra.mrb[28].mxu0 %v4259_v56  ;;  %3798 = vmatmul.mubr.bf16.gmra.mrb[28].mxu1 %v4259_v56 }
  0x60   : > { %746 = vmatprep.mubr.bf16.mxu0 %v4332_v3  ;;  %3801 = vmatprep.mubr.msk.bf16.mxu1 %vm4333_vm0, %v4331_v1 }
  0x67   : > { %747 = vmatmul.mubr.bf16.gmra.mrb[32].mxu0 %v4260_v57  ;;  %3802 = vmatmul.mubr.bf16.gmra.mrb[32].mxu1 %v4260_v57 }
  0x68   : > { %756 = vmatprep.mubr.bf16.mxu0 %v4332_v3  ;;  %3805 = vmatprep.mubr.msk.bf16.mxu1 %vm4333_vm0, %v4331_v1 }
  0x6f   : > { %757 = vmatmul.mubr.bf16.gmra.mrb[36].mxu0 %v4261_v58  ;;  %3806 = vmatmul.mubr.bf16.gmra.mrb[36].mxu1 %v4261_v58 }
  0x70   : > { %766 = vmatprep.mubr.bf16.mxu0 %v4332_v3  ;;  %3809 = vmatprep.mubr.msk.bf16.mxu1 %vm4333_vm0, %v4331_v1 }
  0x77   : > { %767 = vmatmul.mubr.bf16.gmra.mrb[40].mxu0 %v4262_v59  ;;  %3810 = vmatmul.mubr.bf16.gmra.mrb[40].mxu1 %v4262_v59 }
  0x78   : > { %776 = vmatprep.mubr.bf16.mxu0 %v4332_v3  ;;  %3813 = vmatprep.mubr.msk.bf16.mxu1 %vm4333_vm0, %v4331_v1 }
  0x7f   : > { %777 = vmatmul.mubr.bf16.gmra.mrb[44].mxu0 %v4263_v60  ;;  %3814 = vmatmul.mubr.bf16.gmra.mrb[44].mxu1 %v4263_v60  ;;  %v4292_v60 = vld [vmem:[%s5608_s5 + $0x8] sm:$0xff]  }
  0x80   : > { %786 = vmatprep.mubr.bf16.mxu0 %v4332_v3  ;;  %3817 = vmatprep.mubr.msk.bf16.mxu1 %vm4333_vm0, %v4331_v1 }
  0x87   : > { %787 = vmatmul.mubr.bf16.gmra.mrb[48].mxu0 %v4264_v62  ;;  %3818 = vmatmul.mubr.bf16.gmra.mrb[48].mxu1 %v4264_v62 }
  0x88   : > { %796 = vmatprep.mubr.bf16.mxu0 %v4332_v3  ;;  %3821 = vmatprep.mubr.msk.bf16.mxu1 %vm4333_vm0, %v4331_v1 }
  0x8f   : > { %797 = vmatmul.mubr.bf16.gmra.mrb[52].mxu0 %v4267_v63  ;;  %3822 = vmatmul.mubr.bf16.gmra.mrb[52].mxu1 %v4267_v63 }
  0x90   : > { %806 = vmatprep.mubr.bf16.mxu0 %v4332_v3  ;;  %3825 = vmatprep.mubr.msk.bf16.mxu1 %vm4333_vm0, %v4331_v1  ;;  %v4629_v3 = vrot.slane %v399_v6, %v411_v7 }
  0x97   : > { %807 = vmatmul.mubr.bf16.gmra.mrb[56].mxu0 %v4269_v0  ;;  %3826 = vmatmul.mubr.bf16.gmra.mrb[56].mxu1 %v4269_v0 }
  0x98   : > { %3845 = vmatprep.mubr.msk.bf16.mxu1 %vm4333_vm0, %v4331_v1 }
  0xfa   : > { %v668_v11 = vpop.f32.mrb[0].mxu0  ;;  %v851_v13 = vpop.f32.mrb[0].mxu1 }
  0xfb   : > { %v669_v12 = vadd.f32 %v668_v11, %v4627_v9  ;;  %v670_v14 = vpop.f32.mrb[1].mxu0  ;;  %v852_v15 = vadd.f32 %v851_v13, %v4629_v3  ;;  %v3771_v17 = vpop.f32.mrb[1].mxu1 }
  0xfc   : > { %v671_v16 = vadd.f32 %v670_v14, %v4631_v10  ;;  %v672_v18 = vpop.f32.mrb[2].mxu0  ;;  %v854_v21 = vpop.f32.mrb[2].mxu1 }
  0xfd   : > { %vm970_vm1 = vcmp.ge.f32.partialorder %v669_v12, 0.0  ;;  %v1060_v19 = vmul.f32 0.1, %v669_v12  ;;  %v673_v20 = vadd.f32 %v672_v18, %v4627_v9  ;;  %v674_v22 = vpop.f32.mrb[3].mxu0  ;;  %vm972_vm2 = vcmp.ge.f32.partialorder %v852_v15, 0.0  ;;  %v3772_v27 = vpop.f32.mrb[3].mxu1 }
  0xfe   : > { %v1062_v23 = vmul.f32 0.1, %v852_v15  ;;  %v1061_v24 = vmul.f32 0.1, %v671_v16  ;;  %v855_v26 = vadd.f32 %v854_v21, %v4629_v3  ;;  %vm971_vm4 = vcmp.ge.f32.partialorder %v671_v16, 0.0 }
  0xff   : > { %vm973_vm3 = vcmp.ge.f32.partialorder %v673_v20, 0.0  ;;  %v1063_v25 = vmul.f32 0.1, %v673_v20  ;;  %v1150_v28 = vsel %vm970_vm1, %v669_v12, %v1060_v19  ;;  %v675_v29 = vadd.f32 %v674_v22, %v4631_v10 }
 0x100   : > { %v1152_v30 = vsel %vm972_vm2, %v852_v15, %v1062_v23  ;;  %vm975_vm5 = vcmp.ge.f32.partialorder %v855_v26, 0.0  ;;  %v1065_v32 = vmul.f32 0.1, %v855_v26  ;;  %v1151_v40 = vsel %vm971_vm4, %v671_v16, %v1061_v24  ;;  %v4293_v23 = vld [vmem:[%s5608_s5 + $0x10] sm:$0xff]  }
 0x101   : > { %v1153_v31 = vsel %vm973_vm3, %v673_v20, %v1063_v25  ;;  %vm974_vm6 = vcmp.ge.f32.partialorder %v675_v29, 0.0  ;;  %v1064_v34 = vmul.f32 0.1, %v675_v29 }
 0x102   : > { %v1240_v33 = vpack.c.bf16 %v1153_v31, %v1150_v28  ;;  %v678_v35 = vpop.f32.mrb[4].mxu0  ;;  %v1155_v36 = vsel %vm975_vm5, %v855_v26, %v1065_v32  ;;  %v859_v38 = vpop.f32.mrb[4].mxu1  ;;  %v4294_v31 = vld [vmem:[%s5608_s5 + $0x18] sm:$0xff]  }
 0x103   : > { %v679_v37 = vadd.f32 %v678_v35, %v4627_v9  ;;  %v680_v39 = vpop.f32.mrb[5].mxu0  ;;  %v1242_v41 = vpack.c.bf16 %v1155_v36, %v1152_v30  ;;  %v860_v42 = vadd.f32 %v859_v38, %v4629_v3  ;;  %v3775_v44 = vpop.f32.mrb[5].mxu1  ;;  %v1154_v46 = vsel %vm974_vm6, %v675_v29, %v1064_v34 }
 0x104   : > { %v681_v43 = vadd.f32 %v680_v39, %v4631_v10  ;;  %v682_v45 = vpop.f32.mrb[6].mxu0  ;;  %v862_v49 = vpop.f32.mrb[6].mxu1  ;;  %v1241_v51 = vpack.c.bf16 %v1154_v46, %v1151_v40 }
 0x105   : > { %vm976_vm7 = vcmp.ge.f32.partialorder %v679_v37, 0.0  ;;  %v1066_v47 = vmul.f32 0.1, %v679_v37  ;;  %v683_v48 = vadd.f32 %v682_v45, %v4627_v9  ;;  %v684_v50 = vpop.f32.mrb[7].mxu0  ;;  %vm978_vm8 = vcmp.ge.f32.partialorder %v860_v42, 0.0  ;;  %3846 = vmatmul.mubr.bf16.vlgmr.msra.gmra.mrb[60].mxu1 %v1242_v41  ;;  %v3776_v58 = vpop.f32.mrb[7].mxu1 }
 0x106   : > { %v1068_v53 = vmul.f32 0.1, %v860_v42  ;;  %vm977_vm9 = vcmp.ge.f32.partialorder %v681_v43, 0.0  ;;  %v1067_v54 = vmul.f32 0.1, %v681_v43  ;;  %v863_v56 = vadd.f32 %v862_v49, %v4629_v3  ;;  %1516 = vmatprep.mubr.bf16.mxu0 %v1241_v51  ;;  %3849 = vmatprep.mubr.msk.bf16.mxu1 %vm4333_vm0, %v4331_v1 }
 0x107   : > { %vm979_vm10 = vcmp.ge.f32.partialorder %v683_v48, 0.0  ;;  %v1069_v55 = vmul.f32 0.1, %v683_v48  ;;  %v685_v57 = vadd.f32 %v684_v50, %v4631_v10  ;;  %1517 = vmatmul.mubr.bf16.vlgmr.msra.gmra.mrb[60].mxu0 %v1240_v33  ;;  %v1156_v2 = vsel %vm976_vm7, %v679_v37, %v1066_v47 }
 0x108   : > { %v1158_v59 = vsel %vm978_vm8, %v860_v42, %v1068_v53  ;;  %vm981_vm11 = vcmp.ge.f32.partialorder %v863_v56, 0.0  ;;  %v1071_v61 = vmul.f32 0.1, %v863_v56  ;;  %3906 = vmatpush3.bf16.msra.mxu0 %v4291_v52  ;;  %v1157_v0 = vsel %vm977_vm9, %v681_v43, %v1067_v54  ;;  %v4295_v54 = vld [vmem:[%s5608_s5 + $0x20] sm:$0xff]  }
 0x109   : > { %vm980_vm12 = vcmp.ge.f32.partialorder %v685_v57, 0.0  ;;  %v1070_v62 = vmul.f32 0.1, %v685_v57  ;;  %v1159_v4 = vsel %vm979_vm10, %v683_v48, %v1069_v55  ;;  %3907 = vmatprep.subr.bf16.mxu0 %v4331_v1 }
 0x10a   : > { %v688_v63 = vpop.f32.mrb[8].mxu0  ;;  %v867_v6 = vpop.f32.mrb[8].mxu1  ;;  %v1161_v8 = vsel %vm981_vm11, %v863_v56, %v1071_v61  ;;  %v1243_v12 = vpack.c.bf16 %v1159_v4, %v1156_v2 }
 0x10b   : > { %v689_v5 = vadd.f32 %v688_v63, %v4627_v9  ;;  %v690_v7 = vpop.f32.mrb[9].mxu0  ;;  %v1160_v11 = vsel %vm980_vm12, %v685_v57, %v1070_v62  ;;  %v868_v13 = vadd.f32 %v867_v6, %v4629_v3  ;;  %v3779_v15 = vpop.f32.mrb[9].mxu1  ;;  %v1245_v17 = vpack.c.bf16 %v1161_v8, %v1158_v59  ;;  %v4296_v62 = vld [vmem:[%s5608_s5 + $0x28] sm:$0xff]  }
 0x10c   : > { %v691_v14 = vadd.f32 %v690_v7, %v4631_v10  ;;  %v692_v16 = vpop.f32.mrb[10].mxu0  ;;  %v1244_v18 = vpack.c.bf16 %v1160_v11, %v1157_v0  ;;  %v870_v21 = vpop.f32.mrb[10].mxu1  ;;  %3908 = vmatpush3.bf16.msra.mxu0 %v4292_v60 }
 0x10d   : > { %vm982_vm13 = vcmp.ge.f32.partialorder %v689_v5, 0.0  ;;  %v1072_v19 = vmul.f32 0.1, %v689_v5  ;;  %v693_v20 = vadd.f32 %v692_v16, %v4627_v9  ;;  %v694_v22 = vpop.f32.mrb[11].mxu0  ;;  %vm984_vm14 = vcmp.ge.f32.partialorder %v868_v13, 0.0  ;;  %3850 = vmatmul.mubr.bf16.gmra.mrb[64].mxu1 %v1245_v17  ;;  %v3780_v29 = vpop.f32.mrb[11].mxu1  ;;  %3909 = vmatprep.subr.bf16.mxu0 %v4331_v1 }
 0x10e   : > { %v1074_v24 = vmul.f32 0.1, %v868_v13  ;;  %vm983_vm15 = vcmp.ge.f32.partialorder %v691_v14, 0.0  ;;  %v1073_v25 = vmul.f32 0.1, %v691_v14  ;;  %1524 = vmatprep.mubr.bf16.mxu0 %v1244_v18  ;;  %v871_v27 = vadd.f32 %v870_v21, %v4629_v3  ;;  %3853 = vmatprep.mubr.msk.bf16.mxu1 %vm4333_vm0, %v4331_v1 }
 0x10f   : > { %vm985_vm1 = vcmp.ge.f32.partialorder %v693_v20, 0.0  ;;  %v1075_v26 = vmul.f32 0.1, %v693_v20  ;;  %v695_v28 = vadd.f32 %v694_v22, %v4631_v10  ;;  %1525 = vmatmul.mubr.bf16.gmra.mrb[64].mxu0 %v1243_v12  ;;  %v1162_v36 = vsel %vm982_vm13, %v689_v5, %v1072_v19 }
 0x110   : > { %v1164_v30 = vsel %vm984_vm14, %v868_v13, %v1074_v24  ;;  %vm987_vm2 = vcmp.ge.f32.partialorder %v871_v27, 0.0  ;;  %v1077_v32 = vmul.f32 0.1, %v871_v27  ;;  %3910 = vmatpush3.bf16.msra.mxu0 %v4293_v23  ;;  %v1163_v35 = vsel %vm983_vm15, %v691_v14, %v1073_v25  ;;  %v4297_v25 = vld [vmem:[%s5608_s5 + $0x30] sm:$0xff]  }
 0x111   : > { %vm986_vm3 = vcmp.ge.f32.partialorder %v695_v28, 0.0  ;;  %v1076_v33 = vmul.f32 0.1, %v695_v28  ;;  %v1165_v37 = vsel %vm985_vm1, %v693_v20, %v1075_v26  ;;  %3911 = vmatprep.subr.bf16.mxu0 %v4331_v1 }
 0x112   : > { %v698_v34 = vpop.f32.mrb[12].mxu0  ;;  %v875_v39 = vpop.f32.mrb[12].mxu1  ;;  %v1167_v41 = vsel %vm987_vm2, %v871_v27, %v1077_v32  ;;  %v1246_v43 = vpack.c.bf16 %v1165_v37, %v1162_v36 }
 0x113   : > { %v699_v38 = vadd.f32 %v698_v34, %v4627_v9  ;;  %v700_v40 = vpop.f32.mrb[13].mxu0  ;;  %v1166_v42 = vsel %vm986_vm3, %v695_v28, %v1076_v33  ;;  %v876_v44 = vadd.f32 %v875_v39, %v4629_v3  ;;  %v3783_v46 = vpop.f32.mrb[13].mxu1  ;;  %v1248_v48 = vpack.c.bf16 %v1167_v41, %v1164_v30 }
 0x114   : > { %v701_v45 = vadd.f32 %v700_v40, %v4631_v10  ;;  %v702_v47 = vpop.f32.mrb[14].mxu0  ;;  %v1247_v49 = vpack.c.bf16 %v1166_v42, %v1163_v35  ;;  %v878_v52 = vpop.f32.mrb[14].mxu1  ;;  %3912 = vmatpush3.bf16.msra.mxu0 %v4294_v31 }
 0x115   : > { %vm988_vm4 = vcmp.ge.f32.partialorder %v699_v38, 0.0  ;;  %v1078_v50 = vmul.f32 0.1, %v699_v38  ;;  %v703_v51 = vadd.f32 %v702_v47, %v4627_v9  ;;  %v704_v53 = vpop.f32.mrb[15].mxu0  ;;  %vm990_vm5 = vcmp.ge.f32.partialorder %v876_v44, 0.0  ;;  %3854 = vmatmul.mubr.bf16.gmra.mrb[68].mxu1 %v1248_v48  ;;  %v3784_v60 = vpop.f32.mrb[15].mxu1  ;;  %3913 = vmatprep.subr.bf16.mxu0 %v4331_v1 }
 0x116   : > { %v1080_v55 = vmul.f32 0.1, %v876_v44  ;;  %vm989_vm6 = vcmp.ge.f32.partialorder %v701_v45, 0.0  ;;  %v1079_v56 = vmul.f32 0.1, %v701_v45  ;;  %1532 = vmatprep.mubr.bf16.mxu0 %v1247_v49  ;;  %v879_v58 = vadd.f32 %v878_v52, %v4629_v3  ;;  %3857 = vmatprep.mubr.msk.bf16.mxu1 %vm4333_vm0, %v4331_v1 }
 0x117   : > { %vm991_vm7 = vcmp.ge.f32.partialorder %v703_v51, 0.0  ;;  %v1081_v57 = vmul.f32 0.1, %v703_v51  ;;  %v705_v59 = vadd.f32 %v704_v53, %v4631_v10  ;;  %1533 = vmatmul.mubr.bf16.gmra.mrb[68].mxu0 %v1246_v43  ;;  %v1168_v5 = vsel %vm988_vm4, %v699_v38, %v1078_v50 }
 0x118   : > { %v1170_v61 = vsel %vm990_vm5, %v876_v44, %v1080_v55  ;;  %vm993_vm8 = vcmp.ge.f32.partialorder %v879_v58, 0.0  ;;  %v1083_v63 = vmul.f32 0.1, %v879_v58  ;;  %3914 = vmatpush3.bf16.msra.mxu0 %v4295_v54  ;;  %v1169_v4 = vsel %vm989_vm6, %v701_v45, %v1079_v56 }
 0x119   : > { %vm992_vm9 = vcmp.ge.f32.partialorder %v705_v59, 0.0  ;;  %v1082_v0 = vmul.f32 0.1, %v705_v59  ;;  %v1171_v6 = vsel %vm991_vm7, %v703_v51, %v1081_v57  ;;  %3915 = vmatprep.subr.bf16.mxu0 %v4331_v1 }
 0x11a   : > { %v708_v2 = vpop.f32.mrb[16].mxu0  ;;  %v883_v8 = vpop.f32.mrb[16].mxu1  ;;  %v1173_v12 = vsel %vm993_vm8, %v879_v58, %v1083_v63  ;;  %v1249_v14 = vpack.c.bf16 %v1171_v6, %v1168_v5 }
 0x11b   : > { %v709_v7 = vadd.f32 %v708_v2, %v4627_v9  ;;  %v710_v11 = vpop.f32.mrb[17].mxu0  ;;  %v1172_v13 = vsel %vm992_vm9, %v705_v59, %v1082_v0  ;;  %v884_v15 = vadd.f32 %v883_v8, %v4629_v3  ;;  %v3787_v17 = vpop.f32.mrb[17].mxu1  ;;  %v1251_v19 = vpack.c.bf16 %v1173_v12, %v1170_v61 }
 0x11c   : > { %v711_v16 = vadd.f32 %v710_v11, %v4631_v10  ;;  %v712_v18 = vpop.f32.mrb[18].mxu0  ;;  %v1250_v20 = vpack.c.bf16 %v1172_v13, %v1169_v4  ;;  %v886_v23 = vpop.f32.mrb[18].mxu1  ;;  %3916 = vmatpush3.bf16.msra.mxu0 %v4296_v62 }
 0x11d   : > { %vm994_vm10 = vcmp.ge.f32.partialorder %v709_v7, 0.0  ;;  %v1084_v21 = vmul.f32 0.1, %v709_v7  ;;  %v713_v22 = vadd.f32 %v712_v18, %v4627_v9  ;;  %v714_v24 = vpop.f32.mrb[19].mxu0  ;;  %vm996_vm11 = vcmp.ge.f32.partialorder %v884_v15, 0.0  ;;  %3858 = vmatmul.mubr.bf16.gmra.mrb[72].mxu1 %v1251_v19  ;;  %v3788_v31 = vpop.f32.mrb[19].mxu1  ;;  %3917 = vmatprep.subr.bf16.mxu0 %v4331_v1 }
 0x11e   : > { %v1086_v26 = vmul.f32 0.1, %v884_v15  ;;  %vm995_vm12 = vcmp.ge.f32.partialorder %v711_v16, 0.0  ;;  %v1085_v27 = vmul.f32 0.1, %v711_v16  ;;  %1540 = vmatprep.mubr.bf16.mxu0 %v1250_v20  ;;  %v887_v29 = vadd.f32 %v886_v23, %v4629_v3  ;;  %3861 = vmatprep.mubr.msk.bf16.mxu1 %vm4333_vm0, %v4331_v1 }
 0x11f   : > { %vm997_vm13 = vcmp.ge.f32.partialorder %v713_v22, 0.0  ;;  %v1087_v28 = vmul.f32 0.1, %v713_v22  ;;  %v715_v30 = vadd.f32 %v714_v24, %v4631_v10  ;;  %1541 = vmatmul.mubr.bf16.gmra.mrb[72].mxu0 %v1249_v14  ;;  %v1174_v37 = vsel %vm994_vm10, %v709_v7, %v1084_v21 }
 0x120   : > { %v1176_v32 = vsel %vm996_vm11, %v884_v15, %v1086_v26  ;;  %vm999_vm14 = vcmp.ge.f32.partialorder %v887_v29, 0.0  ;;  %v1089_v33 = vmul.f32 0.1, %v887_v29  ;;  %3918 = vmatpush3.bf16.msra.mxu0 %v4297_v25  ;;  %v1175_v36 = vsel %vm995_vm12, %v711_v16, %v1085_v27 }
 0x121   : > { %vm998_vm15 = vcmp.ge.f32.partialorder %v715_v30, 0.0  ;;  %v1088_v34 = vmul.f32 0.1, %v715_v30  ;;  %v1177_v38 = vsel %vm997_vm13, %v713_v22, %v1087_v28  ;;  %3919 = vmatprep.subr.bf16.mxu0 %v4331_v1 }
 0x122   : > { %v718_v35 = vpop.f32.mrb[20].mxu0  ;;  %v891_v40 = vpop.f32.mrb[20].mxu1  ;;  %v1179_v42 = vsel %vm999_vm14, %v887_v29, %v1089_v33  ;;  %v1252_v44 = vpack.c.bf16 %v1177_v38, %v1174_v37 }
 0x123   : > { %v719_v39 = vadd.f32 %v718_v35, %v4627_v9  ;;  %v720_v41 = vpop.f32.mrb[21].mxu0  ;;  %v1178_v43 = vsel %vm998_vm15, %v715_v30, %v1088_v34  ;;  %v892_v45 = vadd.f32 %v891_v40, %v4629_v3  ;;  %v3791_v47 = vpop.f32.mrb[21].mxu1  ;;  %v1254_v49 = vpack.c.bf16 %v1179_v42, %v1176_v32 }
 0x124   : > { %v721_v46 = vadd.f32 %v720_v41, %v4631_v10  ;;  %v722_v48 = vpop.f32.mrb[22].mxu0  ;;  %v1253_v50 = vpack.c.bf16 %v1178_v43, %v1175_v36  ;;  %v894_v53 = vpop.f32.mrb[22].mxu1 }
 0x125   : > { %vm1000_vm1 = vcmp.ge.f32.partialorder %v719_v39, 0.0  ;;  %v1090_v51 = vmul.f32 0.1, %v719_v39  ;;  %v723_v52 = vadd.f32 %v722_v48, %v4627_v9  ;;  %v724_v54 = vpop.f32.mrb[23].mxu0  ;;  %vm1002_vm2 = vcmp.ge.f32.partialorder %v892_v45, 0.0  ;;  %3862 = vmatmul.mubr.bf16.gmra.mrb[76].mxu1 %v1254_v49  ;;  %v3792_v60 = vpop.f32.mrb[23].mxu1 }
 0x126   : > { %v1092_v55 = vmul.f32 0.1, %v892_v45  ;;  %vm1001_vm3 = vcmp.ge.f32.partialorder %v721_v46, 0.0  ;;  %v1091_v56 = vmul.f32 0.1, %v721_v46  ;;  %1548 = vmatprep.mubr.bf16.mxu0 %v1253_v50  ;;  %v895_v58 = vadd.f32 %v894_v53, %v4629_v3  ;;  %3865 = vmatprep.mubr.msk.bf16.mxu1 %vm4333_vm0, %v4331_v1 }
 0x127   : > { %vm1003_vm4 = vcmp.ge.f32.partialorder %v723_v52, 0.0  ;;  %v1093_v57 = vmul.f32 0.1, %v723_v52  ;;  %v725_v59 = vadd.f32 %v724_v54, %v4631_v10  ;;  %1549 = vmatmul.mubr.bf16.gmra.mrb[76].mxu0 %v1252_v44  ;;  %v1180_v4 = vsel %vm1000_vm1, %v719_v39, %v1090_v51 }
 0x128   : > { %v1182_v61 = vsel %vm1002_vm2, %v892_v45, %v1092_v55  ;;  %vm1005_vm5 = vcmp.ge.f32.partialorder %v895_v58, 0.0  ;;  %v1095_v62 = vmul.f32 0.1, %v895_v58  ;;  %v1181_v2 = vsel %vm1001_vm3, %v721_v46, %v1091_v56 }
 0x129   : > { %vm1004_vm6 = vcmp.ge.f32.partialorder %v725_v59, 0.0  ;;  %v1094_v63 = vmul.f32 0.1, %v725_v59  ;;  %v1183_v5 = vsel %vm1003_vm4, %v723_v52, %v1093_v57 }
 0x12a   : > { %v728_v0 = vpop.f32.mrb[24].mxu0  ;;  %v899_v7 = vpop.f32.mrb[24].mxu1  ;;  %v1185_v11 = vsel %vm1005_vm5, %v895_v58, %v1095_v62  ;;  %v1255_v13 = vpack.c.bf16 %v1183_v5, %v1180_v4 }
 0x12b   : > { %v729_v6 = vadd.f32 %v728_v0, %v4627_v9  ;;  %v730_v8 = vpop.f32.mrb[25].mxu0  ;;  %v1184_v12 = vsel %vm1004_vm6, %v725_v59, %v1094_v63  ;;  %v900_v14 = vadd.f32 %v899_v7, %v4629_v3  ;;  %v3795_v16 = vpop.f32.mrb[25].mxu1  ;;  %v1257_v18 = vpack.c.bf16 %v1185_v11, %v1182_v61 }
 0x12c   : > { %v731_v15 = vadd.f32 %v730_v8, %v4631_v10  ;;  %v732_v17 = vpop.f32.mrb[26].mxu0  ;;  %v1256_v19 = vpack.c.bf16 %v1184_v12, %v1181_v2  ;;  %v902_v22 = vpop.f32.mrb[26].mxu1 }
 0x12d   : > { %vm1006_vm7 = vcmp.ge.f32.partialorder %v729_v6, 0.0  ;;  %v1096_v20 = vmul.f32 0.1, %v729_v6  ;;  %v733_v21 = vadd.f32 %v732_v17, %v4627_v9  ;;  %v734_v23 = vpop.f32.mrb[27].mxu0  ;;  %vm1008_vm8 = vcmp.ge.f32.partialorder %v900_v14, 0.0  ;;  %3866 = vmatmul.mubr.bf16.gmra.mrb[80].mxu1 %v1257_v18  ;;  %v3796_v29 = vpop.f32.mrb[27].mxu1 }
 0x12e   : > { %v1098_v24 = vmul.f32 0.1, %v900_v14  ;;  %vm1007_vm9 = vcmp.ge.f32.partialorder %v731_v15, 0.0  ;;  %v1097_v25 = vmul.f32 0.1, %v731_v15  ;;  %1556 = vmatprep.mubr.bf16.mxu0 %v1256_v19  ;;  %v903_v27 = vadd.f32 %v902_v22, %v4629_v3  ;;  %3869 = vmatprep.mubr.msk.bf16.mxu1 %vm4333_vm0, %v4331_v1 }
 0x12f   : > { %vm1009_vm10 = vcmp.ge.f32.partialorder %v733_v21, 0.0  ;;  %v1099_v26 = vmul.f32 0.1, %v733_v21  ;;  %v735_v28 = vadd.f32 %v734_v23, %v4631_v10  ;;  %1557 = vmatmul.mubr.bf16.gmra.mrb[80].mxu0 %v1255_v13  ;;  %v1186_v35 = vsel %vm1006_vm7, %v729_v6, %v1096_v20 }
 0x130   : > { %v1188_v30 = vsel %vm1008_vm8, %v900_v14, %v1098_v24  ;;  %vm1011_vm11 = vcmp.ge.f32.partialorder %v903_v27, 0.0  ;;  %v1101_v31 = vmul.f32 0.1, %v903_v27  ;;  %v1187_v34 = vsel %vm1007_vm9, %v731_v15, %v1097_v25 }
 0x131   : > { %vm1010_vm12 = vcmp.ge.f32.partialorder %v735_v28, 0.0  ;;  %v1100_v32 = vmul.f32 0.1, %v735_v28  ;;  %v1189_v36 = vsel %vm1009_vm10, %v733_v21, %v1099_v26 }
 0x132   : > { %v738_v33 = vpop.f32.mrb[28].mxu0  ;;  %v907_v38 = vpop.f32.mrb[28].mxu1  ;;  %v1191_v40 = vsel %vm1011_vm11, %v903_v27, %v1101_v31  ;;  %v1258_v42 = vpack.c.bf16 %v1189_v36, %v1186_v35 }
 0x133   : > { %v739_v37 = vadd.f32 %v738_v33, %v4627_v9  ;;  %v740_v39 = vpop.f32.mrb[29].mxu0  ;;  %v1190_v41 = vsel %vm1010_vm12, %v735_v28, %v1100_v32  ;;  %v908_v43 = vadd.f32 %v907_v38, %v4629_v3  ;;  %v3799_v45 = vpop.f32.mrb[29].mxu1  ;;  %v1260_v47 = vpack.c.bf16 %v1191_v40, %v1188_v30 }
 0x134   : > { %v741_v44 = vadd.f32 %v740_v39, %v4631_v10  ;;  %v742_v46 = vpop.f32.mrb[30].mxu0  ;;  %v1259_v48 = vpack.c.bf16 %v1190_v41, %v1187_v34  ;;  %v910_v51 = vpop.f32.mrb[30].mxu1 }
 0x135   : > { %vm1012_vm13 = vcmp.ge.f32.partialorder %v739_v37, 0.0  ;;  %v1102_v49 = vmul.f32 0.1, %v739_v37  ;;  %v743_v50 = vadd.f32 %v742_v46, %v4627_v9  ;;  %v744_v52 = vpop.f32.mrb[31].mxu0  ;;  %vm1014_vm14 = vcmp.ge.f32.partialorder %v908_v43, 0.0  ;;  %3870 = vmatmul.mubr.bf16.gmra.mrb[84].mxu1 %v1260_v47  ;;  %v3800_v58 = vpop.f32.mrb[31].mxu1 }
 0x136   : > { %v1104_v53 = vmul.f32 0.1, %v908_v43  ;;  %vm1013_vm15 = vcmp.ge.f32.partialorder %v741_v44, 0.0  ;;  %v1103_v54 = vmul.f32 0.1, %v741_v44  ;;  %1564 = vmatprep.mubr.bf16.mxu0 %v1259_v48  ;;  %v911_v56 = vadd.f32 %v910_v51, %v4629_v3  ;;  %3873 = vmatprep.mubr.msk.bf16.mxu1 %vm4333_vm0, %v4331_v1 }
 0x137   : > { %vm1015_vm1 = vcmp.ge.f32.partialorder %v743_v50, 0.0  ;;  %v1105_v55 = vmul.f32 0.1, %v743_v50  ;;  %v745_v57 = vadd.f32 %v744_v52, %v4631_v10  ;;  %1565 = vmatmul.mubr.bf16.gmra.mrb[84].mxu0 %v1258_v42  ;;  %v1192_v0 = vsel %vm1012_vm13, %v739_v37, %v1102_v49 }
 0x138   : > { %v1194_v59 = vsel %vm1014_vm14, %v908_v43, %v1104_v53  ;;  %vm1017_vm2 = vcmp.ge.f32.partialorder %v911_v56, 0.0  ;;  %v1107_v60 = vmul.f32 0.1, %v911_v56  ;;  %v1193_v63 = vsel %vm1013_vm15, %v741_v44, %v1103_v54 }
 0x139   : > { %vm1016_vm3 = vcmp.ge.f32.partialorder %v745_v57, 0.0  ;;  %v1106_v61 = vmul.f32 0.1, %v745_v57  ;;  %v1195_v2 = vsel %vm1015_vm1, %v743_v50, %v1105_v55 }
 0x13a   : > { %v748_v62 = vpop.f32.mrb[32].mxu0  ;;  %v915_v5 = vpop.f32.mrb[32].mxu1  ;;  %v1197_v7 = vsel %vm1017_vm2, %v911_v56, %v1107_v60  ;;  %v1261_v11 = vpack.c.bf16 %v1195_v2, %v1192_v0 }
 0x13b   : > { %v749_v4 = vadd.f32 %v748_v62, %v4627_v9  ;;  %v750_v6 = vpop.f32.mrb[33].mxu0  ;;  %v1196_v8 = vsel %vm1016_vm3, %v745_v57, %v1106_v61  ;;  %v916_v12 = vadd.f32 %v915_v5, %v4629_v3  ;;  %v3803_v14 = vpop.f32.mrb[33].mxu1  ;;  %v1263_v16 = vpack.c.bf16 %v1197_v7, %v1194_v59 }
 0x13c   : > { %v751_v13 = vadd.f32 %v750_v6, %v4631_v10  ;;  %v752_v15 = vpop.f32.mrb[34].mxu0  ;;  %v1262_v17 = vpack.c.bf16 %v1196_v8, %v1193_v63  ;;  %v918_v20 = vpop.f32.mrb[34].mxu1 }
 0x13d   : > { %vm1018_vm4 = vcmp.ge.f32.partialorder %v749_v4, 0.0  ;;  %v1108_v18 = vmul.f32 0.1, %v749_v4  ;;  %v753_v19 = vadd.f32 %v752_v15, %v4627_v9  ;;  %v754_v21 = vpop.f32.mrb[35].mxu0  ;;  %vm1020_vm5 = vcmp.ge.f32.partialorder %v916_v12, 0.0  ;;  %3874 = vmatmul.mubr.bf16.gmra.mrb[88].mxu1 %v1263_v16  ;;  %v3804_v27 = vpop.f32.mrb[35].mxu1 }
 0x13e   : > { %v1110_v22 = vmul.f32 0.1, %v916_v12  ;;  %vm1019_vm6 = vcmp.ge.f32.partialorder %v751_v13, 0.0  ;;  %v1109_v23 = vmul.f32 0.1, %v751_v13  ;;  %1572 = vmatprep.mubr.bf16.mxu0 %v1262_v17  ;;  %v919_v25 = vadd.f32 %v918_v20, %v4629_v3  ;;  %3877 = vmatprep.mubr.msk.bf16.mxu1 %vm4333_vm0, %v4331_v1 }
 0x13f   : > { %vm1021_vm7 = vcmp.ge.f32.partialorder %v753_v19, 0.0  ;;  %v1111_v24 = vmul.f32 0.1, %v753_v19  ;;  %v755_v26 = vadd.f32 %v754_v21, %v4631_v10  ;;  %1573 = vmatmul.mubr.bf16.gmra.mrb[88].mxu0 %v1261_v11  ;;  %v1198_v33 = vsel %vm1018_vm4, %v749_v4, %v1108_v18 }
 0x140   : > { %v1200_v28 = vsel %vm1020_vm5, %v916_v12, %v1110_v22  ;;  %vm1023_vm8 = vcmp.ge.f32.partialorder %v919_v25, 0.0  ;;  %v1113_v29 = vmul.f32 0.1, %v919_v25  ;;  %v1199_v32 = vsel %vm1019_vm6, %v751_v13, %v1109_v23 }
 0x141   : > { %vm1022_vm9 = vcmp.ge.f32.partialorder %v755_v26, 0.0  ;;  %v1112_v30 = vmul.f32 0.1, %v755_v26  ;;  %v1201_v34 = vsel %vm1021_vm7, %v753_v19, %v1111_v24 }
 0x142   : > { %v758_v31 = vpop.f32.mrb[36].mxu0  ;;  %v923_v36 = vpop.f32.mrb[36].mxu1  ;;  %v1203_v38 = vsel %vm1023_vm8, %v919_v25, %v1113_v29  ;;  %v1264_v40 = vpack.c.bf16 %v1201_v34, %v1198_v33 }
 0x143   : > { %v759_v35 = vadd.f32 %v758_v31, %v4627_v9  ;;  %v760_v37 = vpop.f32.mrb[37].mxu0  ;;  %v1202_v39 = vsel %vm1022_vm9, %v755_v26, %v1112_v30  ;;  %v924_v41 = vadd.f32 %v923_v36, %v4629_v3  ;;  %v3807_v43 = vpop.f32.mrb[37].mxu1  ;;  %v1266_v45 = vpack.c.bf16 %v1203_v38, %v1200_v28 }
 0x144   : > { %v761_v42 = vadd.f32 %v760_v37, %v4631_v10  ;;  %v762_v44 = vpop.f32.mrb[38].mxu0  ;;  %v1265_v46 = vpack.c.bf16 %v1202_v39, %v1199_v32  ;;  %v926_v49 = vpop.f32.mrb[38].mxu1 }
 0x145   : > { %vm1024_vm10 = vcmp.ge.f32.partialorder %v759_v35, 0.0  ;;  %v1114_v47 = vmul.f32 0.1, %v759_v35  ;;  %v763_v48 = vadd.f32 %v762_v44, %v4627_v9  ;;  %v764_v50 = vpop.f32.mrb[39].mxu0  ;;  %vm1026_vm11 = vcmp.ge.f32.partialorder %v924_v41, 0.0  ;;  %3878 = vmatmul.mubr.bf16.gmra.mrb[92].mxu1 %v1266_v45  ;;  %v3808_v56 = vpop.f32.mrb[39].mxu1 }
 0x146   : > { %v1116_v51 = vmul.f32 0.1, %v924_v41  ;;  %vm1025_vm12 = vcmp.ge.f32.partialorder %v761_v42, 0.0  ;;  %v1115_v52 = vmul.f32 0.1, %v761_v42  ;;  %1580 = vmatprep.mubr.bf16.mxu0 %v1265_v46  ;;  %v927_v54 = vadd.f32 %v926_v49, %v4629_v3  ;;  %3881 = vmatprep.mubr.msk.bf16.mxu1 %vm4333_vm0, %v4331_v1 }
 0x147   : > { %vm1027_vm13 = vcmp.ge.f32.partialorder %v763_v48, 0.0  ;;  %v1117_v53 = vmul.f32 0.1, %v763_v48  ;;  %v765_v55 = vadd.f32 %v764_v50, %v4631_v10  ;;  %1581 = vmatmul.mubr.bf16.gmra.mrb[92].mxu0 %v1264_v40  ;;  %v1204_v62 = vsel %vm1024_vm10, %v759_v35, %v1114_v47 }
 0x148   : > { %v1206_v57 = vsel %vm1026_vm11, %v924_v41, %v1116_v51  ;;  %vm1029_vm14 = vcmp.ge.f32.partialorder %v927_v54, 0.0  ;;  %v1119_v58 = vmul.f32 0.1, %v927_v54  ;;  %v1205_v61 = vsel %vm1025_vm12, %v761_v42, %v1115_v52 }
 0x149   : > { %vm1028_vm15 = vcmp.ge.f32.partialorder %v765_v55, 0.0  ;;  %v1118_v59 = vmul.f32 0.1, %v765_v55  ;;  %v1207_v63 = vsel %vm1027_vm13, %v763_v48, %v1117_v53 }
 0x14a   : > { %v768_v60 = vpop.f32.mrb[40].mxu0  ;;  %v931_v2 = vpop.f32.mrb[40].mxu1  ;;  %v1209_v5 = vsel %vm1029_vm14, %v927_v54, %v1119_v58  ;;  %v1267_v7 = vpack.c.bf16 %v1207_v63, %v1204_v62 }
 0x14b   : > { %v769_v0 = vadd.f32 %v768_v60, %v4627_v9  ;;  %v770_v4 = vpop.f32.mrb[41].mxu0  ;;  %v1208_v6 = vsel %vm1028_vm15, %v765_v55, %v1118_v59  ;;  %v932_v8 = vadd.f32 %v931_v2, %v4629_v3  ;;  %v3811_v12 = vpop.f32.mrb[41].mxu1  ;;  %v1269_v14 = vpack.c.bf16 %v1209_v5, %v1206_v57 }
 0x14c   : > { %v771_v11 = vadd.f32 %v770_v4, %v4631_v10  ;;  %v772_v13 = vpop.f32.mrb[42].mxu0  ;;  %v1268_v15 = vpack.c.bf16 %v1208_v6, %v1205_v61  ;;  %v934_v18 = vpop.f32.mrb[42].mxu1  ;;  %v4298_v6 = vld [vmem:[%s5608_s5 + $0x38] sm:$0xff]  }
 0x14d   : > { %vm1030_vm1 = vcmp.ge.f32.partialorder %v769_v0, 0.0  ;;  %v1120_v16 = vmul.f32 0.1, %v769_v0  ;;  %v773_v17 = vadd.f32 %v772_v13, %v4627_v9  ;;  %v774_v19 = vpop.f32.mrb[43].mxu0  ;;  %vm1032_vm2 = vcmp.ge.f32.partialorder %v932_v8, 0.0  ;;  %3882 = vmatmul.mubr.bf16.gmra.mrb[96].mxu1 %v1269_v14  ;;  %v3812_v25 = vpop.f32.mrb[43].mxu1  ;;  %3920 = vmatpush3.bf16.msra.mxu0 %v4298_v6 }
 0x14e   : > { %v1122_v20 = vmul.f32 0.1, %v932_v8  ;;  %vm1031_vm3 = vcmp.ge.f32.partialorder %v771_v11, 0.0  ;;  %v1121_v21 = vmul.f32 0.1, %v771_v11  ;;  %1588 = vmatprep.mubr.bf16.mxu0 %v1268_v15  ;;  %v935_v23 = vadd.f32 %v934_v18, %v4629_v3  ;;  %3885 = vmatprep.mubr.msk.bf16.mxu1 %vm4333_vm0, %v4331_v1 }
 0x14f   : > { %vm1033_vm4 = vcmp.ge.f32.partialorder %v773_v17, 0.0  ;;  %v1123_v22 = vmul.f32 0.1, %v773_v17  ;;  %v775_v24 = vadd.f32 %v774_v19, %v4631_v10  ;;  %1589 = vmatmul.mubr.bf16.gmra.mrb[96].mxu0 %v1267_v7  ;;  %v1210_v31 = vsel %vm1030_vm1, %v769_v0, %v1120_v16  ;;  %4057 = vmatprep.subr.bf16.mxu0 %v4331_v1 }
 0x150   : > { %v1212_v26 = vsel %vm1032_vm2, %v932_v8, %v1122_v20  ;;  %vm1035_vm5 = vcmp.ge.f32.partialorder %v935_v23, 0.0  ;;  %v1125_v27 = vmul.f32 0.1, %v935_v23  ;;  %v1211_v30 = vsel %vm1031_vm3, %v771_v11, %v1121_v21 }
 0x151   : > { %vm1034_vm6 = vcmp.ge.f32.partialorder %v775_v24, 0.0  ;;  %v1124_v28 = vmul.f32 0.1, %v775_v24  ;;  %v1213_v32 = vsel %vm1033_vm4, %v773_v17, %v1123_v22 }
 0x152   : > { %v778_v29 = vpop.f32.mrb[44].mxu0  ;;  %v939_v34 = vpop.f32.mrb[44].mxu1  ;;  %v1215_v36 = vsel %vm1035_vm5, %v935_v23, %v1125_v27  ;;  %v1270_v38 = vpack.c.bf16 %v1213_v32, %v1210_v31 }
 0x153   : > { %v779_v33 = vadd.f32 %v778_v29, %v4627_v9  ;;  %v780_v35 = vpop.f32.mrb[45].mxu0  ;;  %v1214_v37 = vsel %vm1034_vm6, %v775_v24, %v1124_v28  ;;  %v940_v39 = vadd.f32 %v939_v34, %v4629_v3  ;;  %v3815_v41 = vpop.f32.mrb[45].mxu1  ;;  %v1272_v43 = vpack.c.bf16 %v1215_v36, %v1212_v26 }
 0x154   : > { %v781_v40 = vadd.f32 %v780_v35, %v4631_v10  ;;  %v782_v42 = vpop.f32.mrb[46].mxu0  ;;  %v1271_v44 = vpack.c.bf16 %v1214_v37, %v1211_v30  ;;  %v942_v47 = vpop.f32.mrb[46].mxu1 }
 0x155   : > { %vm1036_vm7 = vcmp.ge.f32.partialorder %v779_v33, 0.0  ;;  %v1126_v45 = vmul.f32 0.1, %v779_v33  ;;  %v783_v46 = vadd.f32 %v782_v42, %v4627_v9  ;;  %v784_v48 = vpop.f32.mrb[47].mxu0  ;;  %vm1038_vm8 = vcmp.ge.f32.partialorder %v940_v39, 0.0  ;;  %3886 = vmatmul.mubr.bf16.gmra.mrb[100].mxu1 %v1272_v43  ;;  %v3816_v54 = vpop.f32.mrb[47].mxu1 }
 0x156   : > { %v1128_v49 = vmul.f32 0.1, %v940_v39  ;;  %vm1037_vm9 = vcmp.ge.f32.partialorder %v781_v40, 0.0  ;;  %v1127_v50 = vmul.f32 0.1, %v781_v40  ;;  %1596 = vmatprep.mubr.bf16.mxu0 %v1271_v44  ;;  %v943_v52 = vadd.f32 %v942_v47, %v4629_v3  ;;  %3889 = vmatprep.mubr.msk.bf16.mxu1 %vm4333_vm0, %v4331_v1 }
 0x157   : > { %vm1039_vm10 = vcmp.ge.f32.partialorder %v783_v46, 0.0  ;;  %v1129_v51 = vmul.f32 0.1, %v783_v46  ;;  %v785_v53 = vadd.f32 %v784_v48, %v4631_v10  ;;  %1597 = vmatmul.mubr.bf16.gmra.mrb[100].mxu0 %v1270_v38  ;;  %v1216_v60 = vsel %vm1036_vm7, %v779_v33, %v1126_v45 }
 0x158   : > { %v1218_v55 = vsel %vm1038_vm8, %v940_v39, %v1128_v49  ;;  %vm1041_vm11 = vcmp.ge.f32.partialorder %v943_v52, 0.0  ;;  %v1131_v56 = vmul.f32 0.1, %v943_v52  ;;  %v1217_v59 = vsel %vm1037_vm9, %v781_v40, %v1127_v50 }
 0x159   : > { %vm1040_vm12 = vcmp.ge.f32.partialorder %v785_v53, 0.0  ;;  %v1130_v57 = vmul.f32 0.1, %v785_v53  ;;  %v1219_v61 = vsel %vm1039_vm10, %v783_v46, %v1129_v51 }
 0x15a   : > { %v788_v58 = vpop.f32.mrb[48].mxu0  ;;  %v947_v63 = vpop.f32.mrb[48].mxu1  ;;  %v1221_v2 = vsel %vm1041_vm11, %v943_v52, %v1131_v56  ;;  %v1273_v5 = vpack.c.bf16 %v1219_v61, %v1216_v60 }
 0x15b   : > { %v789_v62 = vadd.f32 %v788_v58, %v4627_v9  ;;  %v790_v0 = vpop.f32.mrb[49].mxu0  ;;  %v1220_v4 = vsel %vm1040_vm12, %v785_v53, %v1130_v57  ;;  %v948_v7 = vadd.f32 %v947_v63, %v4629_v3  ;;  %v3819_v11 = vpop.f32.mrb[49].mxu1  ;;  %v1275_v13 = vpack.c.bf16 %v1221_v2, %v1218_v55 }
 0x15c   : > { %v791_v8 = vadd.f32 %v790_v0, %v4631_v10  ;;  %v792_v12 = vpop.f32.mrb[50].mxu0  ;;  %v1274_v14 = vpack.c.bf16 %v1220_v4, %v1217_v59  ;;  %v950_v17 = vpop.f32.mrb[50].mxu1 }
 0x15d   : > { %vm1042_vm13 = vcmp.ge.f32.partialorder %v789_v62, 0.0  ;;  %v1132_v15 = vmul.f32 0.1, %v789_v62  ;;  %v793_v16 = vadd.f32 %v792_v12, %v4627_v9  ;;  %v794_v18 = vpop.f32.mrb[51].mxu0  ;;  %vm1044_vm14 = vcmp.ge.f32.partialorder %v948_v7, 0.0  ;;  %3890 = vmatmul.mubr.bf16.gmra.mrb[104].mxu1 %v1275_v13  ;;  %v3820_v24 = vpop.f32.mrb[51].mxu1 }
 0x15e   : > { %v1134_v19 = vmul.f32 0.1, %v948_v7  ;;  %vm1043_vm15 = vcmp.ge.f32.partialorder %v791_v8, 0.0  ;;  %v1133_v20 = vmul.f32 0.1, %v791_v8  ;;  %1604 = vmatprep.mubr.bf16.mxu0 %v1274_v14  ;;  %v951_v22 = vadd.f32 %v950_v17, %v4629_v3  ;;  %3893 = vmatprep.mubr.msk.bf16.mxu1 %vm4333_vm0, %v4331_v1 }
 0x15f   : > { %vm1045_vm1 = vcmp.ge.f32.partialorder %v793_v16, 0.0  ;;  %v1135_v21 = vmul.f32 0.1, %v793_v16  ;;  %v795_v23 = vadd.f32 %v794_v18, %v4631_v10  ;;  %1605 = vmatmul.mubr.bf16.gmra.mrb[104].mxu0 %v1273_v5  ;;  %v1222_v30 = vsel %vm1042_vm13, %v789_v62, %v1132_v15 }
 0x160   : > { %v1224_v25 = vsel %vm1044_vm14, %v948_v7, %v1134_v19  ;;  %vm1047_vm2 = vcmp.ge.f32.partialorder %v951_v22, 0.0  ;;  %v1137_v26 = vmul.f32 0.1, %v951_v22  ;;  %v1223_v29 = vsel %vm1043_vm15, %v791_v8, %v1133_v20 }
 0x161   : > { %vm1046_vm3 = vcmp.ge.f32.partialorder %v795_v23, 0.0  ;;  %v1136_v27 = vmul.f32 0.1, %v795_v23  ;;  %v1225_v31 = vsel %vm1045_vm1, %v793_v16, %v1135_v21 }
 0x162   : > { %v798_v28 = vpop.f32.mrb[52].mxu0  ;;  %v955_v33 = vpop.f32.mrb[52].mxu1  ;;  %v1227_v35 = vsel %vm1047_vm2, %v951_v22, %v1137_v26  ;;  %v1276_v37 = vpack.c.bf16 %v1225_v31, %v1222_v30  ;;  %v4299_v31 = vld [vmem:[%s5608_s5 + $0x40] sm:$0xff]  }
 0x163   : > { %v799_v32 = vadd.f32 %v798_v28, %v4627_v9  ;;  %v800_v34 = vpop.f32.mrb[53].mxu0  ;;  %v1226_v36 = vsel %vm1046_vm3, %v795_v23, %v1136_v27  ;;  %v956_v38 = vadd.f32 %v955_v33, %v4629_v3  ;;  %v3823_v40 = vpop.f32.mrb[53].mxu1  ;;  %v1278_v42 = vpack.c.bf16 %v1227_v35, %v1224_v25  ;;  %3982 = vmatpush3.bf16.msra.mxu1 %v4299_v31 }
 0x164   : > { %v801_v39 = vadd.f32 %v800_v34, %v4631_v10  ;;  %v802_v41 = vpop.f32.mrb[54].mxu0  ;;  %v1277_v43 = vpack.c.bf16 %v1226_v36, %v1223_v29  ;;  %v958_v46 = vpop.f32.mrb[54].mxu1  ;;  %3983 = vmatprep.subr.bf16.mxu1 %v4331_v1  ;;  %v4300_v34 = vld [vmem:[%s5608_s5 + $0x48] sm:$0xff]   ;;  %v4301_v40 = vld [vmem:[%s5608_s5 + $0x50] sm:$0xff]  }
 0x165   : > { %vm1048_vm4 = vcmp.ge.f32.partialorder %v799_v32, 0.0  ;;  %v1138_v44 = vmul.f32 0.1, %v799_v32  ;;  %v803_v45 = vadd.f32 %v802_v41, %v4627_v9  ;;  %v804_v47 = vpop.f32.mrb[55].mxu0  ;;  %vm1050_vm5 = vcmp.ge.f32.partialorder %v956_v38, 0.0  ;;  %3894 = vmatmul.mubr.bf16.gmra.mrb[108].mxu1 %v1278_v42  ;;  %v3824_v53 = vpop.f32.mrb[55].mxu1 }
 0x166   : > { %v1140_v48 = vmul.f32 0.1, %v956_v38  ;;  %vm1049_vm6 = vcmp.ge.f32.partialorder %v801_v39, 0.0  ;;  %v1139_v49 = vmul.f32 0.1, %v801_v39  ;;  %1612 = vmatprep.mubr.bf16.mxu0 %v1277_v43  ;;  %v959_v51 = vadd.f32 %v958_v46, %v4629_v3  ;;  %3897 = vmatprep.mubr.msk.bf16.mxu1 %vm4333_vm0, %v4331_v1  ;;  %v4302_v46 = vld [vmem:[%s5608_s5 + $0x58] sm:$0xff]  }
 0x167   : > { %vm1051_vm7 = vcmp.ge.f32.partialorder %v803_v45, 0.0  ;;  %v1141_v50 = vmul.f32 0.1, %v803_v45  ;;  %v805_v52 = vadd.f32 %v804_v47, %v4631_v10  ;;  %1613 = vmatmul.mubr.bf16.gmra.mrb[108].mxu0 %v1276_v37  ;;  %v1228_v59 = vsel %vm1048_vm4, %v799_v32, %v1138_v44  ;;  %v4829_v37 = vld [vmem:[%s5607_s4] ss:$0 sm:$0xff]  ;;  %3984 = vmatpush3.bf16.msra.mxu1 %v4300_v34 }
 0x168   : > { %v1230_v54 = vsel %vm1050_vm5, %v956_v38, %v1140_v48  ;;  %vm1053_vm8 = vcmp.ge.f32.partialorder %v959_v51, 0.0  ;;  %v1143_v55 = vmul.f32 0.1, %v959_v51  ;;  %v1229_v58 = vsel %vm1049_vm6, %v801_v39, %v1139_v49  ;;  %3985 = vmatprep.subr.bf16.mxu1 %v4331_v1 }
 0x169   : > { %vm1052_vm9 = vcmp.ge.f32.partialorder %v805_v52, 0.0  ;;  %v1142_v56 = vmul.f32 0.1, %v805_v52  ;;  %v1231_v60 = vsel %vm1051_vm7, %v803_v45, %v1141_v50 }
 0x16a   : > { %v808_v57 = vpop.f32.mrb[56].mxu0  ;;  %v963_v62 = vpop.f32.mrb[56].mxu1  ;;  %v1233_v0 = vsel %vm1053_vm8, %v959_v51, %v1143_v55  ;;  %v1279_v4 = vpack.c.bf16 %v1231_v60, %v1228_v59 }
 0x16b   : > { %v809_v61 = vadd.f32 %v808_v57, %v4627_v9  ;;  %v810_v63 = vpop.f32.mrb[57].mxu0  ;;  %v1232_v2 = vsel %vm1052_vm9, %v805_v52, %v1142_v56  ;;  %v964_v5 = vadd.f32 %v963_v62, %v4629_v3  ;;  %v3827_v7 = vpop.f32.mrb[57].mxu1  ;;  %v1281_v11 = vpack.c.bf16 %v1233_v0, %v1230_v54  ;;  %3986 = vmatpush3.bf16.msra.mxu1 %v4301_v40  ;;  %v4303_v57 = vld [vmem:[%s5608_s5 + $0x60] sm:$0xff]  }
 0x16c   : > { %v811_v6 = vadd.f32 %v810_v63, %v4631_v10  ;;  %v812_v8 = vpop.f32.mrb[58].mxu0  ;;  %v1280_v12 = vpack.c.bf16 %v1232_v2, %v1229_v58  ;;  %v966_v15 = vpop.f32.mrb[58].mxu1  ;;  %3987 = vmatprep.subr.bf16.mxu1 %v4331_v1 }
 0x16d   : > { %v1144_v13 = vmul.f32 0.1, %v809_v61  ;;  %v813_v14 = vadd.f32 %v812_v8, %v4627_v9  ;;  %v814_v16 = vpop.f32.mrb[59].mxu0  ;;  %vm1054_vm10 = vcmp.ge.f32.partialorder %v809_v61, 0.0  ;;  %vm1056_vm11 = vcmp.ge.f32.partialorder %v964_v5, 0.0  ;;  %3898 = vmatmul.mubr.bf16.gmra.mrb[112].mxu1 %v1281_v11  ;;  %v3828_v22 = vpop.f32.mrb[59].mxu1 }
 0x16e   : > { %v1146_v17 = vmul.f32 0.1, %v964_v5  ;;  %v1145_v18 = vmul.f32 0.1, %v811_v6  ;;  %1620 = vmatprep.mubr.bf16.mxu0 %v1280_v12  ;;  %v967_v20 = vadd.f32 %v966_v15, %v4629_v3  ;;  %v815_v21 = vadd.f32 %v814_v16, %v4631_v10  ;;  %3901 = vmatprep.mubr.msk.bf16.mxu1 %vm4333_vm0, %v4331_v1 }
 0x16f   : > { %vm1057_vm12 = vcmp.ge.f32.partialorder %v813_v14, 0.0  ;;  %v1147_v19 = vmul.f32 0.1, %v813_v14  ;;  %vm1055_vm13 = vcmp.ge.f32.partialorder %v811_v6, 0.0  ;;  %1621 = vmatmul.mubr.bf16.gmra.mrb[112].mxu0 %v1279_v4  ;;  %v1234_v25 = vsel %vm1054_vm10, %v809_v61, %v1144_v13  ;;  %3988 = vmatpush3.bf16.msra.mxu1 %v4302_v46 }
 0x170   : > { %v1236_v9 = vsel %vm1056_vm11, %v964_v5, %v1146_v17  ;;  %vm1059_vm14 = vcmp.ge.f32.partialorder %v967_v20, 0.0  ;;  %v1149_v23 = vmul.f32 0.1, %v967_v20  ;;  %vm1058_vm15 = vcmp.ge.f32.partialorder %v815_v21, 0.0  ;;  %3989 = vmatprep.subr.bf16.mxu1 %v4331_v1  ;;  %v4304_v5 = vld [vmem:[%s5608_s5 + $0x68] sm:$0xff]  }
 0x171   : > { %v1148_v24 = vmul.f32 0.1, %v815_v21  ;;  %v1237_v26 = vsel %vm1057_vm12, %v813_v14, %v1147_v19  ;;  %v1235_v28 = vsel %vm1055_vm13, %v811_v6, %v1145_v18  ;;  %v4305_v18 = vld [vmem:[%s5608_s5 + $0x70] sm:$0xff]  }
 0x172   : > { %v1239_v27 = vsel %vm1059_vm14, %v967_v20, %v1149_v23  ;;  %v1282_v3 = vpack.c.bf16 %v1237_v26, %v1234_v25 }
 0x173   : > { %v1238_v29 = vsel %vm1058_vm15, %v815_v21, %v1148_v24  ;;  %v1284_v30 = vpack.c.bf16 %v1239_v27, %v1236_v9  ;;  %3990 = vmatpush3.bf16.msra.mxu1 %v4303_v57  ;;  %v4306_v27 = vld [vmem:[%s5608_s5 + $0x78] sm:$0xff]  }
 0x174   : > { %v1283_v10 = vpack.c.bf16 %v1238_v29, %v1235_v28  ;;  %3991 = vmatprep.subr.bf16.mxu1 %v4331_v1 }
 0x175   : > { %3902 = vmatmul.mubr.bf16.gmra.mrb[116].mxu1 %v1284_v30 }
 0x176   : > { %1628 = vmatprep.mubr.bf16.mxu0 %v1283_v10  ;;  %3997 = vmatprep.mubr.msk.bf16.mxu1 %vm4333_vm0, %v4331_v1 }
 0x177   : > { %1629 = vmatmul.mubr.bf16.gmra.mrb[116].mxu0 %v1282_v3  ;;  %3992 = vmatpush3.bf16.msra.mxu1 %v4304_v5 }
 0x178   : > { %3921 = vmatprep.mubr.msk.bf16.mxu0 %vm4333_vm0, %v4331_v1  ;;  %3993 = vmatprep.subr.bf16.mxu1 %v4331_v1 }
 0x17b   : > { %3994 = vmatpush3.bf16.msra.mxu1 %v4305_v18 }
 0x17c   : > { %3995 = vmatprep.subr.bf16.mxu1 %v4331_v1 }
 0x17f   : > { %3996 = vmatpush3.bf16.msra.mxu1 %v4306_v27 }
 0x180   : > { %4133 = vmatprep.subr.bf16.mxu1 %v4331_v1 }
 0x1d8   : > { %v1671_v32 = vpop.f32.mrb[60].mxu1 }
 0x1d9   : > { %v3847_v33 = vpop.f32.mrb[61].mxu1 }
 0x1da   : > { %v3548_v35 = vpop.f32.mrb[60].mxu0  ;;  %v1674_v36 = vpop.f32.mrb[62].mxu1 }
 0x1db   : > { %v3549_v38 = vpop.f32.mrb[61].mxu0  ;;  %v3848_v39 = vpop.f32.mrb[63].mxu1 }
 0x1dc   : > { %v3550_v41 = vadd.f32 %v3549_v38, %v3548_v35  ;;  %v3551_v42 = vpop.f32.mrb[62].mxu0 }
 0x1dd   : > { %v3552_v43 = vpop.f32.mrb[63].mxu0 }
 0x1de   : > { %v1519_v44 = vadd.f32 %v3550_v41, %v4829_v37  ;;  %v3553_v45 = vadd.f32 %v3552_v43, %v3551_v42 }
 0x1e0   : > { %v1672_v47 = vadd.f32 %v1671_v32, %v1519_v44  ;;  %v1522_v48 = vadd.f32 %v3553_v45, %v4829_v37  ;;  %v1679_v49 = vpop.f32.mrb[64].mxu1 }
 0x1e1   : > { %v3851_v50 = vpop.f32.mrb[65].mxu1 }
 0x1e2   : > { %v1820_v51 = vmul.f32 0.1, %v1672_v47  ;;  %v1675_v52 = vadd.f32 %v1674_v36, %v1522_v48  ;;  %v3554_v53 = vpop.f32.mrb[64].mxu0  ;;  %v1682_v54 = vpop.f32.mrb[66].mxu1  ;;  %vm1790_vm1 = vcmp.ge.f32.partialorder %v1672_v47, 0.0 }
 0x1e3   : > { %v3555_v55 = vpop.f32.mrb[65].mxu0  ;;  %v3852_v56 = vpop.f32.mrb[67].mxu1 }
 0x1e4   : > { %vm1791_vm2 = vcmp.ge.f32.partialorder %v1675_v52, 0.0  ;;  %v1821_v58 = vmul.f32 0.1, %v1675_v52  ;;  %v3556_v59 = vadd.f32 %v3555_v55, %v3554_v53  ;;  %v3557_v60 = vpop.f32.mrb[66].mxu0  ;;  %v4845_v62 = vsel %vm1790_vm1, %v1672_v47, %v1820_v51 }
 0x1e5   : > { %v3558_v61 = vpop.f32.mrb[67].mxu0 }
 0x1e6   : > { %v4847_v63 = vsel %vm1791_vm2, %v1675_v52, %v1821_v58  ;;  %v1527_v0 = vadd.f32 %v3556_v59, %v4829_v37  ;;  %v3559_v2 = vadd.f32 %v3558_v61, %v3557_v60 }
 0x1e7   : > { %v1880_v4 = vpack.c.bf16 %v4847_v63, %v4845_v62 }
 0x1e8   : > { %v1680_v6 = vadd.f32 %v1679_v49, %v1527_v0  ;;  %v1530_v7 = vadd.f32 %v3559_v2, %v4829_v37  ;;  %v1687_v8 = vpop.f32.mrb[68].mxu1 }
 0x1e9   : > { %v3855_v11 = vpop.f32.mrb[69].mxu1  ;;  %3922 = vmatmul.mubr.bf16.vlgmr.msra.gmra.mrb[120].mxu0 %v1880_v4 }
 0x1ea   : > { %v1822_v12 = vmul.f32 0.1, %v1680_v6  ;;  %v1683_v13 = vadd.f32 %v1682_v54, %v1530_v7  ;;  %v3560_v14 = vpop.f32.mrb[68].mxu0  ;;  %v1690_v15 = vpop.f32.mrb[70].mxu1  ;;  %3925 = vmatprep.mubr.msk.bf16.mxu0 %vm4333_vm0, %v4331_v1  ;;  %vm1792_vm3 = vcmp.ge.f32.partialorder %v1680_v6, 0.0 }
 0x1eb   : > { %v3561_v16 = vpop.f32.mrb[69].mxu0  ;;  %v3856_v17 = vpop.f32.mrb[71].mxu1 }
 0x1ec   : > { %v1823_v19 = vmul.f32 0.1, %v1683_v13  ;;  %v3562_v20 = vadd.f32 %v3561_v16, %v3560_v14  ;;  %v3563_v21 = vpop.f32.mrb[70].mxu0  ;;  %vm1793_vm4 = vcmp.ge.f32.partialorder %v1683_v13, 0.0  ;;  %v4864_v24 = vsel %vm1792_vm3, %v1680_v6, %v1822_v12 }
 0x1ed   : > { %v3564_v22 = vpop.f32.mrb[71].mxu0 }
 0x1ee   : > { %v1535_v9 = vadd.f32 %v3562_v20, %v4829_v37  ;;  %v3565_v23 = vadd.f32 %v3564_v22, %v3563_v21  ;;  %v4866_v25 = vsel %vm1793_vm4, %v1683_v13, %v1823_v19 }
 0x1ef   : > { %v1881_v26 = vpack.c.bf16 %v4866_v25, %v4864_v24 }
 0x1f0   : > { %v1688_v28 = vadd.f32 %v1687_v8, %v1535_v9  ;;  %v1538_v29 = vadd.f32 %v3565_v23, %v4829_v37  ;;  %v1695_v3 = vpop.f32.mrb[72].mxu1 }
 0x1f1   : > { %v3859_v30 = vpop.f32.mrb[73].mxu1  ;;  %3926 = vmatmul.mubr.bf16.gmra.mrb[124].mxu0 %v1881_v26 }
 0x1f2   : > { %v1824_v10 = vmul.f32 0.1, %v1688_v28  ;;  %v1691_v31 = vadd.f32 %v1690_v15, %v1538_v29  ;;  %v3566_v32 = vpop.f32.mrb[72].mxu0  ;;  %v1698_v33 = vpop.f32.mrb[74].mxu1  ;;  %3929 = vmatprep.mubr.msk.bf16.mxu0 %vm4333_vm0, %v4331_v1  ;;  %vm1794_vm5 = vcmp.ge.f32.partialorder %v1688_v28, 0.0 }
 0x1f3   : > { %v3567_v34 = vpop.f32.mrb[73].mxu0  ;;  %v3860_v35 = vpop.f32.mrb[75].mxu1 }
 0x1f4   : > { %v1825_v36 = vmul.f32 0.1, %v1691_v31  ;;  %v3568_v38 = vadd.f32 %v3567_v34, %v3566_v32  ;;  %v3569_v39 = vpop.f32.mrb[74].mxu0  ;;  %vm1795_vm6 = vcmp.ge.f32.partialorder %v1691_v31, 0.0  ;;  %v4879_v43 = vsel %vm1794_vm5, %v1688_v28, %v1824_v10 }
 0x1f5   : > { %v3570_v40 = vpop.f32.mrb[75].mxu0 }
 0x1f6   : > { %v1543_v41 = vadd.f32 %v3568_v38, %v4829_v37  ;;  %v3571_v42 = vadd.f32 %v3570_v40, %v3569_v39  ;;  %v4881_v44 = vsel %vm1795_vm6, %v1691_v31, %v1825_v36 }
 0x1f7   : > { %v1882_v45 = vpack.c.bf16 %v4881_v44, %v4879_v43 }
 0x1f8   : > { %v1696_v46 = vadd.f32 %v1695_v3, %v1543_v41  ;;  %v1546_v47 = vadd.f32 %v3571_v42, %v4829_v37  ;;  %v1703_v48 = vpop.f32.mrb[76].mxu1 }
 0x1f9   : > { %v3863_v49 = vpop.f32.mrb[77].mxu1  ;;  %3930 = vmatmul.mubr.bf16.gmra.mrb[128].mxu0 %v1882_v45 }
 0x1fa   : > { %v1826_v50 = vmul.f32 0.1, %v1696_v46  ;;  %v1699_v51 = vadd.f32 %v1698_v33, %v1546_v47  ;;  %v3572_v52 = vpop.f32.mrb[76].mxu0  ;;  %v1706_v53 = vpop.f32.mrb[78].mxu1  ;;  %3933 = vmatprep.mubr.msk.bf16.mxu0 %vm4333_vm0, %v4331_v1  ;;  %vm1796_vm7 = vcmp.ge.f32.partialorder %v1696_v46, 0.0 }
 0x1fb   : > { %v3573_v54 = vpop.f32.mrb[77].mxu0  ;;  %v3864_v55 = vpop.f32.mrb[79].mxu1 }
 0x1fc   : > { %v1827_v56 = vmul.f32 0.1, %v1699_v51  ;;  %v3574_v57 = vadd.f32 %v3573_v54, %v3572_v52  ;;  %v3575_v58 = vpop.f32.mrb[78].mxu0  ;;  %vm1797_vm8 = vcmp.ge.f32.partialorder %v1699_v51, 0.0  ;;  %v4889_v0 = vsel %vm1796_vm7, %v1696_v46, %v1826_v50 }
 0x1fd   : > { %v3576_v59 = vpop.f32.mrb[79].mxu0 }
 0x1fe   : > { %v1551_v60 = vadd.f32 %v3574_v57, %v4829_v37  ;;  %v3577_v61 = vadd.f32 %v3576_v59, %v3575_v58  ;;  %v4891_v2 = vsel %vm1797_vm8, %v1699_v51, %v1827_v56 }
 0x1ff   : > { %v1883_v4 = vpack.c.bf16 %v4891_v2, %v4889_v0 }
 0x200   : > { %v1704_v5 = vadd.f32 %v1703_v48, %v1551_v60  ;;  %v1554_v6 = vadd.f32 %v3577_v61, %v4829_v37  ;;  %v1711_v7 = vpop.f32.mrb[80].mxu1 }
 0x201   : > { %v3867_v8 = vpop.f32.mrb[81].mxu1  ;;  %3934 = vmatmul.mubr.bf16.gmra.mrb[132].mxu0 %v1883_v4 }
 0x202   : > { %v1828_v11 = vmul.f32 0.1, %v1704_v5  ;;  %v1707_v12 = vadd.f32 %v1706_v53, %v1554_v6  ;;  %v3578_v13 = vpop.f32.mrb[80].mxu0  ;;  %v1714_v14 = vpop.f32.mrb[82].mxu1  ;;  %3937 = vmatprep.mubr.msk.bf16.mxu0 %vm4333_vm0, %v4331_v1  ;;  %vm1798_vm9 = vcmp.ge.f32.partialorder %v1704_v5, 0.0 }
 0x203   : > { %v3579_v15 = vpop.f32.mrb[81].mxu0  ;;  %v3868_v16 = vpop.f32.mrb[83].mxu1 }
 0x204   : > { %v1829_v17 = vmul.f32 0.1, %v1707_v12  ;;  %v3580_v18 = vadd.f32 %v3579_v15, %v3578_v13  ;;  %v3581_v19 = vpop.f32.mrb[82].mxu0  ;;  %vm1799_vm10 = vcmp.ge.f32.partialorder %v1707_v12, 0.0  ;;  %v4899_v9 = vsel %vm1798_vm9, %v1704_v5, %v1828_v11 }
 0x205   : > { %v3582_v20 = vpop.f32.mrb[83].mxu0 }
 0x206   : > { %v1559_v21 = vadd.f32 %v3580_v18, %v4829_v37  ;;  %v3583_v22 = vadd.f32 %v3582_v20, %v3581_v19  ;;  %v4901_v23 = vsel %vm1799_vm10, %v1707_v12, %v1829_v17 }
 0x207   : > { %v1884_v26 = vpack.c.bf16 %v4901_v23, %v4899_v9 }
 0x208   : > { %v1712_v27 = vadd.f32 %v1711_v7, %v1559_v21  ;;  %v1562_v28 = vadd.f32 %v3583_v22, %v4829_v37  ;;  %v1719_v29 = vpop.f32.mrb[84].mxu1 }
 0x209   : > { %v3871_v3 = vpop.f32.mrb[85].mxu1  ;;  %3938 = vmatmul.mubr.bf16.gmra.mrb[136].mxu0 %v1884_v26 }
 0x20a   : > { %v1830_v30 = vmul.f32 0.1, %v1712_v27  ;;  %v1715_v10 = vadd.f32 %v1714_v14, %v1562_v28  ;;  %v3584_v31 = vpop.f32.mrb[84].mxu0  ;;  %v1722_v32 = vpop.f32.mrb[86].mxu1  ;;  %3941 = vmatprep.mubr.msk.bf16.mxu0 %vm4333_vm0, %v4331_v1  ;;  %vm1800_vm11 = vcmp.ge.f32.partialorder %v1712_v27, 0.0 }
 0x20b   : > { %v3585_v33 = vpop.f32.mrb[85].mxu0  ;;  %v3872_v34 = vpop.f32.mrb[87].mxu1 }
 0x20c   : > { %v1831_v35 = vmul.f32 0.1, %v1715_v10  ;;  %v3586_v36 = vadd.f32 %v3585_v33, %v3584_v31  ;;  %v3587_v38 = vpop.f32.mrb[86].mxu0  ;;  %vm1801_vm12 = vcmp.ge.f32.partialorder %v1715_v10, 0.0  ;;  %v4909_v42 = vsel %vm1800_vm11, %v1712_v27, %v1830_v30 }
 0x20d   : > { %v3588_v39 = vpop.f32.mrb[87].mxu0 }
 0x20e   : > { %v1567_v40 = vadd.f32 %v3586_v36, %v4829_v37  ;;  %v3589_v41 = vadd.f32 %v3588_v39, %v3587_v38  ;;  %v4911_v45 = vsel %vm1801_vm12, %v1715_v10, %v1831_v35 }
 0x20f   : > { %v1885_v46 = vpack.c.bf16 %v4911_v45, %v4909_v42 }
 0x210   : > { %v1720_v47 = vadd.f32 %v1719_v29, %v1567_v40  ;;  %v1570_v48 = vadd.f32 %v3589_v41, %v4829_v37  ;;  %v1727_v49 = vpop.f32.mrb[88].mxu1 }
 0x211   : > { %v3875_v50 = vpop.f32.mrb[89].mxu1  ;;  %3942 = vmatmul.mubr.bf16.gmra.mrb[140].mxu0 %v1885_v46 }
 0x212   : > { %v1832_v51 = vmul.f32 0.1, %v1720_v47  ;;  %v1723_v52 = vadd.f32 %v1722_v32, %v1570_v48  ;;  %v3590_v53 = vpop.f32.mrb[88].mxu0  ;;  %v1730_v54 = vpop.f32.mrb[90].mxu1  ;;  %3945 = vmatprep.mubr.msk.bf16.mxu0 %vm4333_vm0, %v4331_v1  ;;  %vm1802_vm13 = vcmp.ge.f32.partialorder %v1720_v47, 0.0 }
 0x213   : > { %v3591_v55 = vpop.f32.mrb[89].mxu0  ;;  %v3876_v56 = vpop.f32.mrb[91].mxu1 }
 0x214   : > { %v1833_v57 = vmul.f32 0.1, %v1723_v52  ;;  %v3592_v58 = vadd.f32 %v3591_v55, %v3590_v53  ;;  %v3593_v59 = vpop.f32.mrb[90].mxu0  ;;  %vm1803_vm14 = vcmp.ge.f32.partialorder %v1723_v52, 0.0  ;;  %v4919_v5 = vsel %vm1802_vm13, %v1720_v47, %v1832_v51 }
 0x215   : > { %v3594_v60 = vpop.f32.mrb[91].mxu0 }
 0x216   : > { %v1575_v61 = vadd.f32 %v3592_v58, %v4829_v37  ;;  %v3595_v4 = vadd.f32 %v3594_v60, %v3593_v59  ;;  %v4921_v6 = vsel %vm1803_vm14, %v1723_v52, %v1833_v57 }
 0x217   : > { %v1886_v7 = vpack.c.bf16 %v4921_v6, %v4919_v5 }
 0x218   : > { %v1728_v8 = vadd.f32 %v1727_v49, %v1575_v61  ;;  %v1578_v11 = vadd.f32 %v3595_v4, %v4829_v37  ;;  %v1735_v12 = vpop.f32.mrb[92].mxu1 }
 0x219   : > { %v3879_v13 = vpop.f32.mrb[93].mxu1  ;;  %3946 = vmatmul.mubr.bf16.gmra.mrb[144].mxu0 %v1886_v7 }
 0x21a   : > { %v1834_v14 = vmul.f32 0.1, %v1728_v8  ;;  %v1731_v15 = vadd.f32 %v1730_v54, %v1578_v11  ;;  %v3596_v16 = vpop.f32.mrb[92].mxu0  ;;  %v1738_v17 = vpop.f32.mrb[94].mxu1  ;;  %3949 = vmatprep.mubr.msk.bf16.mxu0 %vm4333_vm0, %v4331_v1  ;;  %vm1804_vm15 = vcmp.ge.f32.partialorder %v1728_v8, 0.0 }
 0x21b   : > { %v3597_v18 = vpop.f32.mrb[93].mxu0  ;;  %v3880_v19 = vpop.f32.mrb[95].mxu1 }
 0x21c   : > { %v1835_v20 = vmul.f32 0.1, %v1731_v15  ;;  %v3598_v21 = vadd.f32 %v3597_v18, %v3596_v16  ;;  %v3599_v22 = vpop.f32.mrb[94].mxu0  ;;  %vm1805_vm1 = vcmp.ge.f32.partialorder %v1731_v15, 0.0  ;;  %v4929_v29 = vsel %vm1804_vm15, %v1728_v8, %v1834_v14 }
 0x21d   : > { %v3600_v26 = vpop.f32.mrb[95].mxu0 }
 0x21e   : > { %v1583_v27 = vadd.f32 %v3598_v21, %v4829_v37  ;;  %v3601_v28 = vadd.f32 %v3600_v26, %v3599_v22  ;;  %v4931_v3 = vsel %vm1805_vm1, %v1731_v15, %v1835_v20 }
 0x21f   : > { %v1887_v30 = vpack.c.bf16 %v4931_v3, %v4929_v29 }
 0x220   : > { %v1736_v10 = vadd.f32 %v1735_v12, %v1583_v27  ;;  %v1586_v31 = vadd.f32 %v3601_v28, %v4829_v37  ;;  %v1743_v32 = vpop.f32.mrb[96].mxu1 }
 0x221   : > { %v3883_v33 = vpop.f32.mrb[97].mxu1  ;;  %3950 = vmatmul.mubr.bf16.gmra.mrb[148].mxu0 %v1887_v30 }
 0x222   : > { %v1836_v34 = vmul.f32 0.1, %v1736_v10  ;;  %v1739_v35 = vadd.f32 %v1738_v17, %v1586_v31  ;;  %v3602_v36 = vpop.f32.mrb[96].mxu0  ;;  %v1746_v38 = vpop.f32.mrb[98].mxu1  ;;  %3953 = vmatprep.mubr.msk.bf16.mxu0 %vm4333_vm0, %v4331_v1  ;;  %vm1806_vm2 = vcmp.ge.f32.partialorder %v1736_v10, 0.0 }
 0x223   : > { %v3603_v39 = vpop.f32.mrb[97].mxu0  ;;  %v3884_v40 = vpop.f32.mrb[99].mxu1 }
 0x224   : > { %v1837_v41 = vmul.f32 0.1, %v1739_v35  ;;  %v3604_v46 = vadd.f32 %v3603_v39, %v3602_v36  ;;  %v3605_v47 = vpop.f32.mrb[98].mxu0  ;;  %vm1807_vm3 = vcmp.ge.f32.partialorder %v1739_v35, 0.0  ;;  %v4939_v51 = vsel %vm1806_vm2, %v1736_v10, %v1836_v34 }
 0x225   : > { %v3606_v48 = vpop.f32.mrb[99].mxu0 }
 0x226   : > { %v1591_v49 = vadd.f32 %v3604_v46, %v4829_v37  ;;  %v3607_v50 = vadd.f32 %v3606_v48, %v3605_v47  ;;  %v4941_v52 = vsel %vm1807_vm3, %v1739_v35, %v1837_v41 }
 0x227   : > { %v1888_v53 = vpack.c.bf16 %v4941_v52, %v4939_v51 }
 0x228   : > { %v1744_v54 = vadd.f32 %v1743_v32, %v1591_v49  ;;  %v1594_v55 = vadd.f32 %v3607_v50, %v4829_v37  ;;  %v1751_v56 = vpop.f32.mrb[100].mxu1 }
 0x229   : > { %v3887_v57 = vpop.f32.mrb[101].mxu1  ;;  %3954 = vmatmul.mubr.bf16.gmra.mrb[152].mxu0 %v1888_v53 }
 0x22a   : > { %v1838_v58 = vmul.f32 0.1, %v1744_v54  ;;  %v1747_v59 = vadd.f32 %v1746_v38, %v1594_v55  ;;  %v3608_v60 = vpop.f32.mrb[100].mxu0  ;;  %v1754_v61 = vpop.f32.mrb[102].mxu1  ;;  %3957 = vmatprep.mubr.msk.bf16.mxu0 %vm4333_vm0, %v4331_v1  ;;  %vm1808_vm4 = vcmp.ge.f32.partialorder %v1744_v54, 0.0 }
 0x22b   : > { %v3609_v4 = vpop.f32.mrb[101].mxu0  ;;  %v3888_v7 = vpop.f32.mrb[103].mxu1 }
 0x22c   : > { %v1839_v8 = vmul.f32 0.1, %v1747_v59  ;;  %v3610_v11 = vadd.f32 %v3609_v4, %v3608_v60  ;;  %v3611_v12 = vpop.f32.mrb[102].mxu0  ;;  %vm1809_vm5 = vcmp.ge.f32.partialorder %v1747_v59, 0.0  ;;  %v4949_v16 = vsel %vm1808_vm4, %v1744_v54, %v1838_v58 }
 0x22d   : > { %v3612_v13 = vpop.f32.mrb[103].mxu0 }
 0x22e   : > { %v1599_v14 = vadd.f32 %v3610_v11, %v4829_v37  ;;  %v3613_v15 = vadd.f32 %v3612_v13, %v3611_v12  ;;  %v4951_v17 = vsel %vm1809_vm5, %v1747_v59, %v1839_v8 }
 0x22f   : > { %v1889_v18 = vpack.c.bf16 %v4951_v17, %v4949_v16 }
 0x230   : > { %v1752_v19 = vadd.f32 %v1751_v56, %v1599_v14  ;;  %v1602_v20 = vadd.f32 %v3613_v15, %v4829_v37  ;;  %v1759_v21 = vpop.f32.mrb[104].mxu1 }
 0x231   : > { %v3891_v22 = vpop.f32.mrb[105].mxu1  ;;  %3958 = vmatmul.mubr.bf16.gmra.mrb[156].mxu0 %v1889_v18 }
 0x232   : > { %v1840_v26 = vmul.f32 0.1, %v1752_v19  ;;  %v1755_v27 = vadd.f32 %v1754_v61, %v1602_v20  ;;  %v3614_v28 = vpop.f32.mrb[104].mxu0  ;;  %v1762_v30 = vpop.f32.mrb[106].mxu1  ;;  %3961 = vmatprep.mubr.msk.bf16.mxu0 %vm4333_vm0, %v4331_v1  ;;  %vm1810_vm6 = vcmp.ge.f32.partialorder %v1752_v19, 0.0 }
 0x233   : > { %v3615_v10 = vpop.f32.mrb[105].mxu0  ;;  %v3892_v31 = vpop.f32.mrb[107].mxu1 }
 0x234   : > { %v1841_v32 = vmul.f32 0.1, %v1755_v27  ;;  %v3616_v33 = vadd.f32 %v3615_v10, %v3614_v28  ;;  %v3617_v34 = vpop.f32.mrb[106].mxu0  ;;  %vm1811_vm7 = vcmp.ge.f32.partialorder %v1755_v27, 0.0  ;;  %v4959_v39 = vsel %vm1810_vm6, %v1752_v19, %v1840_v26 }
 0x235   : > { %v3618_v35 = vpop.f32.mrb[107].mxu0 }
 0x236   : > { %v1607_v36 = vadd.f32 %v3616_v33, %v4829_v37  ;;  %v3619_v38 = vadd.f32 %v3618_v35, %v3617_v34  ;;  %v4961_v40 = vsel %vm1811_vm7, %v1755_v27, %v1841_v32 }
 0x237   : > { %v1890_v41 = vpack.c.bf16 %v4961_v40, %v4959_v39 }
 0x238   : > { %v1760_v46 = vadd.f32 %v1759_v21, %v1607_v36  ;;  %v1610_v47 = vadd.f32 %v3619_v38, %v4829_v37  ;;  %v1767_v48 = vpop.f32.mrb[108].mxu1 }
 0x239   : > { %v3895_v49 = vpop.f32.mrb[109].mxu1  ;;  %3962 = vmatmul.mubr.bf16.gmra.mrb[160].mxu0 %v1890_v41 }
 0x23a   : > { %v1842_v50 = vmul.f32 0.1, %v1760_v46  ;;  %v1763_v53 = vadd.f32 %v1762_v30, %v1610_v47  ;;  %v3620_v54 = vpop.f32.mrb[108].mxu0  ;;  %v1770_v55 = vpop.f32.mrb[110].mxu1  ;;  %3965 = vmatprep.mubr.msk.bf16.mxu0 %vm4333_vm0, %v4331_v1  ;;  %vm1812_vm8 = vcmp.ge.f32.partialorder %v1760_v46, 0.0 }
 0x23b   : > { %v3621_v56 = vpop.f32.mrb[109].mxu0  ;;  %v3896_v57 = vpop.f32.mrb[111].mxu1 }
 0x23c   : > { %v1843_v58 = vmul.f32 0.1, %v1763_v53  ;;  %v3622_v59 = vadd.f32 %v3621_v56, %v3620_v54  ;;  %v3623_v60 = vpop.f32.mrb[110].mxu0  ;;  %vm1813_vm9 = vcmp.ge.f32.partialorder %v1763_v53, 0.0  ;;  %v4969_v8 = vsel %vm1812_vm8, %v1760_v46, %v1842_v50 }
 0x23d   : > { %v3624_v61 = vpop.f32.mrb[111].mxu0 }
 0x23e   : > { %v1615_v4 = vadd.f32 %v3622_v59, %v4829_v37  ;;  %v3625_v7 = vadd.f32 %v3624_v61, %v3623_v60  ;;  %v4971_v11 = vsel %vm1813_vm9, %v1763_v53, %v1843_v58 }
 0x23f   : > { %v1891_v12 = vpack.c.bf16 %v4971_v11, %v4969_v8 }
 0x240   : > { %v1768_v13 = vadd.f32 %v1767_v48, %v1615_v4  ;;  %v1618_v14 = vadd.f32 %v3625_v7, %v4829_v37  ;;  %v1775_v15 = vpop.f32.mrb[112].mxu1 }
 0x241   : > { %v3899_v18 = vpop.f32.mrb[113].mxu1  ;;  %3966 = vmatmul.mubr.bf16.gmra.mrb[164].mxu0 %v1891_v12 }
 0x242   : > { %v1844_v19 = vmul.f32 0.1, %v1768_v13  ;;  %v1771_v20 = vadd.f32 %v1770_v55, %v1618_v14  ;;  %v3626_v21 = vpop.f32.mrb[112].mxu0  ;;  %v1778_v22 = vpop.f32.mrb[114].mxu1  ;;  %3969 = vmatprep.mubr.msk.bf16.mxu0 %vm4333_vm0, %v4331_v1  ;;  %vm1814_vm10 = vcmp.ge.f32.partialorder %v1768_v13, 0.0 }
 0x243   : > { %v3627_v26 = vpop.f32.mrb[113].mxu0  ;;  %v3900_v27 = vpop.f32.mrb[115].mxu1 }
 0x244   : > { %v1845_v28 = vmul.f32 0.1, %v1771_v20  ;;  %v3628_v30 = vadd.f32 %v3627_v26, %v3626_v21  ;;  %v3629_v10 = vpop.f32.mrb[114].mxu0  ;;  %vm1815_vm11 = vcmp.ge.f32.partialorder %v1771_v20, 0.0  ;;  %v4979_v34 = vsel %vm1814_vm10, %v1768_v13, %v1844_v19  ;;  %v4308_v26 = vld [vmem:[%s5608_s5 + $0x88] sm:$0xff]  }
 0x245   : > { %v3630_v31 = vpop.f32.mrb[115].mxu0  ;;  %v5016_v27 = vld [vmem:[%s5609_s6] ss:$0 sm:$0xff] }
 0x246   : > { %v1623_v32 = vadd.f32 %v3628_v30, %v4829_v37  ;;  %v3631_v33 = vadd.f32 %v3630_v31, %v3629_v10  ;;  %v4981_v35 = vsel %vm1815_vm11, %v1771_v20, %v1845_v28  ;;  %v4309_v28 = vld [vmem:[%s5608_s5 + $0x90] sm:$0xff]  }
 0x247   : > { %v1892_v36 = vpack.c.bf16 %v4981_v35, %v4979_v34 }
 0x248   : > { %v1776_v38 = vadd.f32 %v1775_v15, %v1623_v32  ;;  %v1626_v41 = vadd.f32 %v3631_v33, %v4829_v37  ;;  %v1783_v46 = vpop.f32.mrb[116].mxu1  ;;  %v4310_v33 = vld [vmem:[%s5608_s5 + $0x98] sm:$0xff]  }
 0x249   : > { %v3903_v47 = vpop.f32.mrb[117].mxu1  ;;  %3970 = vmatmul.mubr.bf16.gmra.mrb[168].mxu0 %v1892_v36 }
 0x24a   : > { %v1846_v48 = vmul.f32 0.1, %v1776_v38  ;;  %v1779_v49 = vadd.f32 %v1778_v22, %v1626_v41  ;;  %v3632_v50 = vpop.f32.mrb[116].mxu0  ;;  %v1786_v53 = vpop.f32.mrb[118].mxu1  ;;  %3973 = vmatprep.mubr.msk.bf16.mxu0 %vm4333_vm0, %v4331_v1  ;;  %vm1816_vm12 = vcmp.ge.f32.partialorder %v1776_v38, 0.0 }
 0x24b   : > { %v3633_v54 = vpop.f32.mrb[117].mxu0  ;;  %v3904_v55 = vpop.f32.mrb[119].mxu1 }
 0x24c   : > { %v1847_v56 = vmul.f32 0.1, %v1779_v49  ;;  %v3634_v57 = vadd.f32 %v3633_v54, %v3632_v50  ;;  %v3635_v58 = vpop.f32.mrb[118].mxu0  ;;  %vm1817_vm13 = vcmp.ge.f32.partialorder %v1779_v49, 0.0  ;;  %v4989_v4 = vsel %vm1816_vm12, %v1776_v38, %v1846_v48  ;;  %v4311_v48 = vld [vmem:[%s5608_s5 + $0xa0] sm:$0xff]  }
 0x24d   : > { %v3636_v59 = vpop.f32.mrb[119].mxu0 }
 0x24e   : > { %v1631_v60 = vadd.f32 %v3634_v57, %v4829_v37  ;;  %v3637_v61 = vadd.f32 %v3636_v59, %v3635_v58  ;;  %v4991_v7 = vsel %vm1817_vm13, %v1779_v49, %v1847_v56  ;;  %v4312_v59 = vld [vmem:[%s5608_s5 + $0xa8] sm:$0xff]  }
 0x24f   : > { %v1893_v12 = vpack.c.bf16 %v4991_v7, %v4989_v4 }
 0x250   : > { %v1784_v13 = vadd.f32 %v1783_v46, %v1631_v60  ;;  %v1634_v14 = vadd.f32 %v3637_v61, %v4829_v37  ;;  %v4307_v37 = vld [vmem:[%s5608_s5 + $0x80] sm:$0xff]  }
 0x251   : > { %3974 = vmatmul.mubr.bf16.gmra.mrb[172].mxu0 %v1893_v12 }
 0x252   : > { %v1848_v15 = vmul.f32 0.1, %v1784_v13  ;;  %v1787_v18 = vadd.f32 %v1786_v53, %v1634_v14  ;;  %3977 = vmatprep.mubr.msk.bf16.mxu0 %vm4333_vm0, %v4331_v1  ;;  %vm1818_vm14 = vcmp.ge.f32.partialorder %v1784_v13, 0.0  ;;  %4058 = vmatpush3.bf16.msra.mxu0 %v4307_v37 }
 0x253   : > { %4059 = vmatprep.subr.bf16.mxu0 %v4331_v1 }
 0x254   : > { %v1849_v19 = vmul.f32 0.1, %v1787_v18  ;;  %vm1819_vm15 = vcmp.ge.f32.partialorder %v1787_v18, 0.0  ;;  %v4998_v20 = vsel %vm1818_vm14, %v1784_v13, %v1848_v15  ;;  %v4313_v13 = vld [vmem:[%s5608_s5 + $0xb0] sm:$0xff]  }
 0x256   : > { %v5000_v21 = vsel %vm1819_vm15, %v1787_v18, %v1849_v19  ;;  %4060 = vmatpush3.bf16.msra.mxu0 %v4308_v26 }
 0x257   : > { %v1894_v22 = vpack.c.bf16 %v5000_v21, %v4998_v20  ;;  %4061 = vmatprep.subr.bf16.mxu0 %v4331_v1 }
 0x259   : > { %3978 = vmatmul.mubr.bf16.gmra.mrb[176].mxu0 %v1894_v22 }
 0x25a   : > { %4073 = vmatprep.mubr.msk.bf16.mxu0 %vm4333_vm0, %v4331_v1  ;;  %4062 = vmatpush3.bf16.msra.mxu0 %v4309_v28 }
 0x25b   : > { %4063 = vmatprep.subr.bf16.mxu0 %v4331_v1 }
 0x25e   : > { %4064 = vmatpush3.bf16.msra.mxu0 %v4310_v33 }
 0x25f   : > { %4065 = vmatprep.subr.bf16.mxu0 %v4331_v1 }
 0x262   : > { %4066 = vmatpush3.bf16.msra.mxu0 %v4311_v48 }
 0x263   : > { %4067 = vmatprep.subr.bf16.mxu0 %v4331_v1 }
 0x266   : > { %4068 = vmatpush3.bf16.msra.mxu0 %v4312_v59 }
 0x267   : > { %4069 = vmatprep.subr.bf16.mxu0 %v4331_v1 }
 0x26a   : > { %4070 = vmatpush3.bf16.msra.mxu0 %v4313_v13 }
 0x26b   : > { %4071 = vmatprep.subr.bf16.mxu0 %v4331_v1 }
 0x2bc   : > { %v1998_v30 = vpop.f32.mrb[120].mxu0 }
 0x2bd   : > { %v1999_v10 = vadd.f32 %v5016_v27, %v1998_v30  ;;  %v3923_v31 = vpop.f32.mrb[121].mxu0  ;;  %v4314_v30 = vld [vmem:[%s5608_s5 + $0xb8] sm:$0xff]  }
 0x2be   : > { %v2001_v32 = vpop.f32.mrb[122].mxu0  ;;  %4072 = vmatpush3.bf16.msra.mxu0 %v4314_v30 }
 0x2bf   : > { %vm2117_vm1 = vcmp.ge.f32.partialorder %v1999_v10, 0.0  ;;  %v2147_v36 = vmul.f32 0.1, %v1999_v10  ;;  %v2002_v38 = vadd.f32 %v5016_v27, %v2001_v32  ;;  %v3924_v41 = vpop.f32.mrb[123].mxu0 }
 0x2c1   : > { %v2177_v46 = vsel %vm2117_vm1, %v1999_v10, %v2147_v36  ;;  %vm2118_vm2 = vcmp.ge.f32.partialorder %v2002_v38, 0.0  ;;  %v2148_v47 = vmul.f32 0.1, %v2002_v38 }
 0x2c2   : > { %v5033_v50 = vadd.f32 %v2177_v46, %v4845_v62 }
 0x2c3   : > { %v2178_v49 = vsel %vm2118_vm2, %v2002_v38, %v2148_v47 }
 0x2c4   : > { %v5036_v53 = vadd.f32 %v2178_v49, %v4847_v63  ;;  %v2006_v54 = vpop.f32.mrb[124].mxu0 }
 0x2c5   : > { %v2007_v55 = vadd.f32 %v5016_v27, %v2006_v54  ;;  %v3927_v56 = vpop.f32.mrb[125].mxu0 }
 0x2c6   : > { %v2237_v57 = vpack.c.bf16 %v5036_v53, %v5033_v50  ;;  %v2009_v58 = vpop.f32.mrb[126].mxu0 }
 0x2c7   : > { %vm2119_vm3 = vcmp.ge.f32.partialorder %v2007_v55, 0.0  ;;  %v2149_v60 = vmul.f32 0.1, %v2007_v55  ;;  %v2010_v62 = vadd.f32 %v5016_v27, %v2009_v58  ;;  %v3928_v61 = vpop.f32.mrb[127].mxu0 }
 0x2c8   : > { %3998 = vmatmul.mubr.bf16.vlgmr.msra.gmra.mrb[120].mxu1 %v2237_v57 }
 0x2c9   : > { %v2179_v63 = vsel %vm2119_vm3, %v2007_v55, %v2149_v60  ;;  %vm2120_vm4 = vcmp.ge.f32.partialorder %v2010_v62, 0.0  ;;  %v2150_v12 = vmul.f32 0.1, %v2010_v62  ;;  %4001 = vmatprep.mubr.msk.bf16.mxu1 %vm4333_vm0, %v4331_v1 }
 0x2ca   : > { %v5053_v18 = vadd.f32 %v2179_v63, %v4864_v24 }
 0x2cb   : > { %v2180_v14 = vsel %vm2120_vm4, %v2010_v62, %v2150_v12 }
 0x2cc   : > { %v2014_v15 = vpop.f32.mrb[128].mxu0  ;;  %v5056_v19 = vadd.f32 %v2180_v14, %v4866_v25 }
 0x2cd   : > { %v2015_v22 = vadd.f32 %v5016_v27, %v2014_v15  ;;  %v3931_v37 = vpop.f32.mrb[129].mxu0 }
 0x2ce   : > { %v2017_v26 = vpop.f32.mrb[130].mxu0  ;;  %v2238_v28 = vpack.c.bf16 %v5056_v19, %v5053_v18 }
 0x2cf   : > { %vm2121_vm5 = vcmp.ge.f32.partialorder %v2015_v22, 0.0  ;;  %v2151_v10 = vmul.f32 0.1, %v2015_v22  ;;  %v2018_v24 = vadd.f32 %v5016_v27, %v2017_v26  ;;  %v3932_v31 = vpop.f32.mrb[131].mxu0 }
 0x2d0   : > { %4002 = vmatmul.mubr.bf16.gmra.mrb[124].mxu1 %v2238_v28 }
 0x2d1   : > { %v2181_v25 = vsel %vm2121_vm5, %v2015_v22, %v2151_v10  ;;  %vm2122_vm6 = vcmp.ge.f32.partialorder %v2018_v24, 0.0  ;;  %v2152_v32 = vmul.f32 0.1, %v2018_v24  ;;  %4005 = vmatprep.mubr.msk.bf16.mxu1 %vm4333_vm0, %v4331_v1 }
 0x2d2   : > { %v5069_v38 = vadd.f32 %v2181_v25, %v4879_v43 }
 0x2d3   : > { %v2182_v33 = vsel %vm2122_vm6, %v2018_v24, %v2152_v32 }
 0x2d4   : > { %v2022_v36 = vpop.f32.mrb[132].mxu0  ;;  %v5072_v41 = vadd.f32 %v2182_v33, %v4881_v44 }
 0x2d5   : > { %v2023_v46 = vadd.f32 %v5016_v27, %v2022_v36  ;;  %v3935_v47 = vpop.f32.mrb[133].mxu0 }
 0x2d6   : > { %v2025_v48 = vpop.f32.mrb[134].mxu0  ;;  %v2239_v49 = vpack.c.bf16 %v5072_v41, %v5069_v38 }
 0x2d7   : > { %vm2123_vm7 = vcmp.ge.f32.partialorder %v2023_v46, 0.0  ;;  %v2153_v54 = vmul.f32 0.1, %v2023_v46  ;;  %v2026_v55 = vadd.f32 %v5016_v27, %v2025_v48  ;;  %v3936_v56 = vpop.f32.mrb[135].mxu0 }
 0x2d8   : > { %4006 = vmatmul.mubr.bf16.gmra.mrb[128].mxu1 %v2239_v49 }
 0x2d9   : > { %v2183_v57 = vsel %vm2123_vm7, %v2023_v46, %v2153_v54  ;;  %vm2124_vm8 = vcmp.ge.f32.partialorder %v2026_v55, 0.0  ;;  %v2154_v43 = vmul.f32 0.1, %v2026_v55  ;;  %4009 = vmatprep.mubr.msk.bf16.mxu1 %vm4333_vm0, %v4331_v1 }
 0x2da   : > { %v5081_v59 = vadd.f32 %v2183_v57, %v4889_v0 }
 0x2db   : > { %v2184_v44 = vsel %vm2124_vm8, %v2026_v55, %v2154_v43 }
 0x2dc   : > { %v2030_v58 = vpop.f32.mrb[136].mxu0  ;;  %v5084_v60 = vadd.f32 %v2184_v44, %v4891_v2 }
 0x2dd   : > { %v2031_v62 = vadd.f32 %v5016_v27, %v2030_v58  ;;  %v3939_v61 = vpop.f32.mrb[137].mxu0 }
 0x2de   : > { %v2033_v63 = vpop.f32.mrb[138].mxu0  ;;  %v2240_v12 = vpack.c.bf16 %v5084_v60, %v5081_v59 }
 0x2df   : > { %vm2125_vm9 = vcmp.ge.f32.partialorder %v2031_v62, 0.0  ;;  %v2155_v13 = vmul.f32 0.1, %v2031_v62  ;;  %v2034_v14 = vadd.f32 %v5016_v27, %v2033_v63  ;;  %v3940_v15 = vpop.f32.mrb[139].mxu0 }
 0x2e0   : > { %4010 = vmatmul.mubr.bf16.gmra.mrb[132].mxu1 %v2240_v12 }
 0x2e1   : > { %v2185_v22 = vsel %vm2125_vm9, %v2031_v62, %v2155_v13  ;;  %vm2126_vm10 = vcmp.ge.f32.partialorder %v2034_v14, 0.0  ;;  %v2156_v0 = vmul.f32 0.1, %v2034_v14  ;;  %4013 = vmatprep.mubr.msk.bf16.mxu1 %vm4333_vm0, %v4331_v1 }
 0x2e2   : > { %v5093_v26 = vadd.f32 %v2185_v22, %v4899_v9 }
 0x2e3   : > { %v2186_v2 = vsel %vm2126_vm10, %v2034_v14, %v2156_v0 }
 0x2e4   : > { %v2038_v37 = vpop.f32.mrb[140].mxu0  ;;  %v5096_v28 = vadd.f32 %v2186_v2, %v4901_v23 }
 0x2e5   : > { %v2039_v30 = vadd.f32 %v5016_v27, %v2038_v37  ;;  %v3943_v10 = vpop.f32.mrb[141].mxu0 }
 0x2e6   : > { %v2041_v24 = vpop.f32.mrb[142].mxu0  ;;  %v2241_v31 = vpack.c.bf16 %v5096_v28, %v5093_v26 }
 0x2e7   : > { %vm2127_vm11 = vcmp.ge.f32.partialorder %v2039_v30, 0.0  ;;  %v2157_v25 = vmul.f32 0.1, %v2039_v30  ;;  %v2042_v32 = vadd.f32 %v5016_v27, %v2041_v24  ;;  %v3944_v33 = vpop.f32.mrb[143].mxu0 }
 0x2e8   : > { %4014 = vmatmul.mubr.bf16.gmra.mrb[136].mxu1 %v2241_v31 }
 0x2e9   : > { %v2187_v36 = vsel %vm2127_vm11, %v2039_v30, %v2157_v25  ;;  %vm2128_vm12 = vcmp.ge.f32.partialorder %v2042_v32, 0.0  ;;  %v2158_v9 = vmul.f32 0.1, %v2042_v32  ;;  %4017 = vmatprep.mubr.msk.bf16.mxu1 %vm4333_vm0, %v4331_v1 }
 0x2ea   : > { %v5105_v47 = vadd.f32 %v2187_v36, %v4909_v42 }
 0x2eb   : > { %v2188_v23 = vsel %vm2128_vm12, %v2042_v32, %v2158_v9 }
 0x2ec   : > { %v2046_v46 = vpop.f32.mrb[144].mxu0  ;;  %v5108_v48 = vadd.f32 %v2188_v23, %v4911_v45 }
 0x2ed   : > { %v2047_v49 = vadd.f32 %v5016_v27, %v2046_v46  ;;  %v3947_v54 = vpop.f32.mrb[145].mxu0 }
 0x2ee   : > { %v2049_v55 = vpop.f32.mrb[146].mxu0  ;;  %v2242_v56 = vpack.c.bf16 %v5108_v48, %v5105_v47 }
 0x2ef   : > { %vm2129_vm13 = vcmp.ge.f32.partialorder %v2047_v49, 0.0  ;;  %v2159_v57 = vmul.f32 0.1, %v2047_v49  ;;  %v2050_v43 = vadd.f32 %v5016_v27, %v2049_v55  ;;  %v3948_v44 = vpop.f32.mrb[147].mxu0 }
 0x2f0   : > { %4018 = vmatmul.mubr.bf16.gmra.mrb[140].mxu1 %v2242_v56 }
 0x2f1   : > { %v2189_v58 = vsel %vm2129_vm13, %v2047_v49, %v2159_v57  ;;  %vm2130_vm14 = vcmp.ge.f32.partialorder %v2050_v43, 0.0  ;;  %v2160_v42 = vmul.f32 0.1, %v2050_v43  ;;  %4021 = vmatprep.mubr.msk.bf16.mxu1 %vm4333_vm0, %v4331_v1 }
 0x2f2   : > { %v5117_v61 = vadd.f32 %v2189_v58, %v4919_v5 }
 0x2f3   : > { %v2190_v45 = vsel %vm2130_vm14, %v2050_v43, %v2160_v42 }
 0x2f4   : > { %v2054_v62 = vpop.f32.mrb[148].mxu0  ;;  %v5120_v63 = vadd.f32 %v2190_v45, %v4921_v6 }
 0x2f5   : > { %v2055_v12 = vadd.f32 %v5016_v27, %v2054_v62  ;;  %v3951_v13 = vpop.f32.mrb[149].mxu0 }
 0x2f6   : > { %v2057_v14 = vpop.f32.mrb[150].mxu0  ;;  %v2243_v15 = vpack.c.bf16 %v5120_v63, %v5117_v61 }
 0x2f7   : > { %vm2131_vm15 = vcmp.ge.f32.partialorder %v2055_v12, 0.0  ;;  %v2161_v22 = vmul.f32 0.1, %v2055_v12  ;;  %v2058_v0 = vadd.f32 %v5016_v27, %v2057_v14  ;;  %v3952_v2 = vpop.f32.mrb[151].mxu0 }
 0x2f8   : > { %4022 = vmatmul.mubr.bf16.gmra.mrb[144].mxu1 %v2243_v15 }
 0x2f9   : > { %v2191_v37 = vsel %vm2131_vm15, %v2055_v12, %v2161_v22  ;;  %vm2132_vm1 = vcmp.ge.f32.partialorder %v2058_v0, 0.0  ;;  %v2162_v5 = vmul.f32 0.1, %v2058_v0  ;;  %4025 = vmatprep.mubr.msk.bf16.mxu1 %vm4333_vm0, %v4331_v1 }
 0x2fa   : > { %v5129_v10 = vadd.f32 %v2191_v37, %v4929_v29 }
 0x2fb   : > { %v2192_v6 = vsel %vm2132_vm1, %v2058_v0, %v2162_v5 }
 0x2fc   : > { %v2062_v30 = vpop.f32.mrb[152].mxu0  ;;  %v5132_v24 = vadd.f32 %v2192_v6, %v4931_v3 }
 0x2fd   : > { %v2063_v31 = vadd.f32 %v5016_v27, %v2062_v30  ;;  %v3955_v25 = vpop.f32.mrb[153].mxu0 }
 0x2fe   : > { %v2065_v32 = vpop.f32.mrb[154].mxu0  ;;  %v2244_v33 = vpack.c.bf16 %v5132_v24, %v5129_v10 }
 0x2ff   : > { %vm2133_vm2 = vcmp.ge.f32.partialorder %v2063_v31, 0.0  ;;  %v2163_v36 = vmul.f32 0.1, %v2063_v31  ;;  %v2066_v9 = vadd.f32 %v5016_v27, %v2065_v32  ;;  %v3956_v23 = vpop.f32.mrb[155].mxu0 }
 0x300   : > { %4026 = vmatmul.mubr.bf16.gmra.mrb[148].mxu1 %v2244_v33 }
 0x301   : > { %v2193_v46 = vsel %vm2133_vm2, %v2063_v31, %v2163_v36  ;;  %vm2134_vm3 = vcmp.ge.f32.partialorder %v2066_v9, 0.0  ;;  %v2164_v29 = vmul.f32 0.1, %v2066_v9  ;;  %4029 = vmatprep.mubr.msk.bf16.mxu1 %vm4333_vm0, %v4331_v1 }
 0x302   : > { %v5141_v54 = vadd.f32 %v2193_v46, %v4939_v51 }
 0x303   : > { %v2194_v3 = vsel %vm2134_vm3, %v2066_v9, %v2164_v29 }
 0x304   : > { %v2070_v49 = vpop.f32.mrb[156].mxu0  ;;  %v5144_v55 = vadd.f32 %v2194_v3, %v4941_v52 }
 0x305   : > { %v2071_v56 = vadd.f32 %v5016_v27, %v2070_v49  ;;  %v3959_v57 = vpop.f32.mrb[157].mxu0 }
 0x306   : > { %v2073_v43 = vpop.f32.mrb[158].mxu0  ;;  %v2245_v44 = vpack.c.bf16 %v5144_v55, %v5141_v54 }
 0x307   : > { %vm2135_vm4 = vcmp.ge.f32.partialorder %v2071_v56, 0.0  ;;  %v2165_v58 = vmul.f32 0.1, %v2071_v56  ;;  %v2074_v42 = vadd.f32 %v5016_v27, %v2073_v43  ;;  %v3960_v45 = vpop.f32.mrb[159].mxu0 }
 0x308   : > { %4030 = vmatmul.mubr.bf16.gmra.mrb[152].mxu1 %v2245_v44 }
 0x309   : > { %v2195_v62 = vsel %vm2135_vm4, %v2071_v56, %v2165_v58  ;;  %vm2136_vm5 = vcmp.ge.f32.partialorder %v2074_v42, 0.0  ;;  %v2166_v51 = vmul.f32 0.1, %v2074_v42  ;;  %4033 = vmatprep.mubr.msk.bf16.mxu1 %vm4333_vm0, %v4331_v1 }
 0x30a   : > { %v5153_v13 = vadd.f32 %v2195_v62, %v4949_v16 }
 0x30b   : > { %v2196_v52 = vsel %vm2136_vm5, %v2074_v42, %v2166_v51 }
 0x30c   : > { %v2078_v12 = vpop.f32.mrb[160].mxu0  ;;  %v5156_v14 = vadd.f32 %v2196_v52, %v4951_v17 }
 0x30d   : > { %v2079_v15 = vadd.f32 %v5016_v27, %v2078_v12  ;;  %v3963_v22 = vpop.f32.mrb[161].mxu0 }
 0x30e   : > { %v2081_v0 = vpop.f32.mrb[162].mxu0  ;;  %v2246_v2 = vpack.c.bf16 %v5156_v14, %v5153_v13 }
 0x30f   : > { %vm2137_vm6 = vcmp.ge.f32.partialorder %v2079_v15, 0.0  ;;  %v2167_v37 = vmul.f32 0.1, %v2079_v15  ;;  %v2082_v5 = vadd.f32 %v5016_v27, %v2081_v0  ;;  %v3964_v6 = vpop.f32.mrb[163].mxu0 }
 0x310   : > { %4034 = vmatmul.mubr.bf16.gmra.mrb[156].mxu1 %v2246_v2 }
 0x311   : > { %v2197_v30 = vsel %vm2137_vm6, %v2079_v15, %v2167_v37  ;;  %vm2138_vm7 = vcmp.ge.f32.partialorder %v2082_v5, 0.0  ;;  %v2168_v16 = vmul.f32 0.1, %v2082_v5  ;;  %4037 = vmatprep.mubr.msk.bf16.mxu1 %vm4333_vm0, %v4331_v1 }
 0x312   : > { %v5165_v25 = vadd.f32 %v2197_v30, %v4959_v39 }
 0x313   : > { %v2198_v17 = vsel %vm2138_vm7, %v2082_v5, %v2168_v16 }
 0x314   : > { %v2086_v31 = vpop.f32.mrb[164].mxu0  ;;  %v5168_v32 = vadd.f32 %v2198_v17, %v4961_v40 }
 0x315   : > { %v2087_v33 = vadd.f32 %v5016_v27, %v2086_v31  ;;  %v3967_v36 = vpop.f32.mrb[165].mxu0 }
 0x316   : > { %v2089_v9 = vpop.f32.mrb[166].mxu0  ;;  %v2247_v23 = vpack.c.bf16 %v5168_v32, %v5165_v25 }
 0x317   : > { %vm2139_vm8 = vcmp.ge.f32.partialorder %v2087_v33, 0.0  ;;  %v2169_v46 = vmul.f32 0.1, %v2087_v33  ;;  %v2090_v29 = vadd.f32 %v5016_v27, %v2089_v9  ;;  %v3968_v3 = vpop.f32.mrb[167].mxu0 }
 0x318   : > { %4038 = vmatmul.mubr.bf16.gmra.mrb[160].mxu1 %v2247_v23 }
 0x319   : > { %v2199_v49 = vsel %vm2139_vm8, %v2087_v33, %v2169_v46  ;;  %vm2140_vm9 = vcmp.ge.f32.partialorder %v2090_v29, 0.0  ;;  %v2170_v39 = vmul.f32 0.1, %v2090_v29  ;;  %4041 = vmatprep.mubr.msk.bf16.mxu1 %vm4333_vm0, %v4331_v1 }
 0x31a   : > { %v5177_v57 = vadd.f32 %v2199_v49, %v4969_v8 }
 0x31b   : > { %v2200_v40 = vsel %vm2140_vm9, %v2090_v29, %v2170_v39 }
 0x31c   : > { %v2094_v56 = vpop.f32.mrb[168].mxu0  ;;  %v5180_v43 = vadd.f32 %v2200_v40, %v4971_v11 }
 0x31d   : > { %v2095_v44 = vadd.f32 %v5016_v27, %v2094_v56  ;;  %v3971_v58 = vpop.f32.mrb[169].mxu0 }
 0x31e   : > { %v2097_v42 = vpop.f32.mrb[170].mxu0  ;;  %v2248_v45 = vpack.c.bf16 %v5180_v43, %v5177_v57 }
 0x31f   : > { %vm2141_vm10 = vcmp.ge.f32.partialorder %v2095_v44, 0.0  ;;  %v2171_v62 = vmul.f32 0.1, %v2095_v44  ;;  %v2098_v51 = vadd.f32 %v5016_v27, %v2097_v42  ;;  %v3972_v52 = vpop.f32.mrb[171].mxu0 }
 0x320   : > { %4042 = vmatmul.mubr.bf16.gmra.mrb[164].mxu1 %v2248_v45  ;;  %v4317_v45 = vld [vmem:[%s5610_s7 + $0x10] sm:$0xff]  }
 0x321   : > { %v2201_v12 = vsel %vm2141_vm10, %v2095_v44, %v2171_v62  ;;  %vm2142_vm11 = vcmp.ge.f32.partialorder %v2098_v51, 0.0  ;;  %v2172_v8 = vmul.f32 0.1, %v2098_v51  ;;  %4045 = vmatprep.mubr.msk.bf16.mxu1 %vm4333_vm0, %v4331_v1 }
 0x322   : > { %v5189_v22 = vadd.f32 %v2201_v12, %v4979_v34 }
 0x323   : > { %v2202_v11 = vsel %vm2142_vm11, %v2098_v51, %v2172_v8  ;;  %v4318_v8 = vld [vmem:[%s5610_s7 + $0x18] sm:$0xff]  }
 0x324   : > { %v2102_v15 = vpop.f32.mrb[172].mxu0  ;;  %v5192_v0 = vadd.f32 %v2202_v11, %v4981_v35 }
 0x325   : > { %v2103_v2 = vadd.f32 %v5016_v27, %v2102_v15  ;;  %v3975_v37 = vpop.f32.mrb[173].mxu0 }
 0x326   : > { %v2105_v5 = vpop.f32.mrb[174].mxu0  ;;  %v2249_v6 = vpack.c.bf16 %v5192_v0, %v5189_v22 }
 0x327   : > { %vm2143_vm12 = vcmp.ge.f32.partialorder %v2103_v2, 0.0  ;;  %v2173_v30 = vmul.f32 0.1, %v2103_v2  ;;  %v2106_v16 = vadd.f32 %v5016_v27, %v2105_v5  ;;  %v3976_v17 = vpop.f32.mrb[175].mxu0 }
 0x328   : > { %4046 = vmatmul.mubr.bf16.gmra.mrb[168].mxu1 %v2249_v6  ;;  %v4319_v6 = vld [vmem:[%s5610_s7 + $0x20] sm:$0xff]  }
 0x329   : > { %v2203_v31 = vsel %vm2143_vm12, %v2103_v2, %v2173_v30  ;;  %vm2144_vm13 = vcmp.ge.f32.partialorder %v2106_v16, 0.0  ;;  %v2174_v34 = vmul.f32 0.1, %v2106_v16  ;;  %4049 = vmatprep.mubr.msk.bf16.mxu1 %vm4333_vm0, %v4331_v1 }
 0x32a   : > { %v5201_v36 = vadd.f32 %v2203_v31, %v4989_v4 }
 0x32b   : > { %v2204_v35 = vsel %vm2144_vm13, %v2106_v16, %v2174_v34 }
 0x32c   : > { %v2110_v33 = vpop.f32.mrb[176].mxu0  ;;  %v5204_v9 = vadd.f32 %v2204_v35, %v4991_v7 }
 0x32d   : > { %v2111_v23 = vadd.f32 %v5016_v27, %v2110_v33  ;;  %v3979_v46 = vpop.f32.mrb[177].mxu0 }
 0x32e   : > { %v2113_v29 = vpop.f32.mrb[178].mxu0  ;;  %v2250_v3 = vpack.c.bf16 %v5204_v9, %v5201_v36  ;;  %v4320_v46 = vld [vmem:[%s5610_s7 + $0x28] sm:$0xff]  }
 0x32f   : > { %vm2145_vm14 = vcmp.ge.f32.partialorder %v2111_v23, 0.0  ;;  %v2175_v49 = vmul.f32 0.1, %v2111_v23  ;;  %v2114_v39 = vadd.f32 %v5016_v27, %v2113_v29  ;;  %v3980_v40 = vpop.f32.mrb[179].mxu0  ;;  %v4315_v27 = vld [vmem:[%s5610_s7] sm:$0xff]  }
 0x330   : > { %4050 = vmatmul.mubr.bf16.gmra.mrb[172].mxu1 %v2250_v3 }
 0x331   : > { %v2205_v56 = vsel %vm2145_vm14, %v2111_v23, %v2175_v49  ;;  %vm2146_vm15 = vcmp.ge.f32.partialorder %v2114_v39, 0.0  ;;  %v2176_v4 = vmul.f32 0.1, %v2114_v39  ;;  %4053 = vmatprep.mubr.msk.bf16.mxu1 %vm4333_vm0, %v4331_v1  ;;  %4134 = vmatpush3.bf16.msra.mxu1 %v4315_v27 }
 0x332   : > { %v5213_v44 = vadd.f32 %v2205_v56, %v4998_v20  ;;  %4135 = vmatprep.subr.bf16.mxu1 %v4331_v1  ;;  %v4316_v20 = vld [vmem:[%s5610_s7 + $0x8] sm:$0xff]  }
 0x333   : > { %v2206_v7 = vsel %vm2146_vm15, %v2114_v39, %v2176_v4  ;;  %v4321_v39 = vld [vmem:[%s5610_s7 + $0x30] sm:$0xff]  }
 0x334   : > { %v5216_v58 = vadd.f32 %v2206_v7, %v5000_v21  ;;  %v5232_v21 = vld [vmem:[%s5609_s6 + $0x1] ss:$0 sm:$0xff] }
 0x335   : > { %4136 = vmatpush3.bf16.msra.mxu1 %v4316_v20 }
 0x336   : > { %v2251_v42 = vpack.c.bf16 %v5216_v58, %v5213_v44  ;;  %4137 = vmatprep.subr.bf16.mxu1 %v4331_v1 }
 0x338   : > { %4054 = vmatmul.mubr.bf16.gmra.mrb[176].mxu1 %v2251_v42 }
 0x339   : > { %4149 = vmatprep.mubr.msk.bf16.mxu1 %vm4333_vm0, %v4331_v1  ;;  %4138 = vmatpush3.bf16.msra.mxu1 %v4317_v45 }
 0x33a   : > { %4139 = vmatprep.subr.bf16.mxu1 %v4331_v1 }
 0x33d   : > { %4140 = vmatpush3.bf16.msra.mxu1 %v4318_v8 }
 0x33e   : > { %4141 = vmatprep.subr.bf16.mxu1 %v4331_v1 }
 0x341   : > { %4142 = vmatpush3.bf16.msra.mxu1 %v4319_v6 }
 0x342   : > { %4143 = vmatprep.subr.bf16.mxu1 %v4331_v1 }
 0x345   : > { %4144 = vmatpush3.bf16.msra.mxu1 %v4320_v46 }
 0x346   : > { %4145 = vmatprep.subr.bf16.mxu1 %v4331_v1 }
 0x349   : > { %4146 = vmatpush3.bf16.msra.mxu1 %v4321_v39 }
 0x34a   : > { %4147 = vmatprep.subr.bf16.mxu1 %v4331_v1 }
 0x39b   : > { %v2356_v62 = vpop.f32.mrb[120].mxu1 }
 0x39c   : > { %v2357_v51 = vadd.f32 %v5232_v21, %v2356_v62  ;;  %v3999_v52 = vpop.f32.mrb[121].mxu1  ;;  %v4322_v62 = vld [vmem:[%s5610_s7 + $0x38] sm:$0xff]  }
 0x39d   : > { %v2359_v12 = vpop.f32.mrb[122].mxu1  ;;  %4148 = vmatpush3.bf16.msra.mxu1 %v4322_v62 }
 0x39e   : > { %vm2475_vm1 = vcmp.ge.f32.partialorder %v2357_v51, 0.0  ;;  %v2505_v11 = vmul.f32 0.1, %v2357_v51  ;;  %v2360_v15 = vadd.f32 %v5232_v21, %v2359_v12  ;;  %v4000_v2 = vpop.f32.mrb[123].mxu1 }
 0x3a0   : > { %v2535_v37 = vsel %vm2475_vm1, %v2357_v51, %v2505_v11  ;;  %vm2476_vm2 = vcmp.ge.f32.partialorder %v2360_v15, 0.0  ;;  %v2506_v5 = vmul.f32 0.1, %v2360_v15 }
 0x3a1   : > { %v5249_v16 = vadd.f32 %v2535_v37, %v5033_v50 }
 0x3a2   : > { %v2536_v30 = vsel %vm2476_vm2, %v2360_v15, %v2506_v5 }
 0x3a3   : > { %v5252_v17 = vadd.f32 %v2536_v30, %v5036_v53  ;;  %v2364_v31 = vpop.f32.mrb[124].mxu1 }
 0x3a4   : > { %v2365_v34 = vadd.f32 %v5232_v21, %v2364_v31  ;;  %v4003_v35 = vpop.f32.mrb[125].mxu1 }
 0x3a5   : > { %v2595_v33 = vpack.c.bf16 %v5252_v17, %v5249_v16  ;;  %v2367_v23 = vpop.f32.mrb[126].mxu1 }
 0x3a6   : > { %vm2477_vm3 = vcmp.ge.f32.partialorder %v2365_v34, 0.0  ;;  %v2507_v29 = vmul.f32 0.1, %v2365_v34  ;;  %v2368_v50 = vadd.f32 %v5232_v21, %v2367_v23  ;;  %v4004_v3 = vpop.f32.mrb[127].mxu1 }
 0x3a7   : > { %4074 = vmatmul.mubr.bf16.vlgmr.msra.gmra.mrb[180].mxu0 %v2595_v33 }
 0x3a8   : > { %v2537_v53 = vsel %vm2477_vm3, %v2365_v34, %v2507_v29  ;;  %vm2478_vm4 = vcmp.ge.f32.partialorder %v2368_v50, 0.0  ;;  %v2508_v49 = vmul.f32 0.1, %v2368_v50  ;;  %4077 = vmatprep.mubr.msk.bf16.mxu0 %vm4333_vm0, %v4331_v1 }
 0x3a9   : > { %v5269_v4 = vadd.f32 %v2537_v53, %v5053_v18 }
 0x3aa   : > { %v2538_v40 = vsel %vm2478_vm4, %v2368_v50, %v2508_v49 }
 0x3ab   : > { %v2372_v56 = vpop.f32.mrb[128].mxu1  ;;  %v5272_v7 = vadd.f32 %v2538_v40, %v5056_v19 }
 0x3ac   : > { %v2373_v42 = vadd.f32 %v5232_v21, %v2372_v56  ;;  %v4007_v27 = vpop.f32.mrb[129].mxu1 }
 0x3ad   : > { %v2375_v20 = vpop.f32.mrb[130].mxu1  ;;  %v2596_v45 = vpack.c.bf16 %v5272_v7, %v5269_v4 }
 0x3ae   : > { %vm2479_vm5 = vcmp.ge.f32.partialorder %v2373_v42, 0.0  ;;  %v2509_v51 = vmul.f32 0.1, %v2373_v42  ;;  %v2376_v18 = vadd.f32 %v5232_v21, %v2375_v20  ;;  %v4008_v52 = vpop.f32.mrb[131].mxu1 }
 0x3af   : > { %4078 = vmatmul.mubr.bf16.gmra.mrb[184].mxu0 %v2596_v45 }
 0x3b0   : > { %v2539_v19 = vsel %vm2479_vm5, %v2373_v42, %v2509_v51  ;;  %vm2480_vm6 = vcmp.ge.f32.partialorder %v2376_v18, 0.0  ;;  %v2510_v12 = vmul.f32 0.1, %v2376_v18  ;;  %4081 = vmatprep.mubr.msk.bf16.mxu0 %vm4333_vm0, %v4331_v1 }
 0x3b1   : > { %v5285_v15 = vadd.f32 %v2539_v19, %v5069_v38 }
 0x3b2   : > { %v2540_v8 = vsel %vm2480_vm6, %v2376_v18, %v2510_v12 }
 0x3b3   : > { %v2380_v11 = vpop.f32.mrb[132].mxu1  ;;  %v5288_v2 = vadd.f32 %v2540_v8, %v5072_v41 }
 0x3b4   : > { %v2381_v37 = vadd.f32 %v5232_v21, %v2380_v11  ;;  %v4011_v5 = vpop.f32.mrb[133].mxu1 }
 0x3b5   : > { %v2383_v6 = vpop.f32.mrb[134].mxu1  ;;  %v2597_v30 = vpack.c.bf16 %v5288_v2, %v5285_v15 }
 0x3b6   : > { %vm2481_vm7 = vcmp.ge.f32.partialorder %v2381_v37, 0.0  ;;  %v2511_v31 = vmul.f32 0.1, %v2381_v37  ;;  %v2384_v34 = vadd.f32 %v5232_v21, %v2383_v6  ;;  %v4012_v35 = vpop.f32.mrb[135].mxu1 }
 0x3b7   : > { %4082 = vmatmul.mubr.bf16.gmra.mrb[188].mxu0 %v2597_v30 }
 0x3b8   : > { %v2541_v33 = vsel %vm2481_vm7, %v2381_v37, %v2511_v31  ;;  %vm2482_vm8 = vcmp.ge.f32.partialorder %v2384_v34, 0.0  ;;  %v2512_v38 = vmul.f32 0.1, %v2384_v34  ;;  %4085 = vmatprep.mubr.msk.bf16.mxu0 %vm4333_vm0, %v4331_v1 }
 0x3b9   : > { %v5297_v46 = vadd.f32 %v2541_v33, %v5081_v59 }
 0x3ba   : > { %v2542_v41 = vsel %vm2482_vm8, %v2384_v34, %v2512_v38 }
 0x3bb   : > { %v2388_v23 = vpop.f32.mrb[136].mxu1  ;;  %v5300_v29 = vadd.f32 %v2542_v41, %v5084_v60 }
 0x3bc   : > { %v2389_v50 = vadd.f32 %v5232_v21, %v2388_v23  ;;  %v4015_v3 = vpop.f32.mrb[137].mxu1 }
 0x3bd   : > { %v2391_v53 = vpop.f32.mrb[138].mxu1  ;;  %v2598_v49 = vpack.c.bf16 %v5300_v29, %v5297_v46 }
 0x3be   : > { %vm2483_vm9 = vcmp.ge.f32.partialorder %v2389_v50, 0.0  ;;  %v2513_v39 = vmul.f32 0.1, %v2389_v50  ;;  %v2392_v40 = vadd.f32 %v5232_v21, %v2391_v53  ;;  %v4016_v56 = vpop.f32.mrb[139].mxu1 }
 0x3bf   : > { %4086 = vmatmul.mubr.bf16.gmra.mrb[192].mxu0 %v2598_v49 }
 0x3c0   : > { %v2543_v42 = vsel %vm2483_vm9, %v2389_v50, %v2513_v39  ;;  %vm2484_vm10 = vcmp.ge.f32.partialorder %v2392_v40, 0.0  ;;  %v2514_v59 = vmul.f32 0.1, %v2392_v40  ;;  %4089 = vmatprep.mubr.msk.bf16.mxu0 %vm4333_vm0, %v4331_v1 }
 0x3c1   : > { %v5309_v20 = vadd.f32 %v2543_v42, %v5093_v26 }
 0x3c2   : > { %v2544_v60 = vsel %vm2484_vm10, %v2392_v40, %v2514_v59 }
 0x3c3   : > { %v2396_v27 = vpop.f32.mrb[140].mxu1  ;;  %v5312_v45 = vadd.f32 %v2544_v60, %v5096_v28 }
 0x3c4   : > { %v2397_v62 = vadd.f32 %v5232_v21, %v2396_v27  ;;  %v4019_v51 = vpop.f32.mrb[141].mxu1 }
 0x3c5   : > { %v2399_v18 = vpop.f32.mrb[142].mxu1  ;;  %v2599_v52 = vpack.c.bf16 %v5312_v45, %v5309_v20 }
 0x3c6   : > { %vm2485_vm11 = vcmp.ge.f32.partialorder %v2397_v62, 0.0  ;;  %v2515_v19 = vmul.f32 0.1, %v2397_v62  ;;  %v2400_v12 = vadd.f32 %v5232_v21, %v2399_v18  ;;  %v4020_v8 = vpop.f32.mrb[143].mxu1 }
 0x3c7   : > { %4090 = vmatmul.mubr.bf16.gmra.mrb[196].mxu0 %v2599_v52 }
 0x3c8   : > { %v2545_v11 = vsel %vm2485_vm11, %v2397_v62, %v2515_v19  ;;  %vm2486_vm12 = vcmp.ge.f32.partialorder %v2400_v12, 0.0  ;;  %v2516_v26 = vmul.f32 0.1, %v2400_v12  ;;  %4093 = vmatprep.mubr.msk.bf16.mxu0 %vm4333_vm0, %v4331_v1 }
 0x3c9   : > { %v5321_v5 = vadd.f32 %v2545_v11, %v5105_v47 }
 0x3ca   : > { %v2546_v28 = vsel %vm2486_vm12, %v2400_v12, %v2516_v26 }
 0x3cb   : > { %v2404_v37 = vpop.f32.mrb[144].mxu1  ;;  %v5324_v6 = vadd.f32 %v2546_v28, %v5108_v48 }
 0x3cc   : > { %v2405_v30 = vadd.f32 %v5232_v21, %v2404_v37  ;;  %v4023_v31 = vpop.f32.mrb[145].mxu1 }
 0x3cd   : > { %v2407_v34 = vpop.f32.mrb[146].mxu1  ;;  %v2600_v35 = vpack.c.bf16 %v5324_v6, %v5321_v5 }
 0x3ce   : > { %vm2487_vm13 = vcmp.ge.f32.partialorder %v2405_v30, 0.0  ;;  %v2517_v33 = vmul.f32 0.1, %v2405_v30  ;;  %v2408_v38 = vadd.f32 %v5232_v21, %v2407_v34  ;;  %v4024_v41 = vpop.f32.mrb[147].mxu1 }
 0x3cf   : > { %4094 = vmatmul.mubr.bf16.gmra.mrb[200].mxu0 %v2600_v35 }
 0x3d0   : > { %v2547_v23 = vsel %vm2487_vm13, %v2405_v30, %v2517_v33  ;;  %vm2488_vm14 = vcmp.ge.f32.partialorder %v2408_v38, 0.0  ;;  %v2518_v47 = vmul.f32 0.1, %v2408_v38  ;;  %4097 = vmatprep.mubr.msk.bf16.mxu0 %vm4333_vm0, %v4331_v1 }
 0x3d1   : > { %v5333_v3 = vadd.f32 %v2547_v23, %v5117_v61 }
 0x3d2   : > { %v2548_v48 = vsel %vm2488_vm14, %v2408_v38, %v2518_v47 }
 0x3d3   : > { %v2412_v50 = vpop.f32.mrb[148].mxu1  ;;  %v5336_v53 = vadd.f32 %v2548_v48, %v5120_v63 }
 0x3d4   : > { %v2413_v49 = vadd.f32 %v5232_v21, %v2412_v50  ;;  %v4027_v39 = vpop.f32.mrb[149].mxu1 }
 0x3d5   : > { %v2415_v40 = vpop.f32.mrb[150].mxu1  ;;  %v2601_v56 = vpack.c.bf16 %v5336_v53, %v5333_v3 }
 0x3d6   : > { %vm2489_vm15 = vcmp.ge.f32.partialorder %v2413_v49, 0.0  ;;  %v2519_v42 = vmul.f32 0.1, %v2413_v49  ;;  %v2416_v59 = vadd.f32 %v5232_v21, %v2415_v40  ;;  %v4028_v60 = vpop.f32.mrb[151].mxu1 }
 0x3d7   : > { %4098 = vmatmul.mubr.bf16.gmra.mrb[204].mxu0 %v2601_v56 }
 0x3d8   : > { %v2549_v27 = vsel %vm2489_vm15, %v2413_v49, %v2519_v42  ;;  %vm2490_vm1 = vcmp.ge.f32.partialorder %v2416_v59, 0.0  ;;  %v2520_v61 = vmul.f32 0.1, %v2416_v59  ;;  %4101 = vmatprep.mubr.msk.bf16.mxu0 %vm4333_vm0, %v4331_v1 }
 0x3d9   : > { %v5345_v51 = vadd.f32 %v2549_v27, %v5129_v10 }
 0x3da   : > { %v2550_v63 = vsel %vm2490_vm1, %v2416_v59, %v2520_v61 }
 0x3db   : > { %v2420_v62 = vpop.f32.mrb[152].mxu1  ;;  %v5348_v18 = vadd.f32 %v2550_v63, %v5132_v24 }
 0x3dc   : > { %v2421_v52 = vadd.f32 %v5232_v21, %v2420_v62  ;;  %v4031_v19 = vpop.f32.mrb[153].mxu1 }
 0x3dd   : > { %v2423_v12 = vpop.f32.mrb[154].mxu1  ;;  %v2602_v8 = vpack.c.bf16 %v5348_v18, %v5345_v51 }
 0x3de   : > { %vm2491_vm2 = vcmp.ge.f32.partialorder %v2421_v52, 0.0  ;;  %v2521_v11 = vmul.f32 0.1, %v2421_v52  ;;  %v2424_v26 = vadd.f32 %v5232_v21, %v2423_v12  ;;  %v4032_v28 = vpop.f32.mrb[155].mxu1 }
 0x3df   : > { %4102 = vmatmul.mubr.bf16.gmra.mrb[208].mxu0 %v2602_v8 }
 0x3e0   : > { %v2551_v37 = vsel %vm2491_vm2, %v2421_v52, %v2521_v11  ;;  %vm2492_vm3 = vcmp.ge.f32.partialorder %v2424_v26, 0.0  ;;  %v2522_v10 = vmul.f32 0.1, %v2424_v26  ;;  %4105 = vmatprep.mubr.msk.bf16.mxu0 %vm4333_vm0, %v4331_v1 }
 0x3e1   : > { %v5357_v31 = vadd.f32 %v2551_v37, %v5141_v54 }
 0x3e2   : > { %v2552_v24 = vsel %vm2492_vm3, %v2424_v26, %v2522_v10 }
 0x3e3   : > { %v2428_v30 = vpop.f32.mrb[156].mxu1  ;;  %v5360_v34 = vadd.f32 %v2552_v24, %v5144_v55 }
 0x3e4   : > { %v2429_v35 = vadd.f32 %v5232_v21, %v2428_v30  ;;  %v4035_v33 = vpop.f32.mrb[157].mxu1 }
 0x3e5   : > { %v2431_v38 = vpop.f32.mrb[158].mxu1  ;;  %v2603_v41 = vpack.c.bf16 %v5360_v34, %v5357_v31 }
 0x3e6   : > { %vm2493_vm4 = vcmp.ge.f32.partialorder %v2429_v35, 0.0  ;;  %v2523_v23 = vmul.f32 0.1, %v2429_v35  ;;  %v2432_v47 = vadd.f32 %v5232_v21, %v2431_v38  ;;  %v4036_v48 = vpop.f32.mrb[159].mxu1 }
 0x3e7   : > { %4106 = vmatmul.mubr.bf16.gmra.mrb[212].mxu0 %v2603_v41 }
 0x3e8   : > { %v2553_v50 = vsel %vm2493_vm4, %v2429_v35, %v2523_v23  ;;  %vm2494_vm5 = vcmp.ge.f32.partialorder %v2432_v47, 0.0  ;;  %v2524_v54 = vmul.f32 0.1, %v2432_v47  ;;  %4109 = vmatprep.mubr.msk.bf16.mxu0 %vm4333_vm0, %v4331_v1 }
 0x3e9   : > { %v5369_v39 = vadd.f32 %v2553_v50, %v5153_v13 }
 0x3ea   : > { %v2554_v55 = vsel %vm2494_vm5, %v2432_v47, %v2524_v54 }
 0x3eb   : > { %v2436_v49 = vpop.f32.mrb[160].mxu1  ;;  %v5372_v40 = vadd.f32 %v2554_v55, %v5156_v14 }
 0x3ec   : > { %v2437_v56 = vadd.f32 %v5232_v21, %v2436_v49  ;;  %v4039_v42 = vpop.f32.mrb[161].mxu1 }
 0x3ed   : > { %v2439_v59 = vpop.f32.mrb[162].mxu1  ;;  %v2604_v60 = vpack.c.bf16 %v5372_v40, %v5369_v39 }
 0x3ee   : > { %vm2495_vm6 = vcmp.ge.f32.partialorder %v2437_v56, 0.0  ;;  %v2525_v27 = vmul.f32 0.1, %v2437_v56  ;;  %v2440_v61 = vadd.f32 %v5232_v21, %v2439_v59  ;;  %v4040_v63 = vpop.f32.mrb[163].mxu1 }
 0x3ef   : > { %4110 = vmatmul.mubr.bf16.gmra.mrb[216].mxu0 %v2604_v60 }
 0x3f0   : > { %v2555_v62 = vsel %vm2495_vm6, %v2437_v56, %v2525_v27  ;;  %vm2496_vm7 = vcmp.ge.f32.partialorder %v2440_v61, 0.0  ;;  %v2526_v13 = vmul.f32 0.1, %v2440_v61  ;;  %4113 = vmatprep.mubr.msk.bf16.mxu0 %vm4333_vm0, %v4331_v1 }
 0x3f1   : > { %v5381_v19 = vadd.f32 %v2555_v62, %v5165_v25 }
 0x3f2   : > { %v2556_v14 = vsel %vm2496_vm7, %v2440_v61, %v2526_v13 }
 0x3f3   : > { %v2444_v52 = vpop.f32.mrb[164].mxu1  ;;  %v5384_v12 = vadd.f32 %v2556_v14, %v5168_v32 }
 0x3f4   : > { %v2445_v8 = vadd.f32 %v5232_v21, %v2444_v52  ;;  %v4043_v11 = vpop.f32.mrb[165].mxu1 }
 0x3f5   : > { %v2447_v26 = vpop.f32.mrb[166].mxu1  ;;  %v2605_v28 = vpack.c.bf16 %v5384_v12, %v5381_v19 }
 0x3f6   : > { %vm2497_vm8 = vcmp.ge.f32.partialorder %v2445_v8, 0.0  ;;  %v2527_v37 = vmul.f32 0.1, %v2445_v8  ;;  %v2448_v10 = vadd.f32 %v5232_v21, %v2447_v26  ;;  %v4044_v24 = vpop.f32.mrb[167].mxu1 }
 0x3f7   : > { %4114 = vmatmul.mubr.bf16.gmra.mrb[220].mxu0 %v2605_v28 }
 0x3f8   : > { %v2557_v30 = vsel %vm2497_vm8, %v2445_v8, %v2527_v37  ;;  %vm2498_vm9 = vcmp.ge.f32.partialorder %v2448_v10, 0.0  ;;  %v2528_v25 = vmul.f32 0.1, %v2448_v10  ;;  %4117 = vmatprep.mubr.msk.bf16.mxu0 %vm4333_vm0, %v4331_v1 }
 0x3f9   : > { %v5393_v33 = vadd.f32 %v2557_v30, %v5177_v57 }
 0x3fa   : > { %v2558_v32 = vsel %vm2498_vm9, %v2448_v10, %v2528_v25 }
 0x3fb   : > { %v2452_v35 = vpop.f32.mrb[168].mxu1  ;;  %v5396_v38 = vadd.f32 %v2558_v32, %v5180_v43 }
 0x3fc   : > { %v2453_v41 = vadd.f32 %v5232_v21, %v2452_v35  ;;  %v4047_v23 = vpop.f32.mrb[169].mxu1 }
 0x3fd   : > { %v2455_v47 = vpop.f32.mrb[170].mxu1  ;;  %v2606_v48 = vpack.c.bf16 %v5396_v38, %v5393_v33 }
 0x3fe   : > { %vm2499_vm10 = vcmp.ge.f32.partialorder %v2453_v41, 0.0  ;;  %v2529_v50 = vmul.f32 0.1, %v2453_v41  ;;  %v2456_v54 = vadd.f32 %v5232_v21, %v2455_v47  ;;  %v4048_v55 = vpop.f32.mrb[171].mxu1 }
 0x3ff   : > { %4118 = vmatmul.mubr.bf16.gmra.mrb[224].mxu0 %v2606_v48 }
 0x400   : > { %v2559_v49 = vsel %vm2499_vm10, %v2453_v41, %v2529_v50  ;;  %vm2500_vm11 = vcmp.ge.f32.partialorder %v2456_v54, 0.0  ;;  %v2530_v57 = vmul.f32 0.1, %v2456_v54  ;;  %4121 = vmatprep.mubr.msk.bf16.mxu0 %vm4333_vm0, %v4331_v1 }
 0x401   : > { %v5405_v42 = vadd.f32 %v2559_v49, %v5189_v22 }
 0x402   : > { %v2560_v43 = vsel %vm2500_vm11, %v2456_v54, %v2530_v57 }
 0x403   : > { %v2460_v56 = vpop.f32.mrb[172].mxu1  ;;  %v5408_v59 = vadd.f32 %v2560_v43, %v5192_v0 }
 0x404   : > { %v2461_v60 = vadd.f32 %v5232_v21, %v2460_v56  ;;  %v4051_v27 = vpop.f32.mrb[173].mxu1 }
 0x405   : > { %v2463_v61 = vpop.f32.mrb[174].mxu1  ;;  %v2607_v63 = vpack.c.bf16 %v5408_v59, %v5405_v42 }
 0x406   : > { %vm2501_vm12 = vcmp.ge.f32.partialorder %v2461_v60, 0.0  ;;  %v2531_v62 = vmul.f32 0.1, %v2461_v60  ;;  %v2464_v13 = vadd.f32 %v5232_v21, %v2463_v61  ;;  %v4052_v14 = vpop.f32.mrb[175].mxu1 }
 0x407   : > { %4122 = vmatmul.mubr.bf16.gmra.mrb[228].mxu0 %v2607_v63 }
 0x408   : > { %v2561_v52 = vsel %vm2501_vm12, %v2461_v60, %v2531_v62  ;;  %vm2502_vm13 = vcmp.ge.f32.partialorder %v2464_v13, 0.0  ;;  %v2532_v22 = vmul.f32 0.1, %v2464_v13  ;;  %4125 = vmatprep.mubr.msk.bf16.mxu0 %vm4333_vm0, %v4331_v1 }
 0x409   : > { %v5417_v11 = vadd.f32 %v2561_v52, %v5201_v36 }
 0x40a   : > { %v2562_v0 = vsel %vm2502_vm13, %v2464_v13, %v2532_v22 }
 0x40b   : > { %v2468_v8 = vpop.f32.mrb[176].mxu1  ;;  %v5420_v26 = vadd.f32 %v2562_v0, %v5204_v9 }
 0x40c   : > { %v2469_v28 = vadd.f32 %v5232_v21, %v2468_v8  ;;  %v4055_v37 = vpop.f32.mrb[177].mxu1 }
 0x40d   : > { %v2471_v10 = vpop.f32.mrb[178].mxu1  ;;  %v2608_v24 = vpack.c.bf16 %v5420_v26, %v5417_v11 }
 0x40e   : > { %vm2503_vm14 = vcmp.ge.f32.partialorder %v2469_v28, 0.0  ;;  %v2533_v30 = vmul.f32 0.1, %v2469_v28  ;;  %v2472_v25 = vadd.f32 %v5232_v21, %v2471_v10  ;;  %v4056_v32 = vpop.f32.mrb[179].mxu1  ;;  %v5439_v21 = vld [vmem:[%s5609_s6 + $0x2] ss:$0 sm:$0xff] }
 0x40f   : > { %4126 = vmatmul.mubr.bf16.gmra.mrb[232].mxu0 %v2608_v24 }
 0x410   : > { %v2563_v35 = vsel %vm2503_vm14, %v2469_v28, %v2533_v30  ;;  %vm2504_vm15 = vcmp.ge.f32.partialorder %v2472_v25, 0.0  ;;  %v2534_v36 = vmul.f32 0.1, %v2472_v25  ;;  %4129 = vmatprep.mubr.msk.bf16.mxu0 %vm4333_vm0, %v4331_v1 }
 0x411   : > { %v5429_v41 = vadd.f32 %v2563_v35, %v5213_v44 }
 0x412   : > { %v2564_v9 = vsel %vm2504_vm15, %v2472_v25, %v2534_v36 }
 0x413   : > { %v5432_v23 = vadd.f32 %v2564_v9, %v5216_v58 }
 0x415   : > { %v2609_v47 = vpack.c.bf16 %v5432_v23, %v5429_v41 }
 0x417   : > { %4130 = vmatmul.mubr.bf16.gmra.mrb[236].mxu0 %v2609_v47 }
 0x47a   : > { %v2714_v48 = vpop.f32.mrb[180].mxu0 }
 0x47b   : > { %v2715_v50 = vadd.f32 %v5439_v21, %v2714_v48  ;;  %v4075_v54 = vpop.f32.mrb[181].mxu0 }
 0x47c   : > { %v2717_v55 = vpop.f32.mrb[182].mxu0 }
 0x47d   : > { %vm2833_vm1 = vcmp.ge.f32.partialorder %v2715_v50, 0.0  ;;  %v2863_v44 = vmul.f32 0.1, %v2715_v50  ;;  %v2718_v49 = vadd.f32 %v5439_v21, %v2717_v55  ;;  %v4076_v58 = vpop.f32.mrb[183].mxu0 }
 0x47f   : > { %v2893_v57 = vsel %vm2833_vm1, %v2715_v50, %v2863_v44  ;;  %vm2834_vm2 = vcmp.ge.f32.partialorder %v2718_v49, 0.0  ;;  %v2864_v43 = vmul.f32 0.1, %v2718_v49 }
 0x480   : > { %v2923_v60 = vadd.f32 %v2893_v57, %v5249_v16 }
 0x481   : > { %v2894_v56 = vsel %vm2834_vm2, %v2718_v49, %v2864_v43 }
 0x482   : > { %v2924_v27 = vadd.f32 %v2894_v56, %v5252_v17  ;;  %v2722_v61 = vpop.f32.mrb[184].mxu0 }
 0x483   : > { %v2723_v63 = vadd.f32 %v5439_v21, %v2722_v61  ;;  %v4079_v62 = vpop.f32.mrb[185].mxu0 }
 0x484   : > { %v2953_v13 = vpack.c.bf16 %v2924_v27, %v2923_v60  ;;  %v2725_v14 = vpop.f32.mrb[186].mxu0 }
 0x485   : > { %vm2835_vm3 = vcmp.ge.f32.partialorder %v2723_v63, 0.0  ;;  %v2865_v52 = vmul.f32 0.1, %v2723_v63  ;;  %v2726_v22 = vadd.f32 %v5439_v21, %v2725_v14  ;;  %v4080_v0 = vpop.f32.mrb[187].mxu0 }
 0x486   : > { %4150 = vmatmul.mubr.bf16.vlgmr.msra.gmra.mrb[180].mxu1 %v2953_v13 }
 0x487   : > { %v2895_v8 = vsel %vm2835_vm3, %v2723_v63, %v2865_v52  ;;  %vm2836_vm4 = vcmp.ge.f32.partialorder %v2726_v22, 0.0  ;;  %v2866_v28 = vmul.f32 0.1, %v2726_v22  ;;  %4153 = vmatprep.mubr.msk.bf16.mxu1 %vm4333_vm0, %v4331_v1 }
 0x488   : > { %v2925_v37 = vadd.f32 %v2895_v8, %v5269_v4 }
 0x489   : > { %v2896_v16 = vsel %vm2836_vm4, %v2726_v22, %v2866_v28 }
 0x48a   : > { %v2730_v17 = vpop.f32.mrb[188].mxu0  ;;  %v2926_v10 = vadd.f32 %v2896_v16, %v5272_v7 }
 0x48b   : > { %v2731_v24 = vadd.f32 %v5439_v21, %v2730_v17  ;;  %v4083_v30 = vpop.f32.mrb[189].mxu0 }
 0x48c   : > { %v2733_v25 = vpop.f32.mrb[190].mxu0  ;;  %v2954_v32 = vpack.c.bf16 %v2926_v10, %v2925_v37 }
 0x48d   : > { %vm2837_vm5 = vcmp.ge.f32.partialorder %v2731_v24, 0.0  ;;  %v2867_v35 = vmul.f32 0.1, %v2731_v24  ;;  %v2734_v36 = vadd.f32 %v5439_v21, %v2733_v25  ;;  %v4084_v9 = vpop.f32.mrb[191].mxu0 }
 0x48e   : > { %4154 = vmatmul.mubr.bf16.gmra.mrb[184].mxu1 %v2954_v32 }
 0x48f   : > { %v2897_v47 = vsel %vm2837_vm5, %v2731_v24, %v2867_v35  ;;  %vm2838_vm6 = vcmp.ge.f32.partialorder %v2734_v36, 0.0  ;;  %v2868_v48 = vmul.f32 0.1, %v2734_v36  ;;  %4157 = vmatprep.mubr.msk.bf16.mxu1 %vm4333_vm0, %v4331_v1 }
 0x490   : > { %v2927_v7 = vadd.f32 %v2897_v47, %v5285_v15 }
 0x491   : > { %v2898_v4 = vsel %vm2838_vm6, %v2734_v36, %v2868_v48 }
 0x492   : > { %v2738_v50 = vpop.f32.mrb[192].mxu0  ;;  %v2928_v54 = vadd.f32 %v2898_v4, %v5288_v2 }
 0x493   : > { %v2739_v55 = vadd.f32 %v5439_v21, %v2738_v50  ;;  %v4087_v44 = vpop.f32.mrb[193].mxu0 }
 0x494   : > { %v2741_v49 = vpop.f32.mrb[194].mxu0  ;;  %v2955_v58 = vpack.c.bf16 %v2928_v54, %v2927_v7 }
 0x495   : > { %vm2839_vm7 = vcmp.ge.f32.partialorder %v2739_v55, 0.0  ;;  %v2869_v57 = vmul.f32 0.1, %v2739_v55  ;;  %v2742_v43 = vadd.f32 %v5439_v21, %v2741_v49  ;;  %v4088_v56 = vpop.f32.mrb[195].mxu0 }
 0x496   : > { %4158 = vmatmul.mubr.bf16.gmra.mrb[188].mxu1 %v2955_v58 }
 0x497   : > { %v2899_v60 = vsel %vm2839_vm7, %v2739_v55, %v2869_v57  ;;  %vm2840_vm8 = vcmp.ge.f32.partialorder %v2742_v43, 0.0  ;;  %v2870_v27 = vmul.f32 0.1, %v2742_v43  ;;  %4161 = vmatprep.mubr.msk.bf16.mxu1 %vm4333_vm0, %v4331_v1 }
 0x498   : > { %v2929_v2 = vadd.f32 %v2899_v60, %v5297_v46 }
 0x499   : > { %v2900_v15 = vsel %vm2840_vm8, %v2742_v43, %v2870_v27 }
 0x49a   : > { %v2746_v61 = vpop.f32.mrb[196].mxu0  ;;  %v2930_v63 = vadd.f32 %v2900_v15, %v5300_v29 }
 0x49b   : > { %v2747_v62 = vadd.f32 %v5439_v21, %v2746_v61  ;;  %v4091_v13 = vpop.f32.mrb[197].mxu0 }
 0x49c   : > { %v2749_v14 = vpop.f32.mrb[198].mxu0  ;;  %v2956_v52 = vpack.c.bf16 %v2930_v63, %v2929_v2 }
 0x49d   : > { %vm2841_vm9 = vcmp.ge.f32.partialorder %v2747_v62, 0.0  ;;  %v2871_v22 = vmul.f32 0.1, %v2747_v62  ;;  %v2750_v0 = vadd.f32 %v5439_v21, %v2749_v14  ;;  %v4092_v8 = vpop.f32.mrb[199].mxu0 }
 0x49e   : > { %4162 = vmatmul.mubr.bf16.gmra.mrb[192].mxu1 %v2956_v52 }
 0x49f   : > { %v2901_v28 = vsel %vm2841_vm9, %v2747_v62, %v2871_v22  ;;  %vm2842_vm10 = vcmp.ge.f32.partialorder %v2750_v0, 0.0  ;;  %v2872_v16 = vmul.f32 0.1, %v2750_v0  ;;  %4165 = vmatprep.mubr.msk.bf16.mxu1 %vm4333_vm0, %v4331_v1 }
 0x4a0   : > { %v2931_v29 = vadd.f32 %v2901_v28, %v5309_v20 }
 0x4a1   : > { %v2902_v46 = vsel %vm2842_vm10, %v2750_v0, %v2872_v16 }
 0x4a2   : > { %v2754_v17 = vpop.f32.mrb[200].mxu0  ;;  %v2932_v37 = vadd.f32 %v2902_v46, %v5312_v45 }
 0x4a3   : > { %v2755_v10 = vadd.f32 %v5439_v21, %v2754_v17  ;;  %v4095_v24 = vpop.f32.mrb[201].mxu0 }
 0x4a4   : > { %v2757_v30 = vpop.f32.mrb[202].mxu0  ;;  %v2957_v25 = vpack.c.bf16 %v2932_v37, %v2931_v29 }
 0x4a5   : > { %vm2843_vm11 = vcmp.ge.f32.partialorder %v2755_v10, 0.0  ;;  %v2873_v32 = vmul.f32 0.1, %v2755_v10  ;;  %v2758_v35 = vadd.f32 %v5439_v21, %v2757_v30  ;;  %v4096_v36 = vpop.f32.mrb[203].mxu0 }
 0x4a6   : > { %4166 = vmatmul.mubr.bf16.gmra.mrb[196].mxu1 %v2957_v25 }
 0x4a7   : > { %v2903_v9 = vsel %vm2843_vm11, %v2755_v10, %v2873_v32  ;;  %vm2844_vm12 = vcmp.ge.f32.partialorder %v2758_v35, 0.0  ;;  %v2874_v47 = vmul.f32 0.1, %v2758_v35  ;;  %4169 = vmatprep.mubr.msk.bf16.mxu1 %vm4333_vm0, %v4331_v1 }
 0x4a8   : > { %v2933_v45 = vadd.f32 %v2903_v9, %v5321_v5 }
 0x4a9   : > { %v2904_v20 = vsel %vm2844_vm12, %v2758_v35, %v2874_v47 }
 0x4aa   : > { %v2762_v48 = vpop.f32.mrb[204].mxu0  ;;  %v2934_v4 = vadd.f32 %v2904_v20, %v5324_v6 }
 0x4ab   : > { %v2763_v50 = vadd.f32 %v5439_v21, %v2762_v48  ;;  %v4099_v7 = vpop.f32.mrb[205].mxu0 }
 0x4ac   : > { %v2765_v54 = vpop.f32.mrb[206].mxu0  ;;  %v2958_v55 = vpack.c.bf16 %v2934_v4, %v2933_v45 }
 0x4ad   : > { %vm2845_vm13 = vcmp.ge.f32.partialorder %v2763_v50, 0.0  ;;  %v2875_v44 = vmul.f32 0.1, %v2763_v50  ;;  %v2766_v49 = vadd.f32 %v5439_v21, %v2765_v54  ;;  %v4100_v58 = vpop.f32.mrb[207].mxu0 }
 0x4ae   : > { %4170 = vmatmul.mubr.bf16.gmra.mrb[200].mxu1 %v2958_v55 }
 0x4af   : > { %v2905_v57 = vsel %vm2845_vm13, %v2763_v50, %v2875_v44  ;;  %vm2846_vm14 = vcmp.ge.f32.partialorder %v2766_v49, 0.0  ;;  %v2876_v43 = vmul.f32 0.1, %v2766_v49  ;;  %4173 = vmatprep.mubr.msk.bf16.mxu1 %vm4333_vm0, %v4331_v1 }
 0x4b0   : > { %v2935_v6 = vadd.f32 %v2905_v57, %v5333_v3 }
 0x4b1   : > { %v2906_v5 = vsel %vm2846_vm14, %v2766_v49, %v2876_v43 }
 0x4b2   : > { %v2770_v56 = vpop.f32.mrb[208].mxu0  ;;  %v2936_v60 = vadd.f32 %v2906_v5, %v5336_v53 }
 0x4b3   : > { %v2771_v27 = vadd.f32 %v5439_v21, %v2770_v56  ;;  %v4103_v15 = vpop.f32.mrb[209].mxu0 }
 0x4b4   : > { %v2773_v61 = vpop.f32.mrb[210].mxu0  ;;  %v2959_v2 = vpack.c.bf16 %v2936_v60, %v2935_v6 }
 0x4b5   : > { %vm2847_vm15 = vcmp.ge.f32.partialorder %v2771_v27, 0.0  ;;  %v2877_v63 = vmul.f32 0.1, %v2771_v27  ;;  %v2774_v62 = vadd.f32 %v5439_v21, %v2773_v61  ;;  %v4104_v13 = vpop.f32.mrb[211].mxu0 }
 0x4b6   : > { %4174 = vmatmul.mubr.bf16.gmra.mrb[204].mxu1 %v2959_v2 }
 0x4b7   : > { %v2907_v14 = vsel %vm2847_vm15, %v2771_v27, %v2877_v63  ;;  %vm2848_vm1 = vcmp.ge.f32.partialorder %v2774_v62, 0.0  ;;  %v2878_v52 = vmul.f32 0.1, %v2774_v62  ;;  %4177 = vmatprep.mubr.msk.bf16.mxu1 %vm4333_vm0, %v4331_v1 }
 0x4b8   : > { %v2937_v53 = vadd.f32 %v2907_v14, %v5345_v51 }
 0x4b9   : > { %v2908_v3 = vsel %vm2848_vm1, %v2774_v62, %v2878_v52 }
 0x4ba   : > { %v2778_v22 = vpop.f32.mrb[212].mxu0  ;;  %v2938_v0 = vadd.f32 %v2908_v3, %v5348_v18 }
 0x4bb   : > { %v2779_v8 = vadd.f32 %v5439_v21, %v2778_v22  ;;  %v4107_v28 = vpop.f32.mrb[213].mxu0 }
 0x4bc   : > { %v2781_v16 = vpop.f32.mrb[214].mxu0  ;;  %v2960_v46 = vpack.c.bf16 %v2938_v0, %v2937_v53 }
 0x4bd   : > { %vm2849_vm2 = vcmp.ge.f32.partialorder %v2779_v8, 0.0  ;;  %v2879_v17 = vmul.f32 0.1, %v2779_v8  ;;  %v2782_v29 = vadd.f32 %v5439_v21, %v2781_v16  ;;  %v4108_v37 = vpop.f32.mrb[215].mxu0 }
 0x4be   : > { %4178 = vmatmul.mubr.bf16.gmra.mrb[208].mxu1 %v2960_v46 }
 0x4bf   : > { %v2909_v10 = vsel %vm2849_vm2, %v2779_v8, %v2879_v17  ;;  %vm2850_vm3 = vcmp.ge.f32.partialorder %v2782_v29, 0.0  ;;  %v2880_v24 = vmul.f32 0.1, %v2782_v29  ;;  %4181 = vmatprep.mubr.msk.bf16.mxu1 %vm4333_vm0, %v4331_v1 }
 0x4c0   : > { %v2939_v18 = vadd.f32 %v2909_v10, %v5357_v31 }
 0x4c1   : > { %v2910_v51 = vsel %vm2850_vm3, %v2782_v29, %v2880_v24 }
 0x4c2   : > { %v2786_v30 = vpop.f32.mrb[216].mxu0  ;;  %v2940_v25 = vadd.f32 %v2910_v51, %v5360_v34 }
 0x4c3   : > { %v2787_v32 = vadd.f32 %v5439_v21, %v2786_v30  ;;  %v4111_v35 = vpop.f32.mrb[217].mxu0 }
 0x4c4   : > { %v2789_v36 = vpop.f32.mrb[218].mxu0  ;;  %v2961_v9 = vpack.c.bf16 %v2940_v25, %v2939_v18 }
 0x4c5   : > { %vm2851_vm4 = vcmp.ge.f32.partialorder %v2787_v32, 0.0  ;;  %v2881_v47 = vmul.f32 0.1, %v2787_v32  ;;  %v2790_v20 = vadd.f32 %v5439_v21, %v2789_v36  ;;  %v4112_v48 = vpop.f32.mrb[219].mxu0 }
 0x4c6   : > { %4182 = vmatmul.mubr.bf16.gmra.mrb[212].mxu1 %v2961_v9 }
 0x4c7   : > { %v2911_v45 = vsel %vm2851_vm4, %v2787_v32, %v2881_v47  ;;  %vm2852_vm5 = vcmp.ge.f32.partialorder %v2790_v20, 0.0  ;;  %v2882_v4 = vmul.f32 0.1, %v2790_v20  ;;  %4185 = vmatprep.mubr.msk.bf16.mxu1 %vm4333_vm0, %v4331_v1 }
 0x4c8   : > { %v2941_v34 = vadd.f32 %v2911_v45, %v5369_v39 }
 0x4c9   : > { %v2912_v31 = vsel %vm2852_vm5, %v2790_v20, %v2882_v4 }
 0x4ca   : > { %v2794_v50 = vpop.f32.mrb[220].mxu0  ;;  %v2942_v7 = vadd.f32 %v2912_v31, %v5372_v40 }
 0x4cb   : > { %v2795_v54 = vadd.f32 %v5439_v21, %v2794_v50  ;;  %v4115_v55 = vpop.f32.mrb[221].mxu0 }
 0x4cc   : > { %v2797_v44 = vpop.f32.mrb[222].mxu0  ;;  %v2962_v49 = vpack.c.bf16 %v2942_v7, %v2941_v34 }
 0x4cd   : > { %vm2853_vm6 = vcmp.ge.f32.partialorder %v2795_v54, 0.0  ;;  %v2883_v58 = vmul.f32 0.1, %v2795_v54  ;;  %v2798_v57 = vadd.f32 %v5439_v21, %v2797_v44  ;;  %v4116_v43 = vpop.f32.mrb[223].mxu0 }
 0x4ce   : > { %4186 = vmatmul.mubr.bf16.gmra.mrb[216].mxu1 %v2962_v49 }
 0x4cf   : > { %v2913_v5 = vsel %vm2853_vm6, %v2795_v54, %v2883_v58  ;;  %vm2854_vm7 = vcmp.ge.f32.partialorder %v2798_v57, 0.0  ;;  %v2884_v56 = vmul.f32 0.1, %v2798_v57  ;;  %4189 = vmatprep.mubr.msk.bf16.mxu1 %vm4333_vm0, %v4331_v1 }
 0x4d0   : > { %v2943_v40 = vadd.f32 %v2913_v5, %v5381_v19 }
 0x4d1   : > { %v2914_v39 = vsel %vm2854_vm7, %v2798_v57, %v2884_v56  ;;  %v5532_v57 = vld [vmem:[%s5611_s8] ss:$0 sm:$0xff] }
 0x4d2   : > { %v2802_v6 = vpop.f32.mrb[224].mxu0  ;;  %v2944_v60 = vadd.f32 %v2914_v39, %v5384_v12 }
 0x4d3   : > { %v2803_v27 = vadd.f32 %v5439_v21, %v2802_v6  ;;  %v4119_v15 = vpop.f32.mrb[225].mxu0 }
 0x4d4   : > { %v2805_v61 = vpop.f32.mrb[226].mxu0  ;;  %v2963_v2 = vpack.c.bf16 %v2944_v60, %v2943_v40 }
 0x4d5   : > { %vm2855_vm8 = vcmp.ge.f32.partialorder %v2803_v27, 0.0  ;;  %v2885_v63 = vmul.f32 0.1, %v2803_v27  ;;  %v2806_v62 = vadd.f32 %v5439_v21, %v2805_v61  ;;  %v4120_v13 = vpop.f32.mrb[227].mxu0 }
 0x4d6   : > { %4190 = vmatmul.mubr.bf16.gmra.mrb[220].mxu1 %v2963_v2 }
 0x4d7   : > { %v2915_v14 = vsel %vm2855_vm8, %v2803_v27, %v2885_v63  ;;  %vm2856_vm9 = vcmp.ge.f32.partialorder %v2806_v62, 0.0  ;;  %v2886_v52 = vmul.f32 0.1, %v2806_v62  ;;  %4193 = vmatprep.mubr.msk.bf16.mxu1 %vm4333_vm0, %v4331_v1 }
 0x4d8   : > { %v2945_v12 = vadd.f32 %v2915_v14, %v5393_v33 }
 0x4d9   : > { %v2916_v19 = vsel %vm2856_vm9, %v2806_v62, %v2886_v52 }
 0x4da   : > { %v2810_v3 = vpop.f32.mrb[228].mxu0  ;;  %v2946_v22 = vadd.f32 %v2916_v19, %v5396_v38 }
 0x4db   : > { %v2811_v53 = vadd.f32 %v5439_v21, %v2810_v3  ;;  %v4123_v0 = vpop.f32.mrb[229].mxu0 }
 0x4dc   : > { %v2813_v8 = vpop.f32.mrb[230].mxu0  ;;  %v2964_v28 = vpack.c.bf16 %v2946_v22, %v2945_v12 }
 0x4dd   : > { %vm2857_vm10 = vcmp.ge.f32.partialorder %v2811_v53, 0.0  ;;  %v2887_v16 = vmul.f32 0.1, %v2811_v53  ;;  %v2814_v46 = vadd.f32 %v5439_v21, %v2813_v8  ;;  %v4124_v17 = vpop.f32.mrb[231].mxu0 }
 0x4de   : > { %4194 = vmatmul.mubr.bf16.gmra.mrb[224].mxu1 %v2964_v28 }
 0x4df   : > { %v2917_v29 = vsel %vm2857_vm10, %v2811_v53, %v2887_v16  ;;  %vm2858_vm11 = vcmp.ge.f32.partialorder %v2814_v46, 0.0  ;;  %v2888_v37 = vmul.f32 0.1, %v2814_v46  ;;  %4197 = vmatprep.mubr.msk.bf16.mxu1 %vm4333_vm0, %v4331_v1 }
 0x4e0   : > { %v2947_v38 = vadd.f32 %v2917_v29, %v5405_v42 }
 0x4e1   : > { %v2918_v33 = vsel %vm2858_vm11, %v2814_v46, %v2888_v37 }
 0x4e2   : > { %v2818_v10 = vpop.f32.mrb[232].mxu0  ;;  %v2948_v24 = vadd.f32 %v2918_v33, %v5408_v59 }
 0x4e3   : > { %v2819_v51 = vadd.f32 %v5439_v21, %v2818_v10  ;;  %v4127_v30 = vpop.f32.mrb[233].mxu0 }
 0x4e4   : > { %v2821_v18 = vpop.f32.mrb[234].mxu0  ;;  %v2965_v25 = vpack.c.bf16 %v2948_v24, %v2947_v38 }
 0x4e5   : > { %vm2859_vm12 = vcmp.ge.f32.partialorder %v2819_v51, 0.0  ;;  %v2889_v32 = vmul.f32 0.1, %v2819_v51  ;;  %v2822_v35 = vadd.f32 %v5439_v21, %v2821_v18  ;;  %v4128_v36 = vpop.f32.mrb[235].mxu0 }
 0x4e6   : > { %4198 = vmatmul.mubr.bf16.gmra.mrb[228].mxu1 %v2965_v25 }
 0x4e7   : > { %v2919_v9 = vsel %vm2859_vm12, %v2819_v51, %v2889_v32  ;;  %vm2860_vm13 = vcmp.ge.f32.partialorder %v2822_v35, 0.0  ;;  %v2890_v47 = vmul.f32 0.1, %v2822_v35  ;;  %4201 = vmatprep.mubr.msk.bf16.mxu1 %vm4333_vm0, %v4331_v1 }
 0x4e8   : > { %v2949_v59 = vadd.f32 %v2919_v9, %v5417_v11 }
 0x4e9   : > { %v2920_v42 = vsel %vm2860_vm13, %v2822_v35, %v2890_v47 }
 0x4ea   : > { %v2826_v20 = vpop.f32.mrb[236].mxu0  ;;  %v2950_v48 = vadd.f32 %v2920_v42, %v5420_v26 }
 0x4eb   : > { %v2827_v45 = vadd.f32 %v5439_v21, %v2826_v20  ;;  %v4131_v4 = vpop.f32.mrb[237].mxu0 }
 0x4ec   : > { %v2829_v31 = vpop.f32.mrb[238].mxu0  ;;  %v2966_v50 = vpack.c.bf16 %v2950_v48, %v2949_v59 }
 0x4ed   : > { %vm2861_vm14 = vcmp.ge.f32.partialorder %v2827_v45, 0.0  ;;  %v2891_v34 = vmul.f32 0.1, %v2827_v45  ;;  %v2830_v7 = vadd.f32 %v5439_v21, %v2829_v31  ;;  %v4132_v54 = vpop.f32.mrb[239].mxu0 }
 0x4ee   : > { %4202 = vmatmul.mubr.bf16.gmra.mrb[232].mxu1 %v2966_v50 }
 0x4ef   : > { %v2921_v55 = vsel %vm2861_vm14, %v2827_v45, %v2891_v34  ;;  %vm2862_vm15 = vcmp.ge.f32.partialorder %v2830_v7, 0.0  ;;  %v2892_v44 = vmul.f32 0.1, %v2830_v7  ;;  %4205 = vmatprep.mubr.msk.bf16.mxu1 %vm4333_vm0, %v4331_v1 }
 0x4f0   : > { %v2951_v26 = vadd.f32 %v2921_v55, %v5429_v41 }
 0x4f1   : > { %v2922_v11 = vsel %vm2862_vm15, %v2830_v7, %v2892_v44 }
 0x4f2   : > { %v2952_v49 = vadd.f32 %v2922_v11, %v5432_v23 }
 0x4f4   : > { %v2967_v58 = vpack.c.bf16 %v2952_v49, %v2951_v26 }
 0x4f6   : > { %4206 = vmatmul.mubr.bf16.gmra.mrb[236].mxu1 %v2967_v58 }
 0x559   : > { %v3073_v21 = vpop.f32.mrb[180].mxu1 }
 0x55a   : > { %v3074_v43 = vadd.f32 %v5532_v57, %v3073_v21  ;;  %v4151_v5 = vpop.f32.mrb[181].mxu1 }
 0x55b   : > { %v3076_v56 = vpop.f32.mrb[182].mxu1 }
 0x55c   : > { %vm3192_vm0 = vcmp.ge.f32.partialorder %v3074_v43, 0.0  ;;  %v3222_v1 = vmul.f32 0.1, %v3074_v43  ;;  %v3077_v41 = vadd.f32 %v5532_v57, %v3076_v56  ;;  %v4152_v23 = vpop.f32.mrb[183].mxu1 }
 0x55e   : > { %v3252_v39 = vsel %vm3192_vm0, %v3074_v43, %v3222_v1  ;;  %vm3193_vm1 = vcmp.ge.f32.partialorder %v3077_v41, 0.0  ;;  %v3223_v6 = vmul.f32 0.1, %v3077_v41 }
 0x55f   : > { %3282 = vst [vmem:[%s5539_s22] sm:$0xff] %v3252_v39 }
 0x560   : > { %v3253_v40 = vsel %vm3193_vm1, %v3077_v41, %v3223_v6 }
 0x561   : > { %3283 = vst [vmem:[%s5539_s22 + $0x8] sm:$0xff] %v3253_v40  ;;  %v3081_v60 = vpop.f32.mrb[184].mxu1 }
 0x562   : > { %v3082_v27 = vadd.f32 %v5532_v57, %v3081_v60  ;;  %v4155_v15 = vpop.f32.mrb[185].mxu1 }
 0x563   : > { %v3084_v61 = vpop.f32.mrb[186].mxu1 }
 0x564   : > { %vm3194_vm2 = vcmp.ge.f32.partialorder %v3082_v27, 0.0  ;;  %v3224_v2 = vmul.f32 0.1, %v3082_v27  ;;  %v3085_v63 = vadd.f32 %v5532_v57, %v3084_v61  ;;  %v4156_v62 = vpop.f32.mrb[187].mxu1 }
 0x566   : > { %v3254_v13 = vsel %vm3194_vm2, %v3082_v27, %v3224_v2  ;;  %vm3195_vm3 = vcmp.ge.f32.partialorder %v3085_v63, 0.0  ;;  %v3225_v14 = vmul.f32 0.1, %v3085_v63 }
 0x567   : > { %3284 = vst [vmem:[%s5539_s22 + $0x10] sm:$0xff] %v3254_v13 }
 0x568   : > { %v3255_v52 = vsel %vm3195_vm3, %v3085_v63, %v3225_v14 }
 0x569   : > { %3285 = vst [vmem:[%s5539_s22 + $0x18] sm:$0xff] %v3255_v52  ;;  %v3089_v19 = vpop.f32.mrb[188].mxu1 }
 0x56a   : > { %v3090_v3 = vadd.f32 %v5532_v57, %v3089_v19  ;;  %v4159_v12 = vpop.f32.mrb[189].mxu1 }
 0x56b   : > { %v3092_v22 = vpop.f32.mrb[190].mxu1 }
 0x56c   : > { %vm3196_vm4 = vcmp.ge.f32.partialorder %v3090_v3, 0.0  ;;  %v3226_v53 = vmul.f32 0.1, %v3090_v3  ;;  %v3093_v0 = vadd.f32 %v5532_v57, %v3092_v22  ;;  %v4160_v8 = vpop.f32.mrb[191].mxu1 }
 0x56e   : > { %v3256_v28 = vsel %vm3196_vm4, %v3090_v3, %v3226_v53  ;;  %vm3197_vm5 = vcmp.ge.f32.partialorder %v3093_v0, 0.0  ;;  %v3227_v16 = vmul.f32 0.1, %v3093_v0 }
 0x56f   : > { %3286 = vst [vmem:[%s5539_s22 + $0x20] sm:$0xff] %v3256_v28 }
 0x570   : > { %v3257_v46 = vsel %vm3197_vm5, %v3093_v0, %v3227_v16 }
 0x571   : > { %3287 = vst [vmem:[%s5539_s22 + $0x28] sm:$0xff] %v3257_v46  ;;  %v3097_v17 = vpop.f32.mrb[192].mxu1 }
 0x572   : > { %v3098_v29 = vadd.f32 %v5532_v57, %v3097_v17  ;;  %v4163_v37 = vpop.f32.mrb[193].mxu1 }
 0x573   : > { %v3100_v33 = vpop.f32.mrb[194].mxu1 }
 0x574   : > { %vm3198_vm6 = vcmp.ge.f32.partialorder %v3098_v29, 0.0  ;;  %v3228_v10 = vmul.f32 0.1, %v3098_v29  ;;  %v3101_v38 = vadd.f32 %v5532_v57, %v3100_v33  ;;  %v4164_v24 = vpop.f32.mrb[195].mxu1 }
 0x576   : > { %v3258_v51 = vsel %vm3198_vm6, %v3098_v29, %v3228_v10  ;;  %vm3199_vm7 = vcmp.ge.f32.partialorder %v3101_v38, 0.0  ;;  %v3229_v30 = vmul.f32 0.1, %v3101_v38 }
 0x577   : > { %3288 = vst [vmem:[%s5539_s22 + $0x30] sm:$0xff] %v3258_v51 }
 0x578   : > { %v3259_v18 = vsel %vm3199_vm7, %v3101_v38, %v3229_v30 }
 0x579   : > { %3289 = vst [vmem:[%s5539_s22 + $0x38] sm:$0xff] %v3259_v18  ;;  %v3105_v25 = vpop.f32.mrb[196].mxu1 }
 0x57a   : > { %v3106_v32 = vadd.f32 %v5532_v57, %v3105_v25  ;;  %v4167_v35 = vpop.f32.mrb[197].mxu1 }
 0x57b   : > { %v3108_v36 = vpop.f32.mrb[198].mxu1 }
 0x57c   : > { %vm3200_vm8 = vcmp.ge.f32.partialorder %v3106_v32, 0.0  ;;  %v3230_v9 = vmul.f32 0.1, %v3106_v32  ;;  %v3109_v47 = vadd.f32 %v5532_v57, %v3108_v36  ;;  %v4168_v42 = vpop.f32.mrb[199].mxu1 }
 0x57e   : > { %v3260_v20 = vsel %vm3200_vm8, %v3106_v32, %v3230_v9  ;;  %vm3201_vm9 = vcmp.ge.f32.partialorder %v3109_v47, 0.0  ;;  %v3231_v59 = vmul.f32 0.1, %v3109_v47 }
 0x57f   : > { %3290 = vst [vmem:[%s5539_s22 + $0x40] sm:$0xff] %v3260_v20 }
 0x580   : > { %v3261_v48 = vsel %vm3201_vm9, %v3109_v47, %v3231_v59 }
 0x581   : > { %3291 = vst [vmem:[%s5539_s22 + $0x48] sm:$0xff] %v3261_v48  ;;  %v3113_v45 = vpop.f32.mrb[200].mxu1 }
 0x582   : > { %v3114_v4 = vadd.f32 %v5532_v57, %v3113_v45  ;;  %v4171_v31 = vpop.f32.mrb[201].mxu1 }
 0x583   : > { %v3116_v50 = vpop.f32.mrb[202].mxu1 }
 0x584   : > { %vm3202_vm10 = vcmp.ge.f32.partialorder %v3114_v4, 0.0  ;;  %v3232_v34 = vmul.f32 0.1, %v3114_v4  ;;  %v3117_v7 = vadd.f32 %v5532_v57, %v3116_v50  ;;  %v4172_v54 = vpop.f32.mrb[203].mxu1 }
 0x586   : > { %v3262_v55 = vsel %vm3202_vm10, %v3114_v4, %v3232_v34  ;;  %vm3203_vm11 = vcmp.ge.f32.partialorder %v3117_v7, 0.0  ;;  %v3233_v44 = vmul.f32 0.1, %v3117_v7 }
 0x587   : > { %3292 = vst [vmem:[%s5539_s22 + $0x50] sm:$0xff] %v3262_v55 }
 0x588   : > { %v3263_v11 = vsel %vm3203_vm11, %v3117_v7, %v3233_v44 }
 0x589   : > { %3293 = vst [vmem:[%s5539_s22 + $0x58] sm:$0xff] %v3263_v11  ;;  %v3121_v26 = vpop.f32.mrb[204].mxu1 }
 0x58a   : > { %v3122_v49 = vadd.f32 %v5532_v57, %v3121_v26  ;;  %v4175_v58 = vpop.f32.mrb[205].mxu1 }
 0x58b   : > { %v3124_v21 = vpop.f32.mrb[206].mxu1 }
 0x58c   : > { %vm3204_vm12 = vcmp.ge.f32.partialorder %v3122_v49, 0.0  ;;  %v3234_v43 = vmul.f32 0.1, %v3122_v49  ;;  %v3125_v5 = vadd.f32 %v5532_v57, %v3124_v21  ;;  %v4176_v56 = vpop.f32.mrb[207].mxu1 }
 0x58e   : > { %v3264_v1 = vsel %vm3204_vm12, %v3122_v49, %v3234_v43  ;;  %vm3205_vm13 = vcmp.ge.f32.partialorder %v3125_v5, 0.0  ;;  %v3235_v41 = vmul.f32 0.1, %v3125_v5 }
 0x58f   : > { %3294 = vst [vmem:[%s5539_s22 + $0x60] sm:$0xff] %v3264_v1 }
 0x590   : > { %v3265_v23 = vsel %vm3205_vm13, %v3125_v5, %v3235_v41 }
 0x591   : > { %3295 = vst [vmem:[%s5539_s22 + $0x68] sm:$0xff] %v3265_v23  ;;  %v3129_v39 = vpop.f32.mrb[208].mxu1 }
 0x592   : > { %v3130_v6 = vadd.f32 %v5532_v57, %v3129_v39  ;;  %v4179_v40 = vpop.f32.mrb[209].mxu1 }
 0x593   : > { %v3132_v60 = vpop.f32.mrb[210].mxu1 }
 0x594   : > { %vm3206_vm14 = vcmp.ge.f32.partialorder %v3130_v6, 0.0  ;;  %v3236_v27 = vmul.f32 0.1, %v3130_v6  ;;  %v3133_v15 = vadd.f32 %v5532_v57, %v3132_v60  ;;  %v4180_v61 = vpop.f32.mrb[211].mxu1 }
 0x596   : > { %v3266_v2 = vsel %vm3206_vm14, %v3130_v6, %v3236_v27  ;;  %vm3207_vm15 = vcmp.ge.f32.partialorder %v3133_v15, 0.0  ;;  %v3237_v63 = vmul.f32 0.1, %v3133_v15 }
 0x597   : > { %3296 = vst [vmem:[%s5539_s22 + $0x70] sm:$0xff] %v3266_v2 }
 0x598   : > { %v3267_v62 = vsel %vm3207_vm15, %v3133_v15, %v3237_v63 }
 0x599   : > { %3297 = vst [vmem:[%s5539_s22 + $0x78] sm:$0xff] %v3267_v62  ;;  %v3137_v13 = vpop.f32.mrb[212].mxu1 }
 0x59a   : > { %v3138_v14 = vadd.f32 %v5532_v57, %v3137_v13  ;;  %v4183_v52 = vpop.f32.mrb[213].mxu1 }
 0x59b   : > { %v3140_v19 = vpop.f32.mrb[214].mxu1 }
 0x59c   : > { %vm3208_vm0 = vcmp.ge.f32.partialorder %v3138_v14, 0.0  ;;  %v3238_v3 = vmul.f32 0.1, %v3138_v14  ;;  %v3141_v12 = vadd.f32 %v5532_v57, %v3140_v19  ;;  %v4184_v22 = vpop.f32.mrb[215].mxu1 }
 0x59e   : > { %v3268_v53 = vsel %vm3208_vm0, %v3138_v14, %v3238_v3  ;;  %vm3209_vm1 = vcmp.ge.f32.partialorder %v3141_v12, 0.0  ;;  %v3239_v0 = vmul.f32 0.1, %v3141_v12 }
 0x59f   : > { %3298 = vst [vmem:[%s5539_s22 + $0x80] sm:$0xff] %v3268_v53 }
 0x5a0   : > { %v3269_v8 = vsel %vm3209_vm1, %v3141_v12, %v3239_v0 }
 0x5a1   : > { %3299 = vst [vmem:[%s5539_s22 + $0x88] sm:$0xff] %v3269_v8  ;;  %v3145_v28 = vpop.f32.mrb[216].mxu1 }
 0x5a2   : > { %v3146_v16 = vadd.f32 %v5532_v57, %v3145_v28  ;;  %v4187_v46 = vpop.f32.mrb[217].mxu1 }
 0x5a3   : > { %v3148_v17 = vpop.f32.mrb[218].mxu1 }
 0x5a4   : > { %vm3210_vm2 = vcmp.ge.f32.partialorder %v3146_v16, 0.0  ;;  %v3240_v29 = vmul.f32 0.1, %v3146_v16  ;;  %v3149_v37 = vadd.f32 %v5532_v57, %v3148_v17  ;;  %v4188_v33 = vpop.f32.mrb[219].mxu1 }
 0x5a6   : > { %v3270_v10 = vsel %vm3210_vm2, %v3146_v16, %v3240_v29  ;;  %vm3211_vm3 = vcmp.ge.f32.partialorder %v3149_v37, 0.0  ;;  %v3241_v38 = vmul.f32 0.1, %v3149_v37 }
 0x5a7   : > { %3300 = vst [vmem:[%s5539_s22 + $0x90] sm:$0xff] %v3270_v10 }
 0x5a8   : > { %v3271_v24 = vsel %vm3211_vm3, %v3149_v37, %v3241_v38 }
 0x5a9   : > { %3301 = vst [vmem:[%s5539_s22 + $0x98] sm:$0xff] %v3271_v24  ;;  %v3153_v51 = vpop.f32.mrb[220].mxu1 }
 0x5aa   : > { %v3154_v30 = vadd.f32 %v5532_v57, %v3153_v51  ;;  %v4191_v18 = vpop.f32.mrb[221].mxu1 }
 0x5ab   : > { %v3156_v25 = vpop.f32.mrb[222].mxu1 }
 0x5ac   : > { %vm3212_vm4 = vcmp.ge.f32.partialorder %v3154_v30, 0.0  ;;  %v3242_v32 = vmul.f32 0.1, %v3154_v30  ;;  %v3157_v35 = vadd.f32 %v5532_v57, %v3156_v25  ;;  %v4192_v36 = vpop.f32.mrb[223].mxu1 }
 0x5ae   : > { %v3272_v9 = vsel %vm3212_vm4, %v3154_v30, %v3242_v32  ;;  %vm3213_vm5 = vcmp.ge.f32.partialorder %v3157_v35, 0.0  ;;  %v3243_v47 = vmul.f32 0.1, %v3157_v35 }
 0x5af   : > { %3302 = vst [vmem:[%s5539_s22 + $0xa0] sm:$0xff] %v3272_v9 }
 0x5b0   : > { %v3273_v42 = vsel %vm3213_vm5, %v3157_v35, %v3243_v47 }
 0x5b1   : > { %3303 = vst [vmem:[%s5539_s22 + $0xa8] sm:$0xff] %v3273_v42  ;;  %v3161_v20 = vpop.f32.mrb[224].mxu1 }
 0x5b2   : > { %v3162_v59 = vadd.f32 %v5532_v57, %v3161_v20  ;;  %v4195_v48 = vpop.f32.mrb[225].mxu1 }
 0x5b3   : > { %v3164_v45 = vpop.f32.mrb[226].mxu1 }
 0x5b4   : > { %vm3214_vm6 = vcmp.ge.f32.partialorder %v3162_v59, 0.0  ;;  %v3244_v4 = vmul.f32 0.1, %v3162_v59  ;;  %v3165_v31 = vadd.f32 %v5532_v57, %v3164_v45  ;;  %v4196_v50 = vpop.f32.mrb[227].mxu1 }
 0x5b6   : > { %v3274_v34 = vsel %vm3214_vm6, %v3162_v59, %v3244_v4  ;;  %vm3215_vm7 = vcmp.ge.f32.partialorder %v3165_v31, 0.0  ;;  %v3245_v7 = vmul.f32 0.1, %v3165_v31 }
 0x5b7   : > { %3304 = vst [vmem:[%s5539_s22 + $0xb0] sm:$0xff] %v3274_v34 }
 0x5b8   : > { %v3275_v54 = vsel %vm3215_vm7, %v3165_v31, %v3245_v7 }
 0x5b9   : > { %3305 = vst [vmem:[%s5539_s22 + $0xb8] sm:$0xff] %v3275_v54  ;;  %v3169_v55 = vpop.f32.mrb[228].mxu1 }
 0x5ba   : > { %v3170_v44 = vadd.f32 %v5532_v57, %v3169_v55  ;;  %v4199_v11 = vpop.f32.mrb[229].mxu1 }
 0x5bb   : > { %v3172_v26 = vpop.f32.mrb[230].mxu1 }
 0x5bc   : > { %vm3216_vm8 = vcmp.ge.f32.partialorder %v3170_v44, 0.0  ;;  %v3246_v49 = vmul.f32 0.1, %v3170_v44  ;;  %v3173_v58 = vadd.f32 %v5532_v57, %v3172_v26  ;;  %v4200_v21 = vpop.f32.mrb[231].mxu1 }
 0x5be   : > { %v3276_v43 = vsel %vm3216_vm8, %v3170_v44, %v3246_v49  ;;  %vm3217_vm9 = vcmp.ge.f32.partialorder %v3173_v58, 0.0  ;;  %v3247_v5 = vmul.f32 0.1, %v3173_v58 }
 0x5bf   : > { %3306 = vst [vmem:[%s5539_s22 + $0xc0] sm:$0xff] %v3276_v43 }
 0x5c0   : > { %v3277_v56 = vsel %vm3217_vm9, %v3173_v58, %v3247_v5 }
 0x5c1   : > { %3307 = vst [vmem:[%s5539_s22 + $0xc8] sm:$0xff] %v3277_v56  ;;  %v3177_v1 = vpop.f32.mrb[232].mxu1 }
 0x5c2   : > { %v3178_v41 = vadd.f32 %v5532_v57, %v3177_v1  ;;  %v4203_v23 = vpop.f32.mrb[233].mxu1 }
 0x5c3   : > { %v3180_v39 = vpop.f32.mrb[234].mxu1 }
 0x5c4   : > { %vm3218_vm10 = vcmp.ge.f32.partialorder %v3178_v41, 0.0  ;;  %v3248_v6 = vmul.f32 0.1, %v3178_v41  ;;  %v3181_v40 = vadd.f32 %v5532_v57, %v3180_v39  ;;  %v4204_v60 = vpop.f32.mrb[235].mxu1 }
 0x5c6   : > { %v3278_v27 = vsel %vm3218_vm10, %v3178_v41, %v3248_v6  ;;  %vm3219_vm11 = vcmp.ge.f32.partialorder %v3181_v40, 0.0  ;;  %v3249_v15 = vmul.f32 0.1, %v3181_v40 }
 0x5c7   : > { %3308 = vst [vmem:[%s5539_s22 + $0xd0] sm:$0xff] %v3278_v27 }
 0x5c8   : > { %v3279_v61 = vsel %vm3219_vm11, %v3181_v40, %v3249_v15 }
 0x5c9   : > { %3309 = vst [vmem:[%s5539_s22 + $0xd8] sm:$0xff] %v3279_v61  ;;  %v3185_v2 = vpop.f32.mrb[236].mxu1 }
 0x5ca   : > { %v3186_v63 = vadd.f32 %v5532_v57, %v3185_v2  ;;  %v4207_v62 = vpop.f32.mrb[237].mxu1 }
 0x5cb   : > { %v3188_v13 = vpop.f32.mrb[238].mxu1 }
 0x5cc   : > { %vm3220_vm12 = vcmp.ge.f32.partialorder %v3186_v63, 0.0  ;;  %v3250_v14 = vmul.f32 0.1, %v3186_v63  ;;  %v3189_v52 = vadd.f32 %v5532_v57, %v3188_v13  ;;  %v4208_v19 = vpop.f32.mrb[239].mxu1 }
 0x5ce   : > { %v3280_v3 = vsel %vm3220_vm12, %v3186_v63, %v3250_v14  ;;  %vm3221_vm13 = vcmp.ge.f32.partialorder %v3189_v52, 0.0  ;;  %v3251_v12 = vmul.f32 0.1, %v3189_v52 }
 0x5cf   : > { %3310 = vst [vmem:[%s5539_s22 + $0xe0] sm:$0xff] %v3280_v3 }
 0x5d0   : > { %v3281_v22 = vsel %vm3221_vm13, %v3189_v52, %v3251_v12 }
 0x5d1   : > { %3311 = vst [vmem:[%s5539_s22 + $0xe8] sm:$0xff] %v3281_v22 }
 0x5d2 PF: > { %s19_s30 = sadd.s32 1, %s4329_s30  }
 0x5d3   : > { %p16_p4 = scmp.ge.s32.totalorder %s19_s30, 4  }
 0x5d5   :  { %18 = sbr.rel (!%p16_p4) target bundleno = 1 (0x1), region = 88 }

</bundles_post_ra>
